<compile_context>
chip_gen: v7x
topology: tpu7x:2x2x1
jax: 0.10.0
libtpu: 0.0.40
codegen_flags: <defaults>
</compile_context>

<pallas_src>
import functools

import numpy as np
import jax
import jax.numpy as jnp
from jax import lax
from jax.experimental import pallas as pl
from jax.experimental.pallas import tpu as pltpu


# --------------------------------------------------------------------------
# Pallas kernels
# --------------------------------------------------------------------------
def _conv_mm_kernel(p_ref, w_ref, b_ref, o_ref, *, slope):
    """One grid step = (batch element, spatial tile).

    p_ref: (1, K, TM)    bf16 im2col patches (TM lanes, multiple of 128)
    w_ref: (Cout, K)     bf16 weight matrix
    b_ref: (Cout, 1)     f32 bias
    o_ref: (1, Cout, TM) bf16 output (written exactly once, lane-dense)
    """
    acc = jnp.dot(w_ref[...], p_ref[0], preferred_element_type=jnp.float32)
    acc = acc + b_ref[...]
    if slope is not None:
        acc = jnp.where(acc >= 0, acc, acc * slope)
    o_ref[0] = acc.astype(o_ref.dtype)


def _tail_kernel(p4_ref, w4_ref, b4_ref,
                 g5_ref, w5_ref, b5_ref,
                 g6_ref, w6_ref, b6_ref,
                 g7_ref, w7_ref, b7_ref,
                 w8_ref, b8_ref, o_ref,
                 p5_s, p6_s, p7_s, *, slope):
    """Fused layers 4..8 for one batch element; activations never leave VMEM.

    Stride-2 tap gathering between fused layers is an MXU matmul with 0/1
    gather matrices g*_ref[tap] (M_in, M_out); on bf16 activations these are
    exact copies.  The 9 gathered taps are stacked into a (9*Cin, M_out) VMEM
    scratch and consumed by a single weight matmul.
    """
    # ---- layer 4: host-side bf16 im2col patches, one matmul ----------------
    a = jnp.dot(w4_ref[...], p4_ref[0], preferred_element_type=jnp.float32)
    a = a + b4_ref[...]
    a = jnp.where(a >= 0, a, a * slope)                     # (16, 225) f32

    # ---- layers 5..7: gather 9 taps -> scratch, one weight matmul ----------
    for g_ref, w_ref, b_ref, p_s in ((g5_ref, w5_ref, b5_ref, p5_s),
                                     (g6_ref, w6_ref, b6_ref, p6_s),
                                     (g7_ref, w7_ref, b7_ref, p7_s)):
        a_bf = a.astype(jnp.bfloat16)
        c = a_bf.shape[0]
        taps = g_ref.shape[0]
        for t in range(taps):
            patch = jnp.dot(a_bf, g_ref[t],                 # exact 0/1 gather
                            preferred_element_type=jnp.float32)
            p_s[t * c:(t + 1) * c, :] = patch.astype(jnp.bfloat16)
        acc = jnp.dot(w_ref[...], p_s[...],
                      preferred_element_type=jnp.float32) + b_ref[...]
        a = jnp.where(acc >= 0, acc, acc * slope)

    # ---- layer 8: 1x1 conv, no activation ----------------------------------
    o_ref[0] = (jnp.dot(w8_ref[...], a.astype(jnp.bfloat16),
                        preferred_element_type=jnp.float32) + b8_ref[...])


# --------------------------------------------------------------------------
# Host-side helpers (weight reshapes, im2col glue, gather matrices)
# --------------------------------------------------------------------------
def _round_up(x, m):
    return (x + m - 1) // m * m


def _im2col(x, KH, KW, S):
    """(N,C,H,W) -> bf16 (N, KH*KW*C, Hout*Wout); row order (kh, kw, ci)."""
    N, C, H, W = x.shape
    Hout = (H - KH) // S + 1
    Wout = (W - KW) // S + 1
    x = x.astype(jnp.bfloat16)
    cols = []
    for kh in range(KH):
        for kw in range(KW):
            cols.append(lax.slice(
                x, (0, 0, kh, kw),
                (N, C, kh + S * (Hout - 1) + 1, kw + S * (Wout - 1) + 1),
                (1, 1, S, S)))
    p = jnp.stack(cols, axis=1).reshape(N, KH * KW * C, Hout * Wout)
    return p, Hout, Wout


def _weight_matrix(w):
    """(Cout,Cin,KH,KW) -> bf16 (Cout, KH*KW*Cin), matching _im2col row order."""
    cout = w.shape[0]
    return jnp.transpose(w, (0, 2, 3, 1)).reshape(cout, -1).astype(jnp.bfloat16)


def _gather_mats(Hin, Win, KH, KW, S):
    """0/1 matrices G[tap, m_in, m_out] with
    (A @ G[tap])[c, i*Wout+j] = A2d[c, S*i+kh, S*j+kw],  tap = kh*KW+kw."""
    Hout = (Hin - KH) // S + 1
    Wout = (Win - KW) // S + 1
    g = np.zeros((KH * KW, Hin * Win, Hout * Wout), np.float32)
    oi = np.arange(Hout)
    oj = np.arange(Wout)
    cols = np.arange(Hout * Wout)
    for kh in range(KH):
        for kw in range(KW):
            rows = ((S * oi[:, None] + kh) * Win
                    + (S * oj[None, :] + kw)).reshape(-1)
            g[kh * KW + kw, rows, cols] = 1.0
    return jnp.asarray(g, dtype=jnp.bfloat16), Hout, Wout


# --------------------------------------------------------------------------
# Layer wrappers
# --------------------------------------------------------------------------
def conv_layer_pallas(x, w, b, *, stride, slope, tm=2048):
    """Conv2d(valid) + LeakyReLU as lane-tiled MXU matmuls (bf16 in/out)."""
    N = x.shape[0]
    Cout, _, KH, KW = w.shape
    p, Hout, Wout = _im2col(x, KH, KW, stride)               # bf16 patches
    K, M = p.shape[1], p.shape[2]

    TM = min(tm, _round_up(M, 128))                          # 128-aligned tile
    Mp = _round_up(M, TM)
    if Mp != M:
        p = jnp.pad(p, ((0, 0), (0, 0), (0, Mp - M)))        # lane-dense pad
    wmat = _weight_matrix(w)
    bcol = b.reshape(Cout, 1).astype(jnp.float32)

    out = pl.pallas_call(
        functools.partial(_conv_mm_kernel, slope=slope),
        out_shape=jax.ShapeDtypeStruct((N, Cout, Mp), jnp.bfloat16),
        grid=(N, Mp // TM),
        in_specs=[
            pl.BlockSpec((1, K, TM), lambda n, m: (n, 0, m)),
            pl.BlockSpec((Cout, K), lambda n, m: (0, 0)),
            pl.BlockSpec((Cout, 1), lambda n, m: (0, 0)),
        ],
        out_specs=pl.BlockSpec((1, Cout, TM), lambda n, m: (n, 0, m)),
        compiler_params=pltpu.CompilerParams(
            dimension_semantics=("parallel", "parallel")),
    )(p, wmat, bcol)
    return out[:, :, :M].reshape(N, Cout, Hout, Wout)


def tail_pallas(x, tail_params, *, slope=0.1):
    """Fused layers 4..8.  tail_params = [(w, b, stride, act)] * 5."""
    N = x.shape[0]
    (w4, b4, s4, _), (w5, b5, s5, _), (w6, b6, s6, _), (w7, b7, s7, _), \
        (w8, b8, _, _) = tail_params

    p4, H4, W4 = _im2col(x, 3, 3, s4)                        # (N, 144, 225) bf16
    K4, M4 = p4.shape[1], p4.shape[2]
    w4m = _weight_matrix(w4)
    b4c = b4.reshape(-1, 1).astype(jnp.float32)

    g5, H5, W5 = _gather_mats(H4, W4, 3, 3, s5)
    g6, H6, W6 = _gather_mats(H5, W5, 3, 3, s6)
    g7, H7, W7 = _gather_mats(H6, W6, 3, 3, s7)
    assert (H7, W7) == (1, 1)
    w5m, b5c = _weight_matrix(w5), b5.reshape(-1, 1).astype(jnp.float32)
    w6m, b6c = _weight_matrix(w6), b6.reshape(-1, 1).astype(jnp.float32)
    w7m, b7c = _weight_matrix(w7), b7.reshape(-1, 1).astype(jnp.float32)
    cout8 = w8.shape[0]
    cin = w5.shape[1]
    w8m = w8.reshape(cout8, w8.shape[1]).astype(jnp.bfloat16)   # 1x1 conv
    b8c = b8.reshape(-1, 1).astype(jnp.float32)

    def _full(a):
        nd = a.ndim
        return pl.BlockSpec(a.shape, lambda n, _nd=nd: (0,) * _nd)

    out = pl.pallas_call(
        functools.partial(_tail_kernel, slope=slope),
        out_shape=jax.ShapeDtypeStruct((N, cout8, 1), jnp.float32),
        grid=(N,),
        in_specs=[
            pl.BlockSpec((1, K4, M4), lambda n: (n, 0, 0)),
            _full(w4m), _full(b4c),
            _full(g5), _full(w5m), _full(b5c),
            _full(g6), _full(w6m), _full(b6c),
            _full(g7), _full(w7m), _full(b7c),
            _full(w8m), _full(b8c),
        ],
        out_specs=pl.BlockSpec((1, cout8, 1), lambda n: (n, 0, 0)),
        scratch_shapes=[
            pltpu.VMEM((9 * cin, H5 * W5), jnp.bfloat16),
            pltpu.VMEM((9 * cin, H6 * W6), jnp.bfloat16),
            pltpu.VMEM((9 * cin, H7 * W7), jnp.bfloat16),
        ],
        compiler_params=pltpu.CompilerParams(
            dimension_semantics=("parallel",)),
    )(p4, w4m, b4c, g5, w5m, b5c, g6, w6m, b6c, g7, w7m, b7c, w8m, b8c)
    return out.reshape(N, cout8, 1, 1)


# --------------------------------------------------------------------------
# Network definition (deterministic synthetic params; no checkpoint loading)
# --------------------------------------------------------------------------
def init_params(key, input_nc, dim, output_nc):
    layer_cfg = [
        (input_nc, dim, 3, 2, True),
        (dim, dim, 3, 2, True),
        (dim, dim, 3, 2, True),
        (dim, dim, 3, 2, True),
        (dim, dim, 3, 2, True),
        (dim, dim, 3, 2, True),
        (dim, dim, 3, 1, True),
        (dim, output_nc, 1, 1, False),
    ]
    params = []
    for i, (cin, cout, k, s, act) in enumerate(layer_cfg):
        kw_key, kb_key = jax.random.split(jax.random.fold_in(key, i))
        bound = (1.0 / (cin * k * k)) ** 0.5
        w = jax.random.uniform(kw_key, (cout, cin, k, k), jnp.float32,
                               -bound, bound)
        b = jax.random.uniform(kb_key, (cout,), jnp.float32, -bound, bound)
        params.append((w, b, s, act))
    return params


def network_forward(x, params):
    out = x
    for w, b, s, act in params[:3]:                 # big layers 1-3
        out = conv_layer_pallas(out, w, b, stride=s, slope=0.1 if act else None)
    return tail_pallas(out, params[3:], slope=0.1)  # fused layers 4-8


def network_ref(x, params):
    """Pure-JAX f32 reference (XLA conv) for the correctness check."""
    out = x
    for w, b, s, act in params:
        out = lax.conv_general_dilated(
            out, w, (s, s), 'VALID',
            dimension_numbers=('NCHW', 'OIHW', 'NCHW'),
            precision=lax.Precision.HIGHEST)
        out = out + b[None, :, None, None]
        if act:
            out = jnp.where(out >= 0, out, 0.1 * out)
    return out


if __name__ == "__main__":
    key = jax.random.PRNGKey(0)
    input_nc, dim, output_nc = 4, 16, 8
    params = init_params(key, input_nc, dim, output_nc)

    # 6 stride-2 valid convs (k=3) followed by a k=3/s=1 conv need an input
    # spatial extent of at least 255; use 256 (the smallest that works).
    x = jax.random.normal(jax.random.fold_in(key, 100),
                          (2, input_nc, 256, 256), jnp.float32)

    @jax.jit
    def run(inp):
        return network_forward(inp, params)

    out = jax.block_until_ready(run(x))
    assert out.shape == (2, output_nc, 1, 1), out.shape

    ref = jax.block_until_ready(network_ref(x, params))
    err = float(jnp.max(jnp.abs(out - ref)))
    scale = float(jnp.max(jnp.abs(ref)))
    # bf16 activations/weights through 8 layers: allow 5% of output scale.
    assert err <= 0.05 * scale + 1e-5, (err, scale)
    print("KERNEL_OK")
</pallas_src>

<mosaic_0001>
module attributes {stable_mosaic.version = 11 : i64} {
  func.func @_conv_mm_kernel(%arg0: i32, %arg1: i32, %arg2: memref<1x36x2048xbf16, #tpu.memory_space<vmem>>, %arg3: memref<16x36xbf16, #tpu.memory_space<vmem>>, %arg4: memref<16x1xf32, #tpu.memory_space<vmem>>, %arg5: memref<1x16x2048xbf16, #tpu.memory_space<vmem>>) attributes {dimension_semantics = [#tpu.dimension_semantics<parallel>, #tpu.dimension_semantics<parallel>], iteration_bounds = array<i64: 2, 8>, scalar_prefetch = 0 : i64, scratch_operands = 0 : i64, tpu.core_type = #tpu.core_type<tc>, window_params = [{transform_indices = @transform_0, window_bounds = array<i64: 1, 36, 2048>}, {pipeline_mode = #tpu.pipeline_mode<synchronous>, transform_indices = @transform_1, window_bounds = array<i64: 16, 36>}, {pipeline_mode = #tpu.pipeline_mode<synchronous>, transform_indices = @transform_2, window_bounds = array<i64: 16, 1>}, {transform_indices = @transform_3, window_bounds = array<i64: 1, 16, 2048>}]} {
    %c0 = arith.constant 0 : index
    %c0_0 = arith.constant 0 : index
    %0 = vector.load %arg3[%c0, %c0_0] : memref<16x36xbf16, #tpu.memory_space<vmem>>, vector<16x36xbf16>
    %c0_1 = arith.constant 0 : index
    %c0_2 = arith.constant 0 : index
    %c0_3 = arith.constant 0 : index
    %1 = vector.load %arg2[%c0_1, %c0_2, %c0_3] : memref<1x36x2048xbf16, #tpu.memory_space<vmem>>, vector<1x36x2048xbf16>
    %2 = vector.shape_cast %1 : vector<1x36x2048xbf16> to vector<36x2048xbf16>
    %cst = arith.constant dense<0.000000e+00> : vector<16x2048xf32>
    %3 = tpu.matmul %0, %2, %cst {dimension_numbers = #tpu.dot_dimension_numbers<[1], [0], [0], [1], [0, 0, 1, 1], [], []>} : vector<16x36xbf16>, vector<36x2048xbf16>, vector<16x2048xf32> -> vector<16x2048xf32>
    %c0_4 = arith.constant 0 : index
    %c0_5 = arith.constant 0 : index
    %4 = vector.load %arg4[%c0_4, %c0_5] : memref<16x1xf32, #tpu.memory_space<vmem>>, vector<16x1xf32>
    %5 = vector.broadcast %4 : vector<16x1xf32> to vector<16x2048xf32>
    %6 = arith.addf %3, %5 : vector<16x2048xf32>
    %cst_6 = arith.constant 0.000000e+00 : f32
    %7 = vector.broadcast %cst_6 : f32 to vector<16x2048xf32>
    %8 = arith.cmpf oge, %6, %7 : vector<16x2048xf32>
    %cst_7 = arith.constant 1.000000e-01 : f32
    %9 = vector.broadcast %cst_7 : f32 to vector<16x2048xf32>
    %10 = arith.mulf %6, %9 : vector<16x2048xf32>
    %11 = arith.select %8, %6, %10 : vector<16x2048xi1>, vector<16x2048xf32>
    %12 = arith.truncf %11 : vector<16x2048xf32> to vector<16x2048xbf16>
    %c0_8 = arith.constant 0 : index
    %c0_9 = arith.constant 0 : index
    %c0_10 = arith.constant 0 : index
    %13 = vector.load %arg5[%c0_8, %c0_9, %c0_10] : memref<1x16x2048xbf16, #tpu.memory_space<vmem>>, vector<1x16x2048xbf16>
    %14 = vector.shape_cast %13 : vector<1x16x2048xbf16> to vector<16x2048xbf16>
    %15 = vector.shape_cast %12 : vector<16x2048xbf16> to vector<1x16x2048xbf16>
    tpu.vector_store %arg5[%c0_8, %c0_9, %c0_10], %15 {strides = array<i32>} : memref<1x16x2048xbf16, #tpu.memory_space<vmem>>, vector<1x16x2048xbf16>,
    return
  }
  func.func @transform_0(%arg0: i32, %arg1: i32) -> (i32, i32, i32) {
    %c0_i32 = arith.constant 0 : i32
    %c0_i32_0 = arith.constant 0 : i32
    return %arg0, %c0_i32, %arg1 : i32, i32, i32
  }
  func.func @transform_1(%arg0: i32, %arg1: i32) -> (i32, i32) {
    %c0_i32 = arith.constant 0 : i32
    %c0_i32_0 = arith.constant 0 : i32
    %c0_i32_1 = arith.constant 0 : i32
    return %c0_i32, %c0_i32_0 : i32, i32
  }
  func.func @transform_2(%arg0: i32, %arg1: i32) -> (i32, i32) {
    %c0_i32 = arith.constant 0 : i32
    %c0_i32_0 = arith.constant 0 : i32
    %c0_i32_1 = arith.constant 0 : i32
    return %c0_i32, %c0_i32_0 : i32, i32
  }
  func.func @transform_3(%arg0: i32, %arg1: i32) -> (i32, i32, i32) {
    %c0_i32 = arith.constant 0 : i32
    %c0_i32_0 = arith.constant 0 : i32
    return %arg0, %c0_i32, %arg1 : i32, i32, i32
  }
}

module attributes {stable_mosaic.version = 11 : i64} {
  func.func @_conv_mm_kernel(%arg0: i32, %arg1: i32, %arg2: memref<1x144x2048xbf16, #tpu.memory_space<vmem>>, %arg3: memref<16x144xbf16, #tpu.memory_space<vmem>>, %arg4: memref<16x1xf32, #tpu.memory_space<vmem>>, %arg5: memref<1x16x2048xbf16, #tpu.memory_space<vmem>>) attributes {dimension_semantics = [#tpu.dimension_semantics<parallel>, #tpu.dimension_semantics<parallel>], iteration_bounds = array<i64: 2, 2>, scalar_prefetch = 0 : i64, scratch_operands = 0 : i64, tpu.core_type = #tpu.core_type<tc>, window_params = [{transform_indices = @transform_0, window_bounds = array<i64: 1, 144, 2048>}, {pipeline_mode = #tpu.pipeline_mode<synchronous>, transform_indices = @transform_1, window_bounds = array<i64: 16, 144>}, {pipeline_mode = #tpu.pipeline_mode<synchronous>, transform_indices = @transform_2, window_bounds = array<i64: 16, 1>}, {transform_indices = @transform_3, window_bounds = array<i64: 1, 16, 2048>}]} {
    %c0 = arith.constant 0 : index
    %c0_0 = arith.constant 0 : index
    %0 = vector.load %arg3[%c0, %c0_0] : memref<16x144xbf16, #tpu.memory_space<vmem>>, vector<16x144xbf16>
    %c0_1 = arith.constant 0 : index
    %c0_2 = arith.constant 0 : index
    %c0_3 = arith.constant 0 : index
    %1 = vector.load %arg2[%c0_1, %c0_2, %c0_3] : memref<1x144x2048xbf16, #tpu.memory_space<vmem>>, vector<1x144x2048xbf16>
    %2 = vector.shape_cast %1 : vector<1x144x2048xbf16> to vector<144x2048xbf16>
    %cst = arith.constant dense<0.000000e+00> : vector<16x2048xf32>
    %3 = tpu.matmul %0, %2, %cst {dimension_numbers = #tpu.dot_dimension_numbers<[1], [0], [0], [1], [0, 0, 1, 1], [], []>} : vector<16x144xbf16>, vector<144x2048xbf16>, vector<16x2048xf32> -> vector<16x2048xf32>
    %c0_4 = arith.constant 0 : index
    %c0_5 = arith.constant 0 : index
    %4 = vector.load %arg4[%c0_4, %c0_5] : memref<16x1xf32, #tpu.memory_space<vmem>>, vector<16x1xf32>
    %5 = vector.broadcast %4 : vector<16x1xf32> to vector<16x2048xf32>
    %6 = arith.addf %3, %5 : vector<16x2048xf32>
    %cst_6 = arith.constant 0.000000e+00 : f32
    %7 = vector.broadcast %cst_6 : f32 to vector<16x2048xf32>
    %8 = arith.cmpf oge, %6, %7 : vector<16x2048xf32>
    %cst_7 = arith.constant 1.000000e-01 : f32
    %9 = vector.broadcast %cst_7 : f32 to vector<16x2048xf32>
    %10 = arith.mulf %6, %9 : vector<16x2048xf32>
    %11 = arith.select %8, %6, %10 : vector<16x2048xi1>, vector<16x2048xf32>
    %12 = arith.truncf %11 : vector<16x2048xf32> to vector<16x2048xbf16>
    %c0_8 = arith.constant 0 : index
    %c0_9 = arith.constant 0 : index
    %c0_10 = arith.constant 0 : index
    %13 = vector.load %arg5[%c0_8, %c0_9, %c0_10] : memref<1x16x2048xbf16, #tpu.memory_space<vmem>>, vector<1x16x2048xbf16>
    %14 = vector.shape_cast %13 : vector<1x16x2048xbf16> to vector<16x2048xbf16>
    %15 = vector.shape_cast %12 : vector<16x2048xbf16> to vector<1x16x2048xbf16>
    tpu.vector_store %arg5[%c0_8, %c0_9, %c0_10], %15 {strides = array<i32>} : memref<1x16x2048xbf16, #tpu.memory_space<vmem>>, vector<1x16x2048xbf16>,
    return
  }
  func.func @transform_0(%arg0: i32, %arg1: i32) -> (i32, i32, i32) {
    %c0_i32 = arith.constant 0 : i32
    %c0_i32_0 = arith.constant 0 : i32
    return %arg0, %c0_i32, %arg1 : i32, i32, i32
  }
  func.func @transform_1(%arg0: i32, %arg1: i32) -> (i32, i32) {
    %c0_i32 = arith.constant 0 : i32
    %c0_i32_0 = arith.constant 0 : i32
    %c0_i32_1 = arith.constant 0 : i32
    return %c0_i32, %c0_i32_0 : i32, i32
  }
  func.func @transform_2(%arg0: i32, %arg1: i32) -> (i32, i32) {
    %c0_i32 = arith.constant 0 : i32
    %c0_i32_0 = arith.constant 0 : i32
    %c0_i32_1 = arith.constant 0 : i32
    return %c0_i32, %c0_i32_0 : i32, i32
  }
  func.func @transform_3(%arg0: i32, %arg1: i32) -> (i32, i32, i32) {
    %c0_i32 = arith.constant 0 : i32
    %c0_i32_0 = arith.constant 0 : i32
    return %arg0, %c0_i32, %arg1 : i32, i32, i32
  }
}

module attributes {stable_mosaic.version = 11 : i64} {
  func.func @_conv_mm_kernel(%arg0: i32, %arg1: i32, %arg2: memref<1x144x1024xbf16, #tpu.memory_space<vmem>>, %arg3: memref<16x144xbf16, #tpu.memory_space<vmem>>, %arg4: memref<16x1xf32, #tpu.memory_space<vmem>>, %arg5: memref<1x16x1024xbf16, #tpu.memory_space<vmem>>) attributes {dimension_semantics = [#tpu.dimension_semantics<parallel>, #tpu.dimension_semantics<parallel>], iteration_bounds = array<i64: 2, 1>, scalar_prefetch = 0 : i64, scratch_operands = 0 : i64, tpu.core_type = #tpu.core_type<tc>, window_params = [{transform_indices = @transform_0, window_bounds = array<i64: 1, 144, 1024>}, {pipeline_mode = #tpu.pipeline_mode<synchronous>, transform_indices = @transform_1, window_bounds = array<i64: 16, 144>}, {pipeline_mode = #tpu.pipeline_mode<synchronous>, transform_indices = @transform_2, window_bounds = array<i64: 16, 1>}, {transform_indices = @transform_3, window_bounds = array<i64: 1, 16, 1024>}]} {
    %c0 = arith.constant 0 : index
    %c0_0 = arith.constant 0 : index
    %0 = vector.load %arg3[%c0, %c0_0] : memref<16x144xbf16, #tpu.memory_space<vmem>>, vector<16x144xbf16>
    %c0_1 = arith.constant 0 : index
    %c0_2 = arith.constant 0 : index
    %c0_3 = arith.constant 0 : index
    %1 = vector.load %arg2[%c0_1, %c0_2, %c0_3] : memref<1x144x1024xbf16, #tpu.memory_space<vmem>>, vector<1x144x1024xbf16>
    %2 = vector.shape_cast %1 : vector<1x144x1024xbf16> to vector<144x1024xbf16>
    %cst = arith.constant dense<0.000000e+00> : vector<16x1024xf32>
    %3 = tpu.matmul %0, %2, %cst {dimension_numbers = #tpu.dot_dimension_numbers<[1], [0], [0], [1], [0, 0, 1, 1], [], []>} : vector<16x144xbf16>, vector<144x1024xbf16>, vector<16x1024xf32> -> vector<16x1024xf32>
    %c0_4 = arith.constant 0 : index
    %c0_5 = arith.constant 0 : index
    %4 = vector.load %arg4[%c0_4, %c0_5] : memref<16x1xf32, #tpu.memory_space<vmem>>, vector<16x1xf32>
    %5 = vector.broadcast %4 : vector<16x1xf32> to vector<16x1024xf32>
    %6 = arith.addf %3, %5 : vector<16x1024xf32>
    %cst_6 = arith.constant 0.000000e+00 : f32
    %7 = vector.broadcast %cst_6 : f32 to vector<16x1024xf32>
    %8 = arith.cmpf oge, %6, %7 : vector<16x1024xf32>
    %cst_7 = arith.constant 1.000000e-01 : f32
    %9 = vector.broadcast %cst_7 : f32 to vector<16x1024xf32>
    %10 = arith.mulf %6, %9 : vector<16x1024xf32>
    %11 = arith.select %8, %6, %10 : vector<16x1024xi1>, vector<16x1024xf32>
    %12 = arith.truncf %11 : vector<16x1024xf32> to vector<16x1024xbf16>
    %c0_8 = arith.constant 0 : index
    %c0_9 = arith.constant 0 : index
    %c0_10 = arith.constant 0 : index
    %13 = vector.load %arg5[%c0_8, %c0_9, %c0_10] : memref<1x16x1024xbf16, #tpu.memory_space<vmem>>, vector<1x16x1024xbf16>
    %14 = vector.shape_cast %13 : vector<1x16x1024xbf16> to vector<16x1024xbf16>
    %15 = vector.shape_cast %12 : vector<16x1024xbf16> to vector<1x16x1024xbf16>
    tpu.vector_store %arg5[%c0_8, %c0_9, %c0_10], %15 {strides = array<i32>} : memref<1x16x1024xbf16, #tpu.memory_space<vmem>>, vector<1x16x1024xbf16>,
    return
  }
  func.func @transform_0(%arg0: i32, %arg1: i32) -> (i32, i32, i32) {
    %c0_i32 = arith.constant 0 : i32
    %c0_i32_0 = arith.constant 0 : i32
    return %arg0, %c0_i32, %arg1 : i32, i32, i32
  }
  func.func @transform_1(%arg0: i32, %arg1: i32) -> (i32, i32) {
    %c0_i32 = arith.constant 0 : i32
    %c0_i32_0 = arith.constant 0 : i32
    %c0_i32_1 = arith.constant 0 : i32
    return %c0_i32, %c0_i32_0 : i32, i32
  }
  func.func @transform_2(%arg0: i32, %arg1: i32) -> (i32, i32) {
    %c0_i32 = arith.constant 0 : i32
    %c0_i32_0 = arith.constant 0 : i32
    %c0_i32_1 = arith.constant 0 : i32
    return %c0_i32, %c0_i32_0 : i32, i32
  }
  func.func @transform_3(%arg0: i32, %arg1: i32) -> (i32, i32, i32) {
    %c0_i32 = arith.constant 0 : i32
    %c0_i32_0 = arith.constant 0 : i32
    return %arg0, %c0_i32, %arg1 : i32, i32, i32
  }
}

module attributes {stable_mosaic.version = 11 : i64} {
  func.func @_tail_kernel(%arg0: i32, %arg1: memref<1x144x225xbf16, #tpu.memory_space<vmem>>, %arg2: memref<16x144xbf16, #tpu.memory_space<vmem>>, %arg3: memref<16x1xf32, #tpu.memory_space<vmem>>, %arg4: memref<9x225x49xbf16, #tpu.memory_space<vmem>>, %arg5: memref<16x144xbf16, #tpu.memory_space<vmem>>, %arg6: memref<16x1xf32, #tpu.memory_space<vmem>>, %arg7: memref<9x49x9xbf16, #tpu.memory_space<vmem>>, %arg8: memref<16x144xbf16, #tpu.memory_space<vmem>>, %arg9: memref<16x1xf32, #tpu.memory_space<vmem>>, %arg10: memref<9x9x1xbf16, #tpu.memory_space<vmem>>, %arg11: memref<16x144xbf16, #tpu.memory_space<vmem>>, %arg12: memref<16x1xf32, #tpu.memory_space<vmem>>, %arg13: memref<8x16xbf16, #tpu.memory_space<vmem>>, %arg14: memref<8x1xf32, #tpu.memory_space<vmem>>, %arg15: memref<1x8x1xf32, #tpu.memory_space<vmem>>, %arg16: memref<144x49xbf16, #tpu.memory_space<vmem>>, %arg17: memref<144x9xbf16, #tpu.memory_space<vmem>>, %arg18: memref<144x1xbf16, #tpu.memory_space<vmem>>) attributes {dimension_semantics = [#tpu.dimension_semantics<parallel>], iteration_bounds = array<i64: 2>, scalar_prefetch = 0 : i64, scratch_operands = 3 : i64, tpu.core_type = #tpu.core_type<tc>, window_params = [{transform_indices = @transform_0, window_bounds = array<i64: 1, 144, 225>}, {pipeline_mode = #tpu.pipeline_mode<synchronous>, transform_indices = @transform_1, window_bounds = array<i64: 16, 144>}, {pipeline_mode = #tpu.pipeline_mode<synchronous>, transform_indices = @transform_2, window_bounds = array<i64: 16, 1>}, {pipeline_mode = #tpu.pipeline_mode<synchronous>, transform_indices = @transform_3, window_bounds = array<i64: 9, 225, 49>}, {pipeline_mode = #tpu.pipeline_mode<synchronous>, transform_indices = @transform_4, window_bounds = array<i64: 16, 144>}, {pipeline_mode = #tpu.pipeline_mode<synchronous>, transform_indices = @transform_5, window_bounds = array<i64: 16, 1>}, {pipeline_mode = #tpu.pipeline_mode<synchronous>, transform_indices = @transform_6, window_bounds = array<i64: 9, 49, 9>}, {pipeline_mode = #tpu.pipeline_mode<synchronous>, transform_indices = @transform_7, window_bounds = array<i64: 16, 144>}, {pipeline_mode = #tpu.pipeline_mode<synchronous>, transform_indices = @transform_8, window_bounds = array<i64: 16, 1>}, {pipeline_mode = #tpu.pipeline_mode<synchronous>, transform_indices = @transform_9, window_bounds = array<i64: 9, 9, 1>}, {pipeline_mode = #tpu.pipeline_mode<synchronous>, transform_indices = @transform_10, window_bounds = array<i64: 16, 144>}, {pipeline_mode = #tpu.pipeline_mode<synchronous>, transform_indices = @transform_11, window_bounds = array<i64: 16, 1>}, {pipeline_mode = #tpu.pipeline_mode<synchronous>, transform_indices = @transform_12, window_bounds = array<i64: 8, 16>}, {pipeline_mode = #tpu.pipeline_mode<synchronous>, transform_indices = @transform_13, window_bounds = array<i64: 8, 1>}, {transform_indices = @transform_14, window_bounds = array<i64: 1, 8, 1>}]} {
    %c0 = arith.constant 0 : index
    %c0_0 = arith.constant 0 : index
    %0 = vector.load %arg2[%c0, %c0_0] : memref<16x144xbf16, #tpu.memory_space<vmem>>, vector<16x144xbf16>
    %c0_1 = arith.constant 0 : index
    %c0_2 = arith.constant 0 : index
    %c0_3 = arith.constant 0 : index
    %1 = vector.load %arg1[%c0_1, %c0_2, %c0_3] : memref<1x144x225xbf16, #tpu.memory_space<vmem>>, vector<1x144x225xbf16>
    %2 = vector.shape_cast %1 : vector<1x144x225xbf16> to vector<144x225xbf16>
    %cst = arith.constant dense<0.000000e+00> : vector<16x225xf32>
    %3 = tpu.matmul %0, %2, %cst {dimension_numbers = #tpu.dot_dimension_numbers<[1], [0], [0], [1], [0, 0, 1, 1], [], []>} : vector<16x144xbf16>, vector<144x225xbf16>, vector<16x225xf32> -> vector<16x225xf32>
    %c0_4 = arith.constant 0 : index
    %c0_5 = arith.constant 0 : index
    %4 = vector.load %arg3[%c0_4, %c0_5] : memref<16x1xf32, #tpu.memory_space<vmem>>, vector<16x1xf32>
    %5 = vector.broadcast %4 : vector<16x1xf32> to vector<16x225xf32>
    %6 = arith.addf %3, %5 : vector<16x225xf32>
    %cst_6 = arith.constant 0.000000e+00 : f32
    %7 = vector.broadcast %cst_6 : f32 to vector<16x225xf32>
    %8 = arith.cmpf oge, %6, %7 : vector<16x225xf32>
    %cst_7 = arith.constant 1.000000e-01 : f32
    %9 = vector.broadcast %cst_7 : f32 to vector<16x225xf32>
    %10 = arith.mulf %6, %9 : vector<16x225xf32>
    %11 = arith.select %8, %6, %10 : vector<16x225xi1>, vector<16x225xf32>
    %12 = arith.truncf %11 : vector<16x225xf32> to vector<16x225xbf16>
    %c0_8 = arith.constant 0 : index
    %c0_9 = arith.constant 0 : index
    %c0_10 = arith.constant 0 : index
    %13 = vector.load %arg4[%c0_8, %c0_9, %c0_10] : memref<9x225x49xbf16, #tpu.memory_space<vmem>>, vector<1x225x49xbf16>
    %14 = vector.shape_cast %13 : vector<1x225x49xbf16> to vector<225x49xbf16>
    %cst_11 = arith.constant dense<0.000000e+00> : vector<16x49xf32>
    %15 = tpu.matmul %12, %14, %cst_11 {dimension_numbers = #tpu.dot_dimension_numbers<[1], [0], [0], [1], [0, 0, 1, 1], [], []>} : vector<16x225xbf16>, vector<225x49xbf16>, vector<16x49xf32> -> vector<16x49xf32>
    %16 = arith.truncf %15 : vector<16x49xf32> to vector<16x49xbf16>
    %c0_12 = arith.constant 0 : index
    %c0_13 = arith.constant 0 : index
    %17 = vector.load %arg16[%c0_12, %c0_13] : memref<144x49xbf16, #tpu.memory_space<vmem>>, vector<16x49xbf16>
    tpu.vector_store %arg16[%c0_12, %c0_13], %16 {strides = array<i32>} : memref<144x49xbf16, #tpu.memory_space<vmem>>, vector<16x49xbf16>,
    %c1 = arith.constant 1 : index
    %c0_14 = arith.constant 0 : index
    %c0_15 = arith.constant 0 : index
    %18 = vector.load %arg4[%c1, %c0_14, %c0_15] : memref<9x225x49xbf16, #tpu.memory_space<vmem>>, vector<1x225x49xbf16>
    %19 = vector.shape_cast %18 : vector<1x225x49xbf16> to vector<225x49xbf16>
    %cst_16 = arith.constant dense<0.000000e+00> : vector<16x49xf32>
    %20 = tpu.matmul %12, %19, %cst_16 {dimension_numbers = #tpu.dot_dimension_numbers<[1], [0], [0], [1], [0, 0, 1, 1], [], []>} : vector<16x225xbf16>, vector<225x49xbf16>, vector<16x49xf32> -> vector<16x49xf32>
    %21 = arith.truncf %20 : vector<16x49xf32> to vector<16x49xbf16>
    %c16 = arith.constant 16 : index
    %c0_17 = arith.constant 0 : index
    %22 = vector.load %arg16[%c16, %c0_17] : memref<144x49xbf16, #tpu.memory_space<vmem>>, vector<16x49xbf16>
    tpu.vector_store %arg16[%c16, %c0_17], %21 {strides = array<i32>} : memref<144x49xbf16, #tpu.memory_space<vmem>>, vector<16x49xbf16>,
    %c2 = arith.constant 2 : index
    %c0_18 = arith.constant 0 : index
    %c0_19 = arith.constant 0 : index
    %23 = vector.load %arg4[%c2, %c0_18, %c0_19] : memref<9x225x49xbf16, #tpu.memory_space<vmem>>, vector<1x225x49xbf16>
    %24 = vector.shape_cast %23 : vector<1x225x49xbf16> to vector<225x49xbf16>
    %cst_20 = arith.constant dense<0.000000e+00> : vector<16x49xf32>
    %25 = tpu.matmul %12, %24, %cst_20 {dimension_numbers = #tpu.dot_dimension_numbers<[1], [0], [0], [1], [0, 0, 1, 1], [], []>} : vector<16x225xbf16>, vector<225x49xbf16>, vector<16x49xf32> -> vector<16x49xf32>
    %26 = arith.truncf %25 : vector<16x49xf32> to vector<16x49xbf16>
    %c32 = arith.constant 32 : index
    %c0_21 = arith.constant 0 : index
    %27 = vector.load %arg16[%c32, %c0_21] : memref<144x49xbf16, #tpu.memory_space<vmem>>, vector<16x49xbf16>
    tpu.vector_store %arg16[%c32, %c0_21], %26 {strides = array<i32>} : memref<144x49xbf16, #tpu.memory_space<vmem>>, vector<16x49xbf16>,
    %c3 = arith.constant 3 : index
    %c0_22 = arith.constant 0 : index
    %c0_23 = arith.constant 0 : index
    %28 = vector.load %arg4[%c3, %c0_22, %c0_23] : memref<9x225x49xbf16, #tpu.memory_space<vmem>>, vector<1x225x49xbf16>
    %29 = vector.shape_cast %28 : vector<1x225x49xbf16> to vector<225x49xbf16>
    %cst_24 = arith.constant dense<0.000000e+00> : vector<16x49xf32>
    %30 = tpu.matmul %12, %29, %cst_24 {dimension_numbers = #tpu.dot_dimension_numbers<[1], [0], [0], [1], [0, 0, 1, 1], [], []>} : vector<16x225xbf16>, vector<225x49xbf16>, vector<16x49xf32> -> vector<16x49xf32>
    %31 = arith.truncf %30 : vector<16x49xf32> to vector<16x49xbf16>
    %c48 = arith.constant 48 : index
    %c0_25 = arith.constant 0 : index
    %32 = vector.load %arg16[%c48, %c0_25] : memref<144x49xbf16, #tpu.memory_space<vmem>>, vector<16x49xbf16>
    tpu.vector_store %arg16[%c48, %c0_25], %31 {strides = array<i32>} : memref<144x49xbf16, #tpu.memory_space<vmem>>, vector<16x49xbf16>,
    %c4 = arith.constant 4 : index
    %c0_26 = arith.constant 0 : index
    %c0_27 = arith.constant 0 : index
    %33 = vector.load %arg4[%c4, %c0_26, %c0_27] : memref<9x225x49xbf16, #tpu.memory_space<vmem>>, vector<1x225x49xbf16>
    %34 = vector.shape_cast %33 : vector<1x225x49xbf16> to vector<225x49xbf16>
    %cst_28 = arith.constant dense<0.000000e+00> : vector<16x49xf32>
    %35 = tpu.matmul %12, %34, %cst_28 {dimension_numbers = #tpu.dot_dimension_numbers<[1], [0], [0], [1], [0, 0, 1, 1], [], []>} : vector<16x225xbf16>, vector<225x49xbf16>, vector<16x49xf32> -> vector<16x49xf32>
    %36 = arith.truncf %35 : vector<16x49xf32> to vector<16x49xbf16>
    %c64 = arith.constant 64 : index
    %c0_29 = arith.constant 0 : index
    %37 = vector.load %arg16[%c64, %c0_29] : memref<144x49xbf16, #tpu.memory_space<vmem>>, vector<16x49xbf16>
    tpu.vector_store %arg16[%c64, %c0_29], %36 {strides = array<i32>} : memref<144x49xbf16, #tpu.memory_space<vmem>>, vector<16x49xbf16>,
    %c5 = arith.constant 5 : index
    %c0_30 = arith.constant 0 : index
    %c0_31 = arith.constant 0 : index
    %38 = vector.load %arg4[%c5, %c0_30, %c0_31] : memref<9x225x49xbf16, #tpu.memory_space<vmem>>, vector<1x225x49xbf16>
    %39 = vector.shape_cast %38 : vector<1x225x49xbf16> to vector<225x49xbf16>
    %cst_32 = arith.constant dense<0.000000e+00> : vector<16x49xf32>
    %40 = tpu.matmul %12, %39, %cst_32 {dimension_numbers = #tpu.dot_dimension_numbers<[1], [0], [0], [1], [0, 0, 1, 1], [], []>} : vector<16x225xbf16>, vector<225x49xbf16>, vector<16x49xf32> -> vector<16x49xf32>
    %41 = arith.truncf %40 : vector<16x49xf32> to vector<16x49xbf16>
    %c80 = arith.constant 80 : index
    %c0_33 = arith.constant 0 : index
    %42 = vector.load %arg16[%c80, %c0_33] : memref<144x49xbf16, #tpu.memory_space<vmem>>, vector<16x49xbf16>
    tpu.vector_store %arg16[%c80, %c0_33], %41 {strides = array<i32>} : memref<144x49xbf16, #tpu.memory_space<vmem>>, vector<16x49xbf16>,
    %c6 = arith.constant 6 : index
    %c0_34 = arith.constant 0 : index
    %c0_35 = arith.constant 0 : index
    %43 = vector.load %arg4[%c6, %c0_34, %c0_35] : memref<9x225x49xbf16, #tpu.memory_space<vmem>>, vector<1x225x49xbf16>
    %44 = vector.shape_cast %43 : vector<1x225x49xbf16> to vector<225x49xbf16>
    %cst_36 = arith.constant dense<0.000000e+00> : vector<16x49xf32>
    %45 = tpu.matmul %12, %44, %cst_36 {dimension_numbers = #tpu.dot_dimension_numbers<[1], [0], [0], [1], [0, 0, 1, 1], [], []>} : vector<16x225xbf16>, vector<225x49xbf16>, vector<16x49xf32> -> vector<16x49xf32>
    %46 = arith.truncf %45 : vector<16x49xf32> to vector<16x49xbf16>
    %c96 = arith.constant 96 : index
    %c0_37 = arith.constant 0 : index
    %47 = vector.load %arg16[%c96, %c0_37] : memref<144x49xbf16, #tpu.memory_space<vmem>>, vector<16x49xbf16>
    tpu.vector_store %arg16[%c96, %c0_37], %46 {strides = array<i32>} : memref<144x49xbf16, #tpu.memory_space<vmem>>, vector<16x49xbf16>,
    %c7 = arith.constant 7 : index
    %c0_38 = arith.constant 0 : index
    %c0_39 = arith.constant 0 : index
    %48 = vector.load %arg4[%c7, %c0_38, %c0_39] : memref<9x225x49xbf16, #tpu.memory_space<vmem>>, vector<1x225x49xbf16>
    %49 = vector.shape_cast %48 : vector<1x225x49xbf16> to vector<225x49xbf16>
    %cst_40 = arith.constant dense<0.000000e+00> : vector<16x49xf32>
    %50 = tpu.matmul %12, %49, %cst_40 {dimension_numbers = #tpu.dot_dimension_numbers<[1], [0], [0], [1], [0, 0, 1, 1], [], []>} : vector<16x225xbf16>, vector<225x49xbf16>, vector<16x49xf32> -> vector<16x49xf32>
    %51 = arith.truncf %50 : vector<16x49xf32> to vector<16x49xbf16>
    %c112 = arith.constant 112 : index
    %c0_41 = arith.constant 0 : index
    %52 = vector.load %arg16[%c112, %c0_41] : memref<144x49xbf16, #tpu.memory_space<vmem>>, vector<16x49xbf16>
    tpu.vector_store %arg16[%c112, %c0_41], %51 {strides = array<i32>} : memref<144x49xbf16, #tpu.memory_space<vmem>>, vector<16x49xbf16>,
    %c8 = arith.constant 8 : index
    %c0_42 = arith.constant 0 : index
    %c0_43 = arith.constant 0 : index
    %53 = vector.load %arg4[%c8, %c0_42, %c0_43] : memref<9x225x49xbf16, #tpu.memory_space<vmem>>, vector<1x225x49xbf16>
    %54 = vector.shape_cast %53 : vector<1x225x49xbf16> to vector<225x49xbf16>
    %cst_44 = arith.constant dense<0.000000e+00> : vector<16x49xf32>
    %55 = tpu.matmul %12, %54, %cst_44 {dimension_numbers = #tpu.dot_dimension_numbers<[1], [0], [0], [1], [0, 0, 1, 1], [], []>} : vector<16x225xbf16>, vector<225x49xbf16>, vector<16x49xf32> -> vector<16x49xf32>
    %56 = arith.truncf %55 : vector<16x49xf32> to vector<16x49xbf16>
    %c128 = arith.constant 128 : index
    %c0_45 = arith.constant 0 : index
    %57 = vector.load %arg16[%c128, %c0_45] : memref<144x49xbf16, #tpu.memory_space<vmem>>, vector<16x49xbf16>
    tpu.vector_store %arg16[%c128, %c0_45], %56 {strides = array<i32>} : memref<144x49xbf16, #tpu.memory_space<vmem>>, vector<16x49xbf16>,
    %c0_46 = arith.constant 0 : index
    %c0_47 = arith.constant 0 : index
    %58 = vector.load %arg5[%c0_46, %c0_47] : memref<16x144xbf16, #tpu.memory_space<vmem>>, vector<16x144xbf16>
    %c0_48 = arith.constant 0 : index
    %c0_49 = arith.constant 0 : index
    %59 = vector.load %arg16[%c0_48, %c0_49] : memref<144x49xbf16, #tpu.memory_space<vmem>>, vector<144x49xbf16>
    %cst_50 = arith.constant dense<0.000000e+00> : vector<16x49xf32>
    %60 = tpu.matmul %58, %59, %cst_50 {dimension_numbers = #tpu.dot_dimension_numbers<[1], [0], [0], [1], [0, 0, 1, 1], [], []>} : vector<16x144xbf16>, vector<144x49xbf16>, vector<16x49xf32> -> vector<16x49xf32>
    %c0_51 = arith.constant 0 : index
    %c0_52 = arith.constant 0 : index
    %61 = vector.load %arg6[%c0_51, %c0_52] : memref<16x1xf32, #tpu.memory_space<vmem>>, vector<16x1xf32>
    %62 = vector.broadcast %61 : vector<16x1xf32> to vector<16x49xf32>
    %63 = arith.addf %60, %62 : vector<16x49xf32>
    %cst_53 = arith.constant 0.000000e+00 : f32
    %64 = vector.broadcast %cst_53 : f32 to vector<16x49xf32>
    %65 = arith.cmpf oge, %63, %64 : vector<16x49xf32>
    %cst_54 = arith.constant 1.000000e-01 : f32
    %66 = vector.broadcast %cst_54 : f32 to vector<16x49xf32>
    %67 = arith.mulf %63, %66 : vector<16x49xf32>
    %68 = arith.select %65, %63, %67 : vector<16x49xi1>, vector<16x49xf32>
    %69 = arith.truncf %68 : vector<16x49xf32> to vector<16x49xbf16>
    %c0_55 = arith.constant 0 : index
    %c0_56 = arith.constant 0 : index
    %c0_57 = arith.constant 0 : index
    %70 = vector.load %arg7[%c0_55, %c0_56, %c0_57] : memref<9x49x9xbf16, #tpu.memory_space<vmem>>, vector<1x49x9xbf16>
    %71 = vector.shape_cast %70 : vector<1x49x9xbf16> to vector<49x9xbf16>
    %cst_58 = arith.constant dense<0.000000e+00> : vector<16x9xf32>
    %72 = tpu.matmul %69, %71, %cst_58 {dimension_numbers = #tpu.dot_dimension_numbers<[1], [0], [0], [1], [0, 0, 1, 1], [], []>} : vector<16x49xbf16>, vector<49x9xbf16>, vector<16x9xf32> -> vector<16x9xf32>
    %73 = arith.truncf %72 : vector<16x9xf32> to vector<16x9xbf16>
    %c0_59 = arith.constant 0 : index
    %c0_60 = arith.constant 0 : index
    %74 = vector.load %arg17[%c0_59, %c0_60] : memref<144x9xbf16, #tpu.memory_space<vmem>>, vector<16x9xbf16>
    tpu.vector_store %arg17[%c0_59, %c0_60], %73 {strides = array<i32>} : memref<144x9xbf16, #tpu.memory_space<vmem>>, vector<16x9xbf16>,
    %c1_61 = arith.constant 1 : index
    %c0_62 = arith.constant 0 : index
    %c0_63 = arith.constant 0 : index
    %75 = vector.load %arg7[%c1_61, %c0_62, %c0_63] : memref<9x49x9xbf16, #tpu.memory_space<vmem>>, vector<1x49x9xbf16>
    %76 = vector.shape_cast %75 : vector<1x49x9xbf16> to vector<49x9xbf16>
    %cst_64 = arith.constant dense<0.000000e+00> : vector<16x9xf32>
    %77 = tpu.matmul %69, %76, %cst_64 {dimension_numbers = #tpu.dot_dimension_numbers<[1], [0], [0], [1], [0, 0, 1, 1], [], []>} : vector<16x49xbf16>, vector<49x9xbf16>, vector<16x9xf32> -> vector<16x9xf32>
    %78 = arith.truncf %77 : vector<16x9xf32> to vector<16x9xbf16>
    %c16_65 = arith.constant 16 : index
    %c0_66 = arith.constant 0 : index
    %79 = vector.load %arg17[%c16_65, %c0_66] : memref<144x9xbf16, #tpu.memory_space<vmem>>, vector<16x9xbf16>
    tpu.vector_store %arg17[%c16_65, %c0_66], %78 {strides = array<i32>} : memref<144x9xbf16, #tpu.memory_space<vmem>>, vector<16x9xbf16>,
    %c2_67 = arith.constant 2 : index
    %c0_68 = arith.constant 0 : index
    %c0_69 = arith.constant 0 : index
    %80 = vector.load %arg7[%c2_67, %c0_68, %c0_69] : memref<9x49x9xbf16, #tpu.memory_space<vmem>>, vector<1x49x9xbf16>
    %81 = vector.shape_cast %80 : vector<1x49x9xbf16> to vector<49x9xbf16>
    %cst_70 = arith.constant dense<0.000000e+00> : vector<16x9xf32>
    %82 = tpu.matmul %69, %81, %cst_70 {dimension_numbers = #tpu.dot_dimension_numbers<[1], [0], [0], [1], [0, 0, 1, 1], [], []>} : vector<16x49xbf16>, vector<49x9xbf16>, vector<16x9xf32> -> vector<16x9xf32>
    %83 = arith.truncf %82 : vector<16x9xf32> to vector<16x9xbf16>
    %c32_71 = arith.constant 32 : index
    %c0_72 = arith.constant 0 : index
    %84 = vector.load %arg17[%c32_71, %c0_72] : memref<144x9xbf16, #tpu.memory_space<vmem>>, vector<16x9xbf16>
    tpu.vector_store %arg17[%c32_71, %c0_72], %83 {strides = array<i32>} : memref<144x9xbf16, #tpu.memory_space<vmem>>, vector<16x9xbf16>,
    %c3_73 = arith.constant 3 : index
    %c0_74 = arith.constant 0 : index
    %c0_75 = arith.constant 0 : index
    %85 = vector.load %arg7[%c3_73, %c0_74, %c0_75] : memref<9x49x9xbf16, #tpu.memory_space<vmem>>, vector<1x49x9xbf16>
    %86 = vector.shape_cast %85 : vector<1x49x9xbf16> to vector<49x9xbf16>
    %cst_76 = arith.constant dense<0.000000e+00> : vector<16x9xf32>
    %87 = tpu.matmul %69, %86, %cst_76 {dimension_numbers = #tpu.dot_dimension_numbers<[1], [0], [0], [1], [0, 0, 1, 1], [], []>} : vector<16x49xbf16>, vector<49x9xbf16>, vector<16x9xf32> -> vector<16x9xf32>
    %88 = arith.truncf %87 : vector<16x9xf32> to vector<16x9xbf16>
    %c48_77 = arith.constant 48 : index
    %c0_78 = arith.constant 0 : index
    %89 = vector.load %arg17[%c48_77, %c0_78] : memref<144x9xbf16, #tpu.memory_space<vmem>>, vector<16x9xbf16>
    tpu.vector_store %arg17[%c48_77, %c0_78], %88 {strides = array<i32>} : memref<144x9xbf16, #tpu.memory_space<vmem>>, vector<16x9xbf16>,
    %c4_79 = arith.constant 4 : index
    %c0_80 = arith.constant 0 : index
    %c0_81 = arith.constant 0 : index
    %90 = vector.load %arg7[%c4_79, %c0_80, %c0_81] : memref<9x49x9xbf16, #tpu.memory_space<vmem>>, vector<1x49x9xbf16>
    %91 = vector.shape_cast %90 : vector<1x49x9xbf16> to vector<49x9xbf16>
    %cst_82 = arith.constant dense<0.000000e+00> : vector<16x9xf32>
    %92 = tpu.matmul %69, %91, %cst_82 {dimension_numbers = #tpu.dot_dimension_numbers<[1], [0], [0], [1], [0, 0, 1, 1], [], []>} : vector<16x49xbf16>, vector<49x9xbf16>, vector<16x9xf32> -> vector<16x9xf32>
    %93 = arith.truncf %92 : vector<16x9xf32> to vector<16x9xbf16>
    %c64_83 = arith.constant 64 : index
    %c0_84 = arith.constant 0 : index
    %94 = vector.load %arg17[%c64_83, %c0_84] : memref<144x9xbf16, #tpu.memory_space<vmem>>, vector<16x9xbf16>
    tpu.vector_store %arg17[%c64_83, %c0_84], %93 {strides = array<i32>} : memref<144x9xbf16, #tpu.memory_space<vmem>>, vector<16x9xbf16>,
    %c5_85 = arith.constant 5 : index
    %c0_86 = arith.constant 0 : index
    %c0_87 = arith.constant 0 : index
    %95 = vector.load %arg7[%c5_85, %c0_86, %c0_87] : memref<9x49x9xbf16, #tpu.memory_space<vmem>>, vector<1x49x9xbf16>
    %96 = vector.shape_cast %95 : vector<1x49x9xbf16> to vector<49x9xbf16>
    %cst_88 = arith.constant dense<0.000000e+00> : vector<16x9xf32>
    %97 = tpu.matmul %69, %96, %cst_88 {dimension_numbers = #tpu.dot_dimension_numbers<[1], [0], [0], [1], [0, 0, 1, 1], [], []>} : vector<16x49xbf16>, vector<49x9xbf16>, vector<16x9xf32> -> vector<16x9xf32>
    %98 = arith.truncf %97 : vector<16x9xf32> to vector<16x9xbf16>
    %c80_89 = arith.constant 80 : index
    %c0_90 = arith.constant 0 : index
    %99 = vector.load %arg17[%c80_89, %c0_90] : memref<144x9xbf16, #tpu.memory_space<vmem>>, vector<16x9xbf16>
    tpu.vector_store %arg17[%c80_89, %c0_90], %98 {strides = array<i32>} : memref<144x9xbf16, #tpu.memory_space<vmem>>, vector<16x9xbf16>,
    %c6_91 = arith.constant 6 : index
    %c0_92 = arith.constant 0 : index
    %c0_93 = arith.constant 0 : index
    %100 = vector.load %arg7[%c6_91, %c0_92, %c0_93] : memref<9x49x9xbf16, #tpu.memory_space<vmem>>, vector<1x49x9xbf16>
    %101 = vector.shape_cast %100 : vector<1x49x9xbf16> to vector<49x9xbf16>
    %cst_94 = arith.constant dense<0.000000e+00> : vector<16x9xf32>
    %102 = tpu.matmul %69, %101, %cst_94 {dimension_numbers = #tpu.dot_dimension_numbers<[1], [0], [0], [1], [0, 0, 1, 1], [], []>} : vector<16x49xbf16>, vector<49x9xbf16>, vector<16x9xf32> -> vector<16x9xf32>
    %103 = arith.truncf %102 : vector<16x9xf32> to vector<16x9xbf16>
    %c96_95 = arith.constant 96 : index
    %c0_96 = arith.constant 0 : index
    %104 = vector.load %arg17[%c96_95, %c0_96] : memref<144x9xbf16, #tpu.memory_space<vmem>>, vector<16x9xbf16>
    tpu.vector_store %arg17[%c96_95, %c0_96], %103 {strides = array<i32>} : memref<144x9xbf16, #tpu.memory_space<vmem>>, vector<16x9xbf16>,
    %c7_97 = arith.constant 7 : index
    %c0_98 = arith.constant 0 : index
    %c0_99 = arith.constant 0 : index
    %105 = vector.load %arg7[%c7_97, %c0_98, %c0_99] : memref<9x49x9xbf16, #tpu.memory_space<vmem>>, vector<1x49x9xbf16>
    %106 = vector.shape_cast %105 : vector<1x49x9xbf16> to vector<49x9xbf16>
    %cst_100 = arith.constant dense<0.000000e+00> : vector<16x9xf32>
    %107 = tpu.matmul %69, %106, %cst_100 {dimension_numbers = #tpu.dot_dimension_numbers<[1], [0], [0], [1], [0, 0, 1, 1], [], []>} : vector<16x49xbf16>, vector<49x9xbf16>, vector<16x9xf32> -> vector<16x9xf32>
    %108 = arith.truncf %107 : vector<16x9xf32> to vector<16x9xbf16>
    %c112_101 = arith.constant 112 : index
    %c0_102 = arith.constant 0 : index
    %109 = vector.load %arg17[%c112_101, %c0_102] : memref<144x9xbf16, #tpu.memory_space<vmem>>, vector<16x9xbf16>
    tpu.vector_store %arg17[%c112_101, %c0_102], %108 {strides = array<i32>} : memref<144x9xbf16, #tpu.memory_space<vmem>>, vector<16x9xbf16>,
    %c8_103 = arith.constant 8 : index
    %c0_104 = arith.constant 0 : index
    %c0_105 = arith.constant 0 : index
    %110 = vector.load %arg7[%c8_103, %c0_104, %c0_105] : memref<9x49x9xbf16, #tpu.memory_space<vmem>>, vector<1x49x9xbf16>
    %111 = vector.shape_cast %110 : vector<1x49x9xbf16> to vector<49x9xbf16>
    %cst_106 = arith.constant dense<0.000000e+00> : vector<16x9xf32>
    %112 = tpu.matmul %69, %111, %cst_106 {dimension_numbers = #tpu.dot_dimension_numbers<[1], [0], [0], [1], [0, 0, 1, 1], [], []>} : vector<16x49xbf16>, vector<49x9xbf16>, vector<16x9xf32> -> vector<16x9xf32>
    %113 = arith.truncf %112 : vector<16x9xf32> to vector<16x9xbf16>
    %c128_107 = arith.constant 128 : index
    %c0_108 = arith.constant 0 : index
    %114 = vector.load %arg17[%c128_107, %c0_108] : memref<144x9xbf16, #tpu.memory_space<vmem>>, vector<16x9xbf16>
    tpu.vector_store %arg17[%c128_107, %c0_108], %113 {strides = array<i32>} : memref<144x9xbf16, #tpu.memory_space<vmem>>, vector<16x9xbf16>,
    %c0_109 = arith.constant 0 : index
    %c0_110 = arith.constant 0 : index
    %115 = vector.load %arg8[%c0_109, %c0_110] : memref<16x144xbf16, #tpu.memory_space<vmem>>, vector<16x144xbf16>
    %c0_111 = arith.constant 0 : index
    %c0_112 = arith.constant 0 : index
    %116 = vector.load %arg17[%c0_111, %c0_112] : memref<144x9xbf16, #tpu.memory_space<vmem>>, vector<144x9xbf16>
    %cst_113 = arith.constant dense<0.000000e+00> : vector<16x9xf32>
    %117 = tpu.matmul %115, %116, %cst_113 {dimension_numbers = #tpu.dot_dimension_numbers<[1], [0], [0], [1], [0, 0, 1, 1], [], []>} : vector<16x144xbf16>, vector<144x9xbf16>, vector<16x9xf32> -> vector<16x9xf32>
    %c0_114 = arith.constant 0 : index
    %c0_115 = arith.constant 0 : index
    %118 = vector.load %arg9[%c0_114, %c0_115] : memref<16x1xf32, #tpu.memory_space<vmem>>, vector<16x1xf32>
    %119 = vector.broadcast %118 : vector<16x1xf32> to vector<16x9xf32>
    %120 = arith.addf %117, %119 : vector<16x9xf32>
    %cst_116 = arith.constant 0.000000e+00 : f32
    %121 = vector.broadcast %cst_116 : f32 to vector<16x9xf32>
    %122 = arith.cmpf oge, %120, %121 : vector<16x9xf32>
    %cst_117 = arith.constant 1.000000e-01 : f32
    %123 = vector.broadcast %cst_117 : f32 to vector<16x9xf32>
    %124 = arith.mulf %120, %123 : vector<16x9xf32>
    %125 = arith.select %122, %120, %124 : vector<16x9xi1>, vector<16x9xf32>
    %126 = arith.truncf %125 : vector<16x9xf32> to vector<16x9xbf16>
    %c0_118 = arith.constant 0 : index
    %c0_119 = arith.constant 0 : index
    %c0_120 = arith.constant 0 : index
    %127 = vector.load %arg10[%c0_118, %c0_119, %c0_120] : memref<9x9x1xbf16, #tpu.memory_space<vmem>>, vector<1x9x1xbf16>
    %128 = vector.shape_cast %127 : vector<1x9x1xbf16> to vector<9x1xbf16>
    %cst_121 = arith.constant dense<0.000000e+00> : vector<16x1xf32>
    %129 = tpu.matmul %126, %128, %cst_121 {dimension_numbers = #tpu.dot_dimension_numbers<[1], [0], [0], [1], [0, 0, 1, 1], [], []>} : vector<16x9xbf16>, vector<9x1xbf16>, vector<16x1xf32> -> vector<16x1xf32>
    %130 = arith.truncf %129 : vector<16x1xf32> to vector<16x1xbf16>
    %c0_122 = arith.constant 0 : index
    %c0_123 = arith.constant 0 : index
    %131 = vector.load %arg18[%c0_122, %c0_123] : memref<144x1xbf16, #tpu.memory_space<vmem>>, vector<16x1xbf16>
    tpu.vector_store %arg18[%c0_122, %c0_123], %130 {strides = array<i32>} : memref<144x1xbf16, #tpu.memory_space<vmem>>, vector<16x1xbf16>,
    %c1_124 = arith.constant 1 : index
    %c0_125 = arith.constant 0 : index
    %c0_126 = arith.constant 0 : index
    %132 = vector.load %arg10[%c1_124, %c0_125, %c0_126] : memref<9x9x1xbf16, #tpu.memory_space<vmem>>, vector<1x9x1xbf16>
    %133 = vector.shape_cast %132 : vector<1x9x1xbf16> to vector<9x1xbf16>
    %cst_127 = arith.constant dense<0.000000e+00> : vector<16x1xf32>
    %134 = tpu.matmul %126, %133, %cst_127 {dimension_numbers = #tpu.dot_dimension_numbers<[1], [0], [0], [1], [0, 0, 1, 1], [], []>} : vector<16x9xbf16>, vector<9x1xbf16>, vector<16x1xf32> -> vector<16x1xf32>
    %135 = arith.truncf %134 : vector<16x1xf32> to vector<16x1xbf16>
    %c16_128 = arith.constant 16 : index
    %c0_129 = arith.constant 0 : index
    %136 = vector.load %arg18[%c16_128, %c0_129] : memref<144x1xbf16, #tpu.memory_space<vmem>>, vector<16x1xbf16>
    tpu.vector_store %arg18[%c16_128, %c0_129], %135 {strides = array<i32>} : memref<144x1xbf16, #tpu.memory_space<vmem>>, vector<16x1xbf16>,
    %c2_130 = arith.constant 2 : index
    %c0_131 = arith.constant 0 : index
    %c0_132 = arith.constant 0 : index
    %137 = vector.load %arg10[%c2_130, %c0_131, %c0_132] : memref<9x9x1xbf16, #tpu.memory_space<vmem>>, vector<1x9x1xbf16>
    %138 = vector.shape_cast %137 : vector<1x9x1xbf16> to vector<9x1xbf16>
    %cst_133 = arith.constant dense<0.000000e+00> : vector<16x1xf32>
    %139 = tpu.matmul %126, %138, %cst_133 {dimension_numbers = #tpu.dot_dimension_numbers<[1], [0], [0], [1], [0, 0, 1, 1], [], []>} : vector<16x9xbf16>, vector<9x1xbf16>, vector<16x1xf32> -> vector<16x1xf32>
    %140 = arith.truncf %139 : vector<16x1xf32> to vector<16x1xbf16>
    %c32_134 = arith.constant 32 : index
    %c0_135 = arith.constant 0 : index
    %141 = vector.load %arg18[%c32_134, %c0_135] : memref<144x1xbf16, #tpu.memory_space<vmem>>, vector<16x1xbf16>
    tpu.vector_store %arg18[%c32_134, %c0_135], %140 {strides = array<i32>} : memref<144x1xbf16, #tpu.memory_space<vmem>>, vector<16x1xbf16>,
    %c3_136 = arith.constant 3 : index
    %c0_137 = arith.constant 0 : index
    %c0_138 = arith.constant 0 : index
    %142 = vector.load %arg10[%c3_136, %c0_137, %c0_138] : memref<9x9x1xbf16, #tpu.memory_space<vmem>>, vector<1x9x1xbf16>
    %143 = vector.shape_cast %142 : vector<1x9x1xbf16> to vector<9x1xbf16>
    %cst_139 = arith.constant dense<0.000000e+00> : vector<16x1xf32>
    %144 = tpu.matmul %126, %143, %cst_139 {dimension_numbers = #tpu.dot_dimension_numbers<[1], [0], [0], [1], [0, 0, 1, 1], [], []>} : vector<16x9xbf16>, vector<9x1xbf16>, vector<16x1xf32> -> vector<16x1xf32>
    %145 = arith.truncf %144 : vector<16x1xf32> to vector<16x1xbf16>
    %c48_140 = arith.constant 48 : index
    %c0_141 = arith.constant 0 : index
    %146 = vector.load %arg18[%c48_140, %c0_141] : memref<144x1xbf16, #tpu.memory_space<vmem>>, vector<16x1xbf16>
    tpu.vector_store %arg18[%c48_140, %c0_141], %145 {strides = array<i32>} : memref<144x1xbf16, #tpu.memory_space<vmem>>, vector<16x1xbf16>,
    %c4_142 = arith.constant 4 : index
    %c0_143 = arith.constant 0 : index
    %c0_144 = arith.constant 0 : index
    %147 = vector.load %arg10[%c4_142, %c0_143, %c0_144] : memref<9x9x1xbf16, #tpu.memory_space<vmem>>, vector<1x9x1xbf16>
    %148 = vector.shape_cast %147 : vector<1x9x1xbf16> to vector<9x1xbf16>
    %cst_145 = arith.constant dense<0.000000e+00> : vector<16x1xf32>
    %149 = tpu.matmul %126, %148, %cst_145 {dimension_numbers = #tpu.dot_dimension_numbers<[1], [0], [0], [1], [0, 0, 1, 1], [], []>} : vector<16x9xbf16>, vector<9x1xbf16>, vector<16x1xf32> -> vector<16x1xf32>
    %150 = arith.truncf %149 : vector<16x1xf32> to vector<16x1xbf16>
    %c64_146 = arith.constant 64 : index
    %c0_147 = arith.constant 0 : index
    %151 = vector.load %arg18[%c64_146, %c0_147] : memref<144x1xbf16, #tpu.memory_space<vmem>>, vector<16x1xbf16>
    tpu.vector_store %arg18[%c64_146, %c0_147], %150 {strides = array<i32>} : memref<144x1xbf16, #tpu.memory_space<vmem>>, vector<16x1xbf16>,
    %c5_148 = arith.constant 5 : index
    %c0_149 = arith.constant 0 : index
    %c0_150 = arith.constant 0 : index
    %152 = vector.load %arg10[%c5_148, %c0_149, %c0_150] : memref<9x9x1xbf16, #tpu.memory_space<vmem>>, vector<1x9x1xbf16>
    %153 = vector.shape_cast %152 : vector<1x9x1xbf16> to vector<9x1xbf16>
    %cst_151 = arith.constant dense<0.000000e+00> : vector<16x1xf32>
    %154 = tpu.matmul %126, %153, %cst_151 {dimension_numbers = #tpu.dot_dimension_numbers<[1], [0], [0], [1], [0, 0, 1, 1], [], []>} : vector<16x9xbf16>, vector<9x1xbf16>, vector<16x1xf32> -> vector<16x1xf32>
    %155 = arith.truncf %154 : vector<16x1xf32> to vector<16x1xbf16>
    %c80_152 = arith.constant 80 : index
    %c0_153 = arith.constant 0 : index
    %156 = vector.load %arg18[%c80_152, %c0_153] : memref<144x1xbf16, #tpu.memory_space<vmem>>, vector<16x1xbf16>
    tpu.vector_store %arg18[%c80_152, %c0_153], %155 {strides = array<i32>} : memref<144x1xbf16, #tpu.memory_space<vmem>>, vector<16x1xbf16>,
    %c6_154 = arith.constant 6 : index
    %c0_155 = arith.constant 0 : index
    %c0_156 = arith.constant 0 : index
    %157 = vector.load %arg10[%c6_154, %c0_155, %c0_156] : memref<9x9x1xbf16, #tpu.memory_space<vmem>>, vector<1x9x1xbf16>
    %158 = vector.shape_cast %157 : vector<1x9x1xbf16> to vector<9x1xbf16>
    %cst_157 = arith.constant dense<0.000000e+00> : vector<16x1xf32>
    %159 = tpu.matmul %126, %158, %cst_157 {dimension_numbers = #tpu.dot_dimension_numbers<[1], [0], [0], [1], [0, 0, 1, 1], [], []>} : vector<16x9xbf16>, vector<9x1xbf16>, vector<16x1xf32> -> vector<16x1xf32>
    %160 = arith.truncf %159 : vector<16x1xf32> to vector<16x1xbf16>
    %c96_158 = arith.constant 96 : index
    %c0_159 = arith.constant 0 : index
    %161 = vector.load %arg18[%c96_158, %c0_159] : memref<144x1xbf16, #tpu.memory_space<vmem>>, vector<16x1xbf16>
    tpu.vector_store %arg18[%c96_158, %c0_159], %160 {strides = array<i32>} : memref<144x1xbf16, #tpu.memory_space<vmem>>, vector<16x1xbf16>,
    %c7_160 = arith.constant 7 : index
    %c0_161 = arith.constant 0 : index
    %c0_162 = arith.constant 0 : index
    %162 = vector.load %arg10[%c7_160, %c0_161, %c0_162] : memref<9x9x1xbf16, #tpu.memory_space<vmem>>, vector<1x9x1xbf16>
    %163 = vector.shape_cast %162 : vector<1x9x1xbf16> to vector<9x1xbf16>
    %cst_163 = arith.constant dense<0.000000e+00> : vector<16x1xf32>
    %164 = tpu.matmul %126, %163, %cst_163 {dimension_numbers = #tpu.dot_dimension_numbers<[1], [0], [0], [1], [0, 0, 1, 1], [], []>} : vector<16x9xbf16>, vector<9x1xbf16>, vector<16x1xf32> -> vector<16x1xf32>
    %165 = arith.truncf %164 : vector<16x1xf32> to vector<16x1xbf16>
    %c112_164 = arith.constant 112 : index
    %c0_165 = arith.constant 0 : index
    %166 = vector.load %arg18[%c112_164, %c0_165] : memref<144x1xbf16, #tpu.memory_space<vmem>>, vector<16x1xbf16>
    tpu.vector_store %arg18[%c112_164, %c0_165], %165 {strides = array<i32>} : memref<144x1xbf16, #tpu.memory_space<vmem>>, vector<16x1xbf16>,
    %c8_166 = arith.constant 8 : index
    %c0_167 = arith.constant 0 : index
    %c0_168 = arith.constant 0 : index
    %167 = vector.load %arg10[%c8_166, %c0_167, %c0_168] : memref<9x9x1xbf16, #tpu.memory_space<vmem>>, vector<1x9x1xbf16>
    %168 = vector.shape_cast %167 : vector<1x9x1xbf16> to vector<9x1xbf16>
    %cst_169 = arith.constant dense<0.000000e+00> : vector<16x1xf32>
    %169 = tpu.matmul %126, %168, %cst_169 {dimension_numbers = #tpu.dot_dimension_numbers<[1], [0], [0], [1], [0, 0, 1, 1], [], []>} : vector<16x9xbf16>, vector<9x1xbf16>, vector<16x1xf32> -> vector<16x1xf32>
    %170 = arith.truncf %169 : vector<16x1xf32> to vector<16x1xbf16>
    %c128_170 = arith.constant 128 : index
    %c0_171 = arith.constant 0 : index
    %171 = vector.load %arg18[%c128_170, %c0_171] : memref<144x1xbf16, #tpu.memory_space<vmem>>, vector<16x1xbf16>
    tpu.vector_store %arg18[%c128_170, %c0_171], %170 {strides = array<i32>} : memref<144x1xbf16, #tpu.memory_space<vmem>>, vector<16x1xbf16>,
    %c0_172 = arith.constant 0 : index
    %c0_173 = arith.constant 0 : index
    %172 = vector.load %arg11[%c0_172, %c0_173] : memref<16x144xbf16, #tpu.memory_space<vmem>>, vector<16x144xbf16>
    %c0_174 = arith.constant 0 : index
    %c0_175 = arith.constant 0 : index
    %173 = vector.load %arg18[%c0_174, %c0_175] : memref<144x1xbf16, #tpu.memory_space<vmem>>, vector<144x1xbf16>
    %cst_176 = arith.constant dense<0.000000e+00> : vector<16x1xf32>
    %174 = tpu.matmul %172, %173, %cst_176 {dimension_numbers = #tpu.dot_dimension_numbers<[1], [0], [0], [1], [0, 0, 1, 1], [], []>} : vector<16x144xbf16>, vector<144x1xbf16>, vector<16x1xf32> -> vector<16x1xf32>
    %c0_177 = arith.constant 0 : index
    %c0_178 = arith.constant 0 : index
    %175 = vector.load %arg12[%c0_177, %c0_178] : memref<16x1xf32, #tpu.memory_space<vmem>>, vector<16x1xf32>
    %176 = arith.addf %174, %175 : vector<16x1xf32>
    %cst_179 = arith.constant 0.000000e+00 : f32
    %177 = vector.broadcast %cst_179 : f32 to vector<16x1xf32>
    %178 = arith.cmpf oge, %176, %177 : vector<16x1xf32>
    %cst_180 = arith.constant 1.000000e-01 : f32
    %179 = vector.broadcast %cst_180 : f32 to vector<16x1xf32>
    %180 = arith.mulf %176, %179 : vector<16x1xf32>
    %181 = arith.select %178, %176, %180 : vector<16x1xi1>, vector<16x1xf32>
    %c0_181 = arith.constant 0 : index
    %c0_182 = arith.constant 0 : index
    %182 = vector.load %arg13[%c0_181, %c0_182] : memref<8x16xbf16, #tpu.memory_space<vmem>>, vector<8x16xbf16>
    %183 = arith.truncf %181 : vector<16x1xf32> to vector<16x1xbf16>
    %cst_183 = arith.constant dense<0.000000e+00> : vector<8x1xf32>
    %184 = tpu.matmul %182, %183, %cst_183 {dimension_numbers = #tpu.dot_dimension_numbers<[1], [0], [0], [1], [0, 0, 1, 1], [], []>} : vector<8x16xbf16>, vector<16x1xbf16>, vector<8x1xf32> -> vector<8x1xf32>
    %c0_184 = arith.constant 0 : index
    %c0_185 = arith.constant 0 : index
    %185 = vector.load %arg14[%c0_184, %c0_185] : memref<8x1xf32, #tpu.memory_space<vmem>>, vector<8x1xf32>
    %186 = arith.addf %184, %185 : vector<8x1xf32>
    %c0_186 = arith.constant 0 : index
    %c0_187 = arith.constant 0 : index
    %c0_188 = arith.constant 0 : index
    %187 = vector.load %arg15[%c0_186, %c0_187, %c0_188] : memref<1x8x1xf32, #tpu.memory_space<vmem>>, vector<1x8x1xf32>
    %188 = vector.shape_cast %187 : vector<1x8x1xf32> to vector<8x1xf32>
    %189 = vector.shape_cast %186 : vector<8x1xf32> to vector<1x8x1xf32>
    tpu.vector_store %arg15[%c0_186, %c0_187, %c0_188], %189 {strides = array<i32>} : memref<1x8x1xf32, #tpu.memory_space<vmem>>, vector<1x8x1xf32>,
    return
  }
  func.func @transform_0(%arg0: i32) -> (i32, i32, i32) {
    %c0_i32 = arith.constant 0 : i32
    %c0_i32_0 = arith.constant 0 : i32
    %c0_i32_1 = arith.constant 0 : i32
    return %arg0, %c0_i32, %c0_i32_0 : i32, i32, i32
  }
  func.func @transform_1(%arg0: i32) -> (i32, i32) {
    %c0_i32 = arith.constant 0 : i32
    %c0_i32_0 = arith.constant 0 : i32
    %c0_i32_1 = arith.constant 0 : i32
    return %c0_i32, %c0_i32_0 : i32, i32
  }
  func.func @transform_2(%arg0: i32) -> (i32, i32) {
    %c0_i32 = arith.constant 0 : i32
    %c0_i32_0 = arith.constant 0 : i32
    %c0_i32_1 = arith.constant 0 : i32
    return %c0_i32, %c0_i32_0 : i32, i32
  }
  func.func @transform_3(%arg0: i32) -> (i32, i32, i32) {
    %c0_i32 = arith.constant 0 : i32
    %c0_i32_0 = arith.constant 0 : i32
    %c0_i32_1 = arith.constant 0 : i32
    %c0_i32_2 = arith.constant 0 : i32
    return %c0_i32, %c0_i32_0, %c0_i32_1 : i32, i32, i32
  }
  func.func @transform_4(%arg0: i32) -> (i32, i32) {
    %c0_i32 = arith.constant 0 : i32
    %c0_i32_0 = arith.constant 0 : i32
    %c0_i32_1 = arith.constant 0 : i32
    return %c0_i32, %c0_i32_0 : i32, i32
  }
  func.func @transform_5(%arg0: i32) -> (i32, i32) {
    %c0_i32 = arith.constant 0 : i32
    %c0_i32_0 = arith.constant 0 : i32
    %c0_i32_1 = arith.constant 0 : i32
    return %c0_i32, %c0_i32_0 : i32, i32
  }
  func.func @transform_6(%arg0: i32) -> (i32, i32, i32) {
    %c0_i32 = arith.constant 0 : i32
    %c0_i32_0 = arith.constant 0 : i32
    %c0_i32_1 = arith.constant 0 : i32
    %c0_i32_2 = arith.constant 0 : i32
    return %c0_i32, %c0_i32_0, %c0_i32_1 : i32, i32, i32
  }
  func.func @transform_7(%arg0: i32) -> (i32, i32) {
    %c0_i32 = arith.constant 0 : i32
    %c0_i32_0 = arith.constant 0 : i32
    %c0_i32_1 = arith.constant 0 : i32
    return %c0_i32, %c0_i32_0 : i32, i32
  }
  func.func @transform_8(%arg0: i32) -> (i32, i32) {
    %c0_i32 = arith.constant 0 : i32
    %c0_i32_0 = arith.constant 0 : i32
    %c0_i32_1 = arith.constant 0 : i32
    return %c0_i32, %c0_i32_0 : i32, i32
  }
  func.func @transform_9(%arg0: i32) -> (i32, i32, i32) {
    %c0_i32 = arith.constant 0 : i32
    %c0_i32_0 = arith.constant 0 : i32
    %c0_i32_1 = arith.constant 0 : i32
    %c0_i32_2 = arith.constant 0 : i32
    return %c0_i32, %c0_i32_0, %c0_i32_1 : i32, i32, i32
  }
  func.func @transform_10(%arg0: i32) -> (i32, i32) {
    %c0_i32 = arith.constant 0 : i32
    %c0_i32_0 = arith.constant 0 : i32
    %c0_i32_1 = arith.constant 0 : i32
    return %c0_i32, %c0_i32_0 : i32, i32
  }
  func.func @transform_11(%arg0: i32) -> (i32, i32) {
    %c0_i32 = arith.constant 0 : i32
    %c0_i32_0 = arith.constant 0 : i32
    %c0_i32_1 = arith.constant 0 : i32
    return %c0_i32, %c0_i32_0 : i32, i32
  }
  func.func @transform_12(%arg0: i32) -> (i32, i32) {
    %c0_i32 = arith.constant 0 : i32
    %c0_i32_0 = arith.constant 0 : i32
    %c0_i32_1 = arith.constant 0 : i32
    return %c0_i32, %c0_i32_0 : i32, i32
  }
  func.func @transform_13(%arg0: i32) -> (i32, i32) {
    %c0_i32 = arith.constant 0 : i32
    %c0_i32_0 = arith.constant 0 : i32
    %c0_i32_1 = arith.constant 0 : i32
    return %c0_i32, %c0_i32_0 : i32, i32
  }
  func.func @transform_14(%arg0: i32) -> (i32, i32, i32) {
    %c0_i32 = arith.constant 0 : i32
    %c0_i32_0 = arith.constant 0 : i32
    %c0_i32_1 = arith.constant 0 : i32
    return %arg0, %c0_i32, %c0_i32_0 : i32, i32, i32
  }
}

</mosaic_0001>

<bundles_post_ra>
// kernel: run.4
= control target key start
LH: loop header
LB: loop body
LE: loop exit
PB: predicated region body
PF: predicated region fallthrough
CT: control target
= control target key end

     0   :  { %s1547_s12 = smov 0   ;;  %s1549_s13 = smov 0   ;;  %s1895_s0 = inlined_call_operand.vmem [shape: bf16[2,36,16384], index: 0, kind: input, shape index: {}]   ;;  %s1896_s1 = inlined_call_operand.vmem [shape: bf16[16,36], index: 1, kind: input, shape index: {}]   ;;  %s1897_s2 = inlined_call_operand.vmem [shape: f32[16,1], index: 2, kind: input, shape index: {}]   ;;  %s1898_s3 = inlined_call_operand.vmem [shape: bf16[2,16,16384], index: 3, kind: output, shape index: {}]  }
   0x1   :  { %s1551_s14 = smov 0   ;;  %s1553_s15 = smov 0  }
   0x2   :  { %s1555_s16 = smov 0   ;;  %s1557_s17 = smov 0  }
   0x3   :  { %s1559_s18 = smov 0  }
   0x4 LB: > { %s22_s19 = sadd.s32 1, %s1516_s16  ;;  %s25_s20 = sadd.s32 1, %s1520_s17  ;;  %s1524_s18 = sphi %s1559_s18, %s13_s18   ;;  %s1520_s17 = sphi %s1557_s17, %s1905_s17   ;;  %s1516_s16 = sphi %s1555_s16, %s1904_s16   ;;  %s1512_s15 = sphi %s1553_s15, %s1903_s15   ;;  %s1508_s14 = sphi %s1551_s14, %s1902_s14   ;;  %s1504_s13 = sphi %s1549_s13, %s1901_s13   ;;  %s1500_s12 = sphi %s1547_s12, %s1900_s12  }
   0x5   : > { %p23_p0 = scmp.ge.s32.totalorder %s22_s19, 8  ;;  %s1281_s21 = sadd.s32 4294967295, %s1524_s18  }
   0x6   : > { %p41_p1 = scmp.ne.s32.totalorder %s1504_s13, %s1500_s12  ;;  %p42_p2 = scmp.eq.s32.totalorder %s1524_s18, 0 }
   0x7   : > { %s1907_s19 = smov (%p23_p0, %s22_s19), 0  ;;  %s1909_s20 = smov (!%p23_p0, %s25_s20), %s1520_s17 }
   0x8   : > { %p27_p3 = scmp.ge.s32.totalorder %s1909_s20, 2  ;;  %p115_p4 = scmp.eq.s32.totalorder %s1281_s21, 15 }
   0x9   : > { %s30_s22 = ssub.s32 %s1516_s16, %s1907_s19  ;;  %p43_p5 = por %p42_p2, %p41_p1 }
   0xa   : > { %s1911_s20 = smov (%p27_p3, %s1909_s20), 0  ;;  %p1595_p6 = por %p115_p4, %p41_p1 }
   0xb   : > { %s29_s24 = ssub.s32 %s1520_s17, %s1911_s20  ;;  %s34_s26 = sadd.s32 1, %s1504_s13 }
   0xc   : > { %s31_s25 = sor.u32 %s30_s22, %s29_s24  ;;  %p1284_p8 = scmp.ge.s32.totalorder %s1524_s18, 16 }
   0xd   : > { %p32_p7 = scmp.eq.s32.totalorder %s31_s25, 0 }
   0xe   : > { %143 = sbr.rel (%p1284_p8) target bundleno = 49 (0x31), region = 24 }
   0xf   : > { %s1603_s27 = scalar_select %p32_p7, %s1504_s13, %s34_s26  }
  0x15   : > { %146 = sbr.rel (!%p43_p5) target bundleno = 49 (0x31), region = 28  ;;  %s148_s28 = sand.u32 (%p43_p5), 1, %s1504_s13  }
  0x16   : > { %s1392_s29 = smul.u32 (%p43_p5), 320, %s148_s28  ;;  %s1285_s30 = sshll.u32 (%p43_p5), %s1516_s16, 4 }
  0x17   : > { %s1393_s4 = smul.u32 (%p43_p5), 640, %s1520_s17 }
  0x18   : > { %s1617_s10 = scalar_lea.vmem (%p43_p5), [#allocation2], %s1392_s29 }
  0x19   : > { %s153_s5 = sadd.s32 (%p43_p5), %s1393_s4, %s1285_s30 }
  0x1a   : > { %s1286_s6 = sshll.u32 (%p43_p5), %s153_s5, 2 }
  0x1b   : > { %s1612_s9 = scalar_lea.vmem (%p43_p5), %s1895_s0, %s1286_s6 }
  0x1c   : > { %v168_v0 = vld [vmem:[%s1612_s9] sm:$0xff]  ;;  %v170_v1 = vld [vmem:[%s1612_s9 + $0x8] sm:$0xff]  ;;  %v172_v2 = vld [vmem:[%s1612_s9 + $0x10] sm:$0xff] }
  0x1d   : > { %169 = vst [vmem:[%s1617_s10] sm:$0xff] %v168_v0  ;;  %171 = vst [vmem:[%s1617_s10 + $0x8] sm:$0xff] %v170_v1  ;;  %v174_v3 = vld [vmem:[%s1612_s9 + $0x18] sm:$0xff]  ;;  %v176_v4 = vld [vmem:[%s1612_s9 + $0x20] sm:$0xff] }
  0x1e   : > { %173 = vst [vmem:[%s1617_s10 + $0x10] sm:$0xff] %v172_v2  ;;  %v178_v5 = vld [vmem:[%s1612_s9 + $0x28] sm:$0xff]  ;;  %175 = vst [vmem:[%s1617_s10 + $0x18] sm:$0xff] %v174_v3  ;;  %v180_v6 = vld [vmem:[%s1612_s9 + $0x30] sm:$0xff] }
  0x1f   : > { %177 = vst [vmem:[%s1617_s10 + $0x20] sm:$0xff] %v176_v4  ;;  %179 = vst [vmem:[%s1617_s10 + $0x28] sm:$0xff] %v178_v5  ;;  %v182_v7 = vld [vmem:[%s1612_s9 + $0x38] sm:$0xff]  ;;  %v184_v8 = vld [vmem:[%s1612_s9 + $0x200] sm:$0xff] }
  0x20   : > { %181 = vst [vmem:[%s1617_s10 + $0x30] sm:$0xff] %v180_v6  ;;  %183 = vst [vmem:[%s1617_s10 + $0x38] sm:$0xff] %v182_v7  ;;  %v186_v9 = vld [vmem:[%s1612_s9 + $0x208] sm:$0xff]  ;;  %v188_v10 = vld [vmem:[%s1612_s9 + $0x210] sm:$0xff] }
  0x21   : > { %185 = vst [vmem:[%s1617_s10 + $0x40] sm:$0xff] %v184_v8  ;;  %v190_v11 = vld [vmem:[%s1612_s9 + $0x218] sm:$0xff]  ;;  %187 = vst [vmem:[%s1617_s10 + $0x48] sm:$0xff] %v186_v9  ;;  %v192_v12 = vld [vmem:[%s1612_s9 + $0x220] sm:$0xff] }
  0x22   : > { %189 = vst [vmem:[%s1617_s10 + $0x50] sm:$0xff] %v188_v10  ;;  %191 = vst [vmem:[%s1617_s10 + $0x58] sm:$0xff] %v190_v11  ;;  %v194_v13 = vld [vmem:[%s1612_s9 + $0x228] sm:$0xff]  ;;  %v196_v14 = vld [vmem:[%s1612_s9 + $0x230] sm:$0xff] }
  0x23   : > { %193 = vst [vmem:[%s1617_s10 + $0x60] sm:$0xff] %v192_v12  ;;  %195 = vst [vmem:[%s1617_s10 + $0x68] sm:$0xff] %v194_v13  ;;  %v198_v15 = vld [vmem:[%s1612_s9 + $0x238] sm:$0xff]  ;;  %v200_v16 = vld [vmem:[%s1612_s9 + $0x400] sm:$0xff] }
  0x24   : > { %197 = vst [vmem:[%s1617_s10 + $0x70] sm:$0xff] %v196_v14  ;;  %v202_v17 = vld [vmem:[%s1612_s9 + $0x408] sm:$0xff]  ;;  %199 = vst [vmem:[%s1617_s10 + $0x78] sm:$0xff] %v198_v15  ;;  %v204_v18 = vld [vmem:[%s1612_s9 + $0x410] sm:$0xff] }
  0x25   : > { %201 = vst [vmem:[%s1617_s10 + $0x80] sm:$0xff] %v200_v16  ;;  %203 = vst [vmem:[%s1617_s10 + $0x88] sm:$0xff] %v202_v17  ;;  %v206_v19 = vld [vmem:[%s1612_s9 + $0x418] sm:$0xff]  ;;  %v208_v20 = vld [vmem:[%s1612_s9 + $0x420] sm:$0xff] }
  0x26   : > { %205 = vst [vmem:[%s1617_s10 + $0x90] sm:$0xff] %v204_v18  ;;  %207 = vst [vmem:[%s1617_s10 + $0x98] sm:$0xff] %v206_v19  ;;  %v210_v21 = vld [vmem:[%s1612_s9 + $0x428] sm:$0xff]  ;;  %v212_v22 = vld [vmem:[%s1612_s9 + $0x430] sm:$0xff] }
  0x27   : > { %209 = vst [vmem:[%s1617_s10 + $0xa0] sm:$0xff] %v208_v20  ;;  %v214_v23 = vld [vmem:[%s1612_s9 + $0x438] sm:$0xff]  ;;  %211 = vst [vmem:[%s1617_s10 + $0xa8] sm:$0xff] %v210_v21  ;;  %v216_v24 = vld [vmem:[%s1612_s9 + $0x600] sm:$0xff] }
  0x28   : > { %213 = vst [vmem:[%s1617_s10 + $0xb0] sm:$0xff] %v212_v22  ;;  %215 = vst [vmem:[%s1617_s10 + $0xb8] sm:$0xff] %v214_v23  ;;  %v218_v25 = vld [vmem:[%s1612_s9 + $0x608] sm:$0xff]  ;;  %v220_v26 = vld [vmem:[%s1612_s9 + $0x610] sm:$0xff] }
  0x29   : > { %217 = vst [vmem:[%s1617_s10 + $0xc0] sm:$0xff] %v216_v24  ;;  %219 = vst [vmem:[%s1617_s10 + $0xc8] sm:$0xff] %v218_v25  ;;  %v222_v27 = vld [vmem:[%s1612_s9 + $0x618] sm:$0xff]  ;;  %v224_v28 = vld [vmem:[%s1612_s9 + $0x620] sm:$0xff] }
  0x2a   : > { %221 = vst [vmem:[%s1617_s10 + $0xd0] sm:$0xff] %v220_v26  ;;  %v226_v29 = vld [vmem:[%s1612_s9 + $0x628] sm:$0xff]  ;;  %223 = vst [vmem:[%s1617_s10 + $0xd8] sm:$0xff] %v222_v27  ;;  %v228_v30 = vld [vmem:[%s1612_s9 + $0x630] sm:$0xff] }
  0x2b   : > { %225 = vst [vmem:[%s1617_s10 + $0xe0] sm:$0xff] %v224_v28  ;;  %227 = vst [vmem:[%s1617_s10 + $0xe8] sm:$0xff] %v226_v29  ;;  %v230_v31 = vld [vmem:[%s1612_s9 + $0x638] sm:$0xff]  ;;  %v232_v32 = vld [vmem:[%s1612_s9 + $0x800] sm:$0xff] }
  0x2c   : > { %229 = vst [vmem:[%s1617_s10 + $0xf0] sm:$0xff] %v228_v30  ;;  %231 = vst [vmem:[%s1617_s10 + $0xf8] sm:$0xff] %v230_v31  ;;  %v234_v33 = vld [vmem:[%s1612_s9 + $0x808] sm:$0xff]  ;;  %v236_v34 = vld [vmem:[%s1612_s9 + $0x810] sm:$0xff] }
  0x2d   : > { %233 = vst [vmem:[%s1617_s10 + $0x100] sm:$0xff] %v232_v32  ;;  %v238_v35 = vld [vmem:[%s1612_s9 + $0x818] sm:$0xff]  ;;  %235 = vst [vmem:[%s1617_s10 + $0x108] sm:$0xff] %v234_v33  ;;  %v240_v36 = vld [vmem:[%s1612_s9 + $0x820] sm:$0xff] }
  0x2e   : > { %237 = vst [vmem:[%s1617_s10 + $0x110] sm:$0xff] %v236_v34  ;;  %239 = vst [vmem:[%s1617_s10 + $0x118] sm:$0xff] %v238_v35  ;;  %v242_v37 = vld [vmem:[%s1612_s9 + $0x828] sm:$0xff]  ;;  %v244_v38 = vld [vmem:[%s1612_s9 + $0x830] sm:$0xff] }
  0x2f   : > { %241 = vst [vmem:[%s1617_s10 + $0x120] sm:$0xff] %v240_v36  ;;  %243 = vst [vmem:[%s1617_s10 + $0x128] sm:$0xff] %v242_v37  ;;  %v246_v39 = vld [vmem:[%s1612_s9 + $0x838] sm:$0xff] }
  0x30   : > { %245 = vst [vmem:[%s1617_s10 + $0x130] sm:$0xff] %v244_v38  ;;  %247 = vst [vmem:[%s1617_s10 + $0x138] sm:$0xff] %v246_v39 }
  0x31 PF: > { %p1287_p9 = scmp.ge.s32.totalorder %s1524_s18, 1  ;;  %p252_p10 = scmp.lt.s32.totalorder %s1524_s18, 17 }
  0x33   : > { %p253_p11 = pnand %p1287_p9, %p252_p10 }
  0x34   : > { %s259_s11 = sand.u32 (!%p253_p11), 1, %s1500_s12   ;;  %v1526_v40 = vmov (!%p253_p11), 0   ;;  %v326_v41 = vld [vmem:[%s1897_s2] sm:$0xff] (!%p253_p11)  ;;  %v327_v58 = vld [vmem:[%s1897_s2 + $0x8] sm:$0xff] (!%p253_p11)  ;;  %vm547_vm0 = vcmask (!%p253_p11), 1041408   ;;  %vm543_vm1 = vcmask (!%p253_p11), 293888  }
  0x35   : > { %256 = sbr.rel (%p253_p11) target bundleno = 343 (0x157), region = 51  ;;  %628 = vmatprep.mubr.bf16.mxu0 (!%p253_p11), %v1526_v40  ;;  %671 = vmatprep.mubr.bf16.mxu1 (!%p253_p11), %v1526_v40  ;;  %v1735_v11 = vld [vmem:[%s1896_s1] sm:$0xff] (!%p253_p11)   ;;  %s1288_s4 = sshll.u32 (!%p253_p11), %s259_s11, 7 }
  0x36   : > { %s1394_s21 = smul.u32 (!%p253_p11), 320, %s259_s11  ;;  %1452 = vset.pattern.permute.xlu0 (!%p253_p11), %v1526_v40  ;;  %s1809_s12 = scalar_lea.vmem (!%p253_p11), [#allocation3], %s1288_s4 }
  0x37   : > { %330 = vperm.xlu0 (!%p253_p11), %1452, %v326_v41  }
  0x38   : > { %s1707_s25 = scalar_lea.vmem (!%p253_p11), [#allocation2], %s1394_s21 }
  0x39   : > { %v286_v42 = vld [vmem:[%s1707_s25] sm:$0xff] (!%p253_p11)  ;;  %v287_v44 = vld [vmem:[%s1707_s25 + $0x8] sm:$0xff] (!%p253_p11)  ;;  %v288_v1 = vld [vmem:[%s1707_s25 + $0x10] sm:$0xff] (!%p253_p11) }
  0x3a   : > { %v294_v43 = vld [vmem:[%s1707_s25 + $0x40] sm:$0xff] (!%p253_p11)  ;;  %v295_v46 = vld [vmem:[%s1707_s25 + $0x48] sm:$0xff] (!%p253_p11)  ;;  %v296_v2 = vld [vmem:[%s1707_s25 + $0x50] sm:$0xff] (!%p253_p11) }
  0x3b   : > { %v1291_v45 = vcombine.high (!%p253_p11), %v286_v42, %v294_v43  ;;  %v1290_v47 = vcombine.low (!%p253_p11), %v286_v42, %v294_v43  ;;  %v302_v48 = vld [vmem:[%s1707_s25 + $0x80] sm:$0xff] (!%p253_p11)  ;;  %v1293_v50 = vcombine.high (!%p253_p11), %v287_v44, %v295_v46  ;;  %v1292_v51 = vcombine.low (!%p253_p11), %v287_v44, %v295_v46  ;;  %v303_v53 = vld [vmem:[%s1707_s25 + $0x88] sm:$0xff] (!%p253_p11)  ;;  %335 = vperm.xlu0 (!%p253_p11), %1452, %v327_v58   ;;  %v289_v3 = vld [vmem:[%s1707_s25 + $0x18] sm:$0xff] (!%p253_p11) }
  0x3c   : > { %v310_v49 = vld [vmem:[%s1707_s25 + $0xc0] sm:$0xff]  ;;  %v311_v54 = vld [vmem:[%s1707_s25 + $0xc8] sm:$0xff]  ;;  %v297_v4 = vld [vmem:[%s1707_s25 + $0x58] sm:$0xff]  ;;  %v1295_v6 = vcombine.high %v288_v1, %v296_v2  ;;  %v1294_v14 = vcombine.low %v288_v1, %v296_v2  ;;  %s1371_s5 = sshll.u32 (%p1595_p6), %s1508_s14, 4  ;;  %s1372_s6 = sshll.u32 (%p1595_p6), %s1512_s15, 8 }
  0x3d   : > { %v1307_v52 = vcombine.high %v302_v48, %v310_v49  ;;  %v318_v55 = vld [vmem:[%s1707_s25 + $0x100] sm:$0x33]  ;;  %596 = vmatprep.subr.bf16.mxu0 %v1291_v45  ;;  %v1309_v56 = vcombine.high %v303_v53, %v311_v54  ;;  %v319_v57 = vld [vmem:[%s1707_s25 + $0x108] sm:$0x33]  ;;  %639 = vmatprep.subr.bf16.mxu1 %v1293_v50  ;;  %v1306_v59 = vcombine.low %v302_v48, %v310_v49  ;;  %v304_v9 = vld [vmem:[%s1707_s25 + $0x90] sm:$0xff]  ;;  %s1157_s23 = sadd.s32 (%p1595_p6), %s1372_s6, %s1371_s5 }
  0x3e   : > { %597 = vmatpush1.bf16.msra.mxu0 %v1290_v47  ;;  %640 = vmatpush1.bf16.msra.mxu1 %v1292_v51  ;;  %v1308_v60 = vcombine.low %v303_v53, %v311_v54  ;;  %v1323_v61 = vcombine.high %v318_v55, %v318_v55  ;;  %v1322_v62 = vcombine.low %v318_v55, %v318_v55  ;;  %v312_v10 = vld [vmem:[%s1707_s25 + $0xd0] sm:$0xff]  ;;  %v305_v12 = vld [vmem:[%s1707_s25 + $0x98] sm:$0xff]  ;;  %v290_v26 = vld [vmem:[%s1707_s25 + $0x20] sm:$0xff]  ;;  %s1373_s7 = sshll.u32 (%p1595_p6), %s1157_s23, 2 }
  0x3f   : > { %598 = vmatprep.subr.bf16.mxu0 %v1307_v52  ;;  %641 = vmatprep.subr.bf16.mxu1 %v1309_v56  ;;  %v1325_v63 = vcombine.high %v319_v57, %v319_v57  ;;  %v1324_v0 = vcombine.low %v319_v57, %v319_v57  ;;  %v1297_v8 = vcombine.high %v289_v3, %v297_v4  ;;  %v313_v13 = vld [vmem:[%s1707_s25 + $0xd8] sm:$0xff]  ;;  %v320_v18 = vld [vmem:[%s1707_s25 + $0x110] sm:$0x33]  ;;  %v298_v27 = vld [vmem:[%s1707_s25 + $0x60] sm:$0xff]  ;;  %s1159_s10 = scalar_lea.vmem (%p1595_p6), %s1898_s3, %s1373_s7 }
  0x40   : > { %v549_v5 = vsel %vm547_vm0, %v1322_v62, 0  ;;  %v1296_v15 = vcombine.low %v289_v3, %v297_v4  ;;  %v1311_v16 = vcombine.high %v304_v9, %v312_v10  ;;  %v1313_v17 = vcombine.high %v305_v12, %v313_v13  ;;  %v321_v19 = vld [vmem:[%s1707_s25 + $0x118] sm:$0x33]  ;;  %v291_v28 = vld [vmem:[%s1707_s25 + $0x28] sm:$0xff]  ;;  %v306_v34 = vld [vmem:[%s1707_s25 + $0xa0] sm:$0xff] }
  0x41   : > { %v555_v7 = vsel %vm547_vm0, %v1324_v0, 0  ;;  %v1310_v20 = vcombine.low %v304_v9, %v312_v10  ;;  %v1312_v21 = vcombine.low %v305_v12, %v313_v13  ;;  %v1327_v22 = vcombine.high %v320_v18, %v320_v18  ;;  %v299_v29 = vld [vmem:[%s1707_s25 + $0x68] sm:$0xff]  ;;  %v314_v35 = vld [vmem:[%s1707_s25 + $0xe0] sm:$0xff]  ;;  %v292_v51 = vld [vmem:[%s1707_s25 + $0x30] sm:$0xff] }
  0x42   : > { %599 = vmatpush1.bf16.msra.mxu0 %v1306_v59  ;;  %642 = vmatpush1.bf16.msra.mxu1 %v1308_v60  ;;  %v1326_v23 = vcombine.low %v320_v18, %v320_v18  ;;  %v1329_v24 = vcombine.high %v321_v19, %v321_v19  ;;  %v1328_v25 = vcombine.low %v321_v19, %v321_v19  ;;  %v307_v36 = vld [vmem:[%s1707_s25 + $0xa8] sm:$0xff]  ;;  %v322_v43 = vld [vmem:[%s1707_s25 + $0x120] sm:$0x33]  ;;  %v300_v52 = vld [vmem:[%s1707_s25 + $0x70] sm:$0xff] }
  0x43   : > { %1338 = vmatprep.subr.msk.bf16.mxu0 %vm547_vm0, %v1323_v61  ;;  %1340 = vmatprep.subr.msk.bf16.mxu1 %vm547_vm0, %v1325_v63  ;;  %v1299_v31 = vcombine.high %v290_v26, %v298_v27  ;;  %v1301_v33 = vcombine.high %v291_v28, %v299_v29  ;;  %v315_v37 = vld [vmem:[%s1707_s25 + $0xe8] sm:$0xff]  ;;  %v1298_v38 = vcombine.low %v290_v26, %v298_v27  ;;  %v293_v53 = vld [vmem:[%s1707_s25 + $0x38] sm:$0xff]  ;;  %v308_v59 = vld [vmem:[%s1707_s25 + $0xb0] sm:$0xff] }
  0x44   : > { %v561_v30 = vsel %vm547_vm0, %v1326_v23, 0  ;;  %v567_v32 = vsel %vm547_vm0, %v1328_v25, 0  ;;  %v1300_v39 = vcombine.low %v291_v28, %v299_v29  ;;  %v1315_v41 = vcombine.high %v306_v34, %v314_v35  ;;  %v323_v44 = vld [vmem:[%s1707_s25 + $0x128] sm:$0x33]  ;;  %v301_v54 = vld [vmem:[%s1707_s25 + $0x78] sm:$0xff]  ;;  %v316_v60 = vld [vmem:[%s1707_s25 + $0xf0] sm:$0xff] }
  0x45   : > { %v1317_v42 = vcombine.high %v307_v36, %v315_v37  ;;  %v1314_v45 = vcombine.low %v306_v34, %v314_v35  ;;  %v1316_v46 = vcombine.low %v307_v36, %v315_v37  ;;  %v1331_v47 = vcombine.high %v322_v43, %v322_v43  ;;  %v309_v61 = vld [vmem:[%s1707_s25 + $0xb8] sm:$0xff]  ;;  %v324_v3 = vld [vmem:[%s1707_s25 + $0x130] sm:$0x33] }
  0x46   : > { %601 = vmatpush1.bf16.msra.mxu0 %v549_v5  ;;  %644 = vmatpush1.bf16.msra.mxu1 %v555_v7  ;;  %v1330_v48 = vcombine.low %v322_v43, %v322_v43  ;;  %v1333_v49 = vcombine.high %v323_v44, %v323_v44  ;;  %v1332_v50 = vcombine.low %v323_v44, %v323_v44  ;;  %v317_v62 = vld [vmem:[%s1707_s25 + $0xf8] sm:$0xff] }
  0x47   : > { %682 = vmatprep.subr.bf16.mxu0 %v1295_v6  ;;  %725 = vmatprep.subr.bf16.mxu1 %v1297_v8  ;;  %v1303_v56 = vcombine.high %v292_v51, %v300_v52  ;;  %v1305_v58 = vcombine.high %v293_v53, %v301_v54  ;;  %v1302_v63 = vcombine.low %v292_v51, %v300_v52  ;;  %v325_v4 = vld [vmem:[%s1707_s25 + $0x138] sm:$0x33] }
  0x48   : > { %v573_v55 = vsel %vm547_vm0, %v1330_v48, 0  ;;  %v579_v57 = vsel %vm547_vm0, %v1332_v50, 0  ;;  %v1304_v0 = vcombine.low %v293_v53, %v301_v54  ;;  %v1319_v1 = vcombine.high %v308_v59, %v316_v60 }
  0x49   : > { %1339 = vmatmul.mubr.msk.bf16.vlgmr.msra.gmra.mrb[0].mxu0 %vm543_vm1, %v1735_v11  ;;  %1341 = vmatmul.mubr.msk.bf16.vlgmr.msra.gmra.mrb[0].mxu1 %vm543_vm1, %v1735_v11  ;;  %v1321_v2 = vcombine.high %v309_v61, %v317_v62  ;;  %v1318_v5 = vcombine.low %v308_v59, %v316_v60  ;;  %v1320_v6 = vcombine.low %v309_v61, %v317_v62 }
  0x4a   : > { %683 = vmatpush1.bf16.msra.mxu0 %v1294_v14  ;;  %726 = vmatpush1.bf16.msra.mxu1 %v1296_v15  ;;  %v1335_v7 = vcombine.high %v324_v3, %v324_v3  ;;  %v1334_v8 = vcombine.low %v324_v3, %v324_v3  ;;  %v1337_v9 = vcombine.high %v325_v4, %v325_v4 }
  0x4b   : > { %684 = vmatprep.subr.bf16.mxu0 %v1311_v16  ;;  %727 = vmatprep.subr.bf16.mxu1 %v1313_v17  ;;  %v1336_v10 = vcombine.low %v325_v4, %v325_v4 }
  0x4c   : > { %714 = vmatprep.mubr.bf16.mxu0 %v1526_v40  ;;  %757 = vmatprep.mubr.bf16.mxu1 %v1526_v40  ;;  %v585_v12 = vsel %vm547_vm0, %v1334_v8, 0 }
  0x4d   : > { %v591_v13 = vsel %vm547_vm0, %v1336_v10, 0 }
  0x4e   : > { %685 = vmatpush1.bf16.msra.mxu0 %v1310_v20  ;;  %728 = vmatpush1.bf16.msra.mxu1 %v1312_v21 }
  0x4f   : > { %1342 = vmatprep.subr.msk.bf16.mxu0 %vm547_vm0, %v1327_v22  ;;  %1344 = vmatprep.subr.msk.bf16.mxu1 %vm547_vm0, %v1329_v24 }
  0x52   : > { %687 = vmatpush1.bf16.msra.mxu0 %v561_v30  ;;  %730 = vmatpush1.bf16.msra.mxu1 %v567_v32 }
  0x53   : > { %768 = vmatprep.subr.bf16.mxu0 %v1299_v31  ;;  %811 = vmatprep.subr.bf16.mxu1 %v1301_v33 }
  0x55   : > { %1343 = vmatmul.mubr.msk.bf16.vlgmr.msra.gmra.mrb[4].mxu0 %vm543_vm1, %v1735_v11  ;;  %1345 = vmatmul.mubr.msk.bf16.vlgmr.msra.gmra.mrb[4].mxu1 %vm543_vm1, %v1735_v11 }
  0x56   : > { %769 = vmatpush1.bf16.msra.mxu0 %v1298_v38  ;;  %812 = vmatpush1.bf16.msra.mxu1 %v1300_v39 }
  0x57   : > { %770 = vmatprep.subr.bf16.mxu0 %v1315_v41  ;;  %813 = vmatprep.subr.bf16.mxu1 %v1317_v42 }
  0x58   : > { %800 = vmatprep.mubr.bf16.mxu0 %v1526_v40  ;;  %843 = vmatprep.mubr.bf16.mxu1 %v1526_v40 }
  0x5a   : > { %771 = vmatpush1.bf16.msra.mxu0 %v1314_v45  ;;  %814 = vmatpush1.bf16.msra.mxu1 %v1316_v46 }
  0x5b   : > { %1346 = vmatprep.subr.msk.bf16.mxu0 %vm547_vm0, %v1331_v47  ;;  %1348 = vmatprep.subr.msk.bf16.mxu1 %vm547_vm0, %v1333_v49 }
  0x5e   : > { %773 = vmatpush1.bf16.msra.mxu0 %v573_v55  ;;  %816 = vmatpush1.bf16.msra.mxu1 %v579_v57 }
  0x5f   : > { %854 = vmatprep.subr.bf16.mxu0 %v1303_v56  ;;  %897 = vmatprep.subr.bf16.mxu1 %v1305_v58 }
  0x61   : > { %1347 = vmatmul.mubr.msk.bf16.vlgmr.msra.gmra.mrb[8].mxu0 %vm543_vm1, %v1735_v11  ;;  %1349 = vmatmul.mubr.msk.bf16.vlgmr.msra.gmra.mrb[8].mxu1 %vm543_vm1, %v1735_v11 }
  0x62   : > { %855 = vmatpush1.bf16.msra.mxu0 %v1302_v63  ;;  %898 = vmatpush1.bf16.msra.mxu1 %v1304_v0 }
  0x63   : > { %856 = vmatprep.subr.bf16.mxu0 %v1319_v1  ;;  %899 = vmatprep.subr.bf16.mxu1 %v1321_v2 }
  0x64   : > { %886 = vmatprep.mubr.bf16.mxu0 %v1526_v40  ;;  %929 = vmatprep.mubr.bf16.mxu1 %v1526_v40 }
  0x66   : > { %857 = vmatpush1.bf16.msra.mxu0 %v1318_v5  ;;  %900 = vmatpush1.bf16.msra.mxu1 %v1320_v6 }
  0x67   : > { %1350 = vmatprep.subr.msk.bf16.mxu0 %vm547_vm0, %v1335_v7  ;;  %1352 = vmatprep.subr.msk.bf16.mxu1 %vm547_vm0, %v1337_v9 }
  0x6a   : > { %859 = vmatpush1.bf16.msra.mxu0 %v585_v12  ;;  %902 = vmatpush1.bf16.msra.mxu1 %v591_v13 }
  0x6d   : > { %1351 = vmatmul.mubr.msk.bf16.vlgmr.msra.gmra.mrb[12].mxu0 %vm543_vm1, %v1735_v11  ;;  %1353 = vmatmul.mubr.msk.bf16.vlgmr.msra.gmra.mrb[12].mxu1 %vm543_vm1, %v1735_v11 }
  0xb6   : > { %v1795_v40 = vpop.permute.xlu0 %330 }
  0xba   : > { %v1797_v15 = vpop.permute.xlu0 %335 }
 0x11c   : > { %v630_v14 = vpop.f32.mrb[0].mxu0  ;;  %v673_v17 = vpop.f32.mrb[0].mxu1 }
 0x11d   : > { %v631_v16 = vadd.f32 %v630_v14, %v1795_v40  ;;  %v632_v18 = vpop.f32.mrb[1].mxu0  ;;  %v674_v19 = vadd.f32 %v673_v17, %v1795_v40  ;;  %v675_v21 = vpop.f32.mrb[1].mxu1 }
 0x11e   : > { %v633_v20 = vadd.f32 %v632_v18, %v1795_v40  ;;  %v634_v22 = vpop.f32.mrb[2].mxu0  ;;  %v676_v11 = vadd.f32 %v675_v21, %v1795_v40  ;;  %v677_v25 = vpop.f32.mrb[2].mxu1 }
 0x11f   : > { %vm940_vm2 = vcmp.ge.f32.partialorder %v631_v16, 0.0  ;;  %v972_v23 = vmul.f32 0.1, %v631_v16  ;;  %v635_v24 = vadd.f32 %v634_v22, %v1797_v15  ;;  %v636_v26 = vpop.f32.mrb[3].mxu0  ;;  %vm942_vm3 = vcmp.ge.f32.partialorder %v674_v19, 0.0  ;;  %v679_v31 = vpop.f32.mrb[3].mxu1 }
 0x120   : > { %v974_v27 = vmul.f32 0.1, %v674_v19  ;;  %vm941_vm4 = vcmp.ge.f32.partialorder %v633_v20, 0.0  ;;  %v973_v28 = vmul.f32 0.1, %v633_v20  ;;  %vm943_vm5 = vcmp.ge.f32.partialorder %v676_v11, 0.0 }
 0x121   : > { %v1004_v29 = vsel %vm940_vm2, %v631_v16, %v972_v23  ;;  %v975_v30 = vmul.f32 0.1, %v676_v11  ;;  %vm956_vm6 = vcmp.ge.f32.partialorder %v635_v24, 0.0  ;;  %v988_v34 = vmul.f32 0.1, %v635_v24 }
 0x122   : > { %v1006_v32 = vsel %vm942_vm3, %v674_v19, %v974_v27  ;;  %v1005_v33 = vsel %vm941_vm4, %v633_v20, %v973_v28  ;;  %v678_v35 = vadd.f32 %v677_v25, %v1797_v15  ;;  %v637_v38 = vadd.f32 %v636_v26, %v1797_v15 }
 0x123   : > { %v1376_v36 = vpack.c.bf16 %v1005_v33, %v1004_v29  ;;  %v1007_v37 = vsel %vm943_vm5, %v676_v11, %v975_v30  ;;  %v680_v39 = vadd.f32 %v679_v31, %v1797_v15  ;;  %v1020_v42 = vsel %vm956_vm6, %v635_v24, %v988_v34 }
 0x124   : > { %v1377_v41 = vpack.c.bf16 %v1007_v37, %v1006_v32  ;;  %vm958_vm7 = vcmp.ge.f32.partialorder %v678_v35, 0.0  ;;  %v990_v43 = vmul.f32 0.1, %v678_v35  ;;  %vm957_vm8 = vcmp.ge.f32.partialorder %v637_v38, 0.0 }
 0x125   : > { %1132 = vst [vmem:[%s1809_s12] sm:$0xff] %v1376_v36  ;;  %v989_v44 = vmul.f32 0.1, %v637_v38  ;;  %vm959_vm9 = vcmp.ge.f32.partialorder %v680_v39, 0.0  ;;  %v991_v45 = vmul.f32 0.1, %v680_v39 }
 0x126   : > { %1133 = vst [vmem:[%s1809_s12 + $0x8] sm:$0xff] %v1377_v41  ;;  %v1022_v46 = vsel %vm958_vm7, %v678_v35, %v990_v43 }
 0x127   : > { %v1021_v47 = vsel %vm957_vm8, %v637_v38, %v989_v44  ;;  %v1023_v48 = vsel %vm959_vm9, %v680_v39, %v991_v45 }
 0x128   : > { %v1384_v49 = vpack.c.bf16 %v1021_v47, %v1020_v42  ;;  %v1385_v50 = vpack.c.bf16 %v1023_v48, %v1022_v46  ;;  %v716_v51 = vpop.f32.mrb[4].mxu0  ;;  %v759_v53 = vpop.f32.mrb[4].mxu1 }
 0x129   : > { %v717_v52 = vadd.f32 %v716_v51, %v1795_v40  ;;  %v718_v54 = vpop.f32.mrb[5].mxu0  ;;  %v760_v55 = vadd.f32 %v759_v53, %v1795_v40  ;;  %v761_v57 = vpop.f32.mrb[5].mxu1 }
 0x12a   : > { %1140 = vst [vmem:[%s1809_s12 + $0x40] sm:$0xff] %v1384_v49  ;;  %1141 = vst [vmem:[%s1809_s12 + $0x48] sm:$0xff] %v1385_v50  ;;  %v719_v56 = vadd.f32 %v718_v54, %v1795_v40  ;;  %v720_v58 = vpop.f32.mrb[6].mxu0  ;;  %v762_v60 = vadd.f32 %v761_v57, %v1795_v40  ;;  %v763_v62 = vpop.f32.mrb[6].mxu1 }
 0x12b   : > { %vm944_vm10 = vcmp.ge.f32.partialorder %v717_v52, 0.0  ;;  %v976_v59 = vmul.f32 0.1, %v717_v52  ;;  %v721_v61 = vadd.f32 %v720_v58, %v1797_v15  ;;  %v722_v63 = vpop.f32.mrb[7].mxu0  ;;  %vm946_vm11 = vcmp.ge.f32.partialorder %v760_v55, 0.0  ;;  %v765_v4 = vpop.f32.mrb[7].mxu1 }
 0x12c   : > { %v978_v0 = vmul.f32 0.1, %v760_v55  ;;  %vm945_vm12 = vcmp.ge.f32.partialorder %v719_v56, 0.0  ;;  %v977_v1 = vmul.f32 0.1, %v719_v56  ;;  %vm947_vm13 = vcmp.ge.f32.partialorder %v762_v60, 0.0 }
 0x12d   : > { %v1008_v2 = vsel %vm944_vm10, %v717_v52, %v976_v59  ;;  %v979_v3 = vmul.f32 0.1, %v762_v60  ;;  %vm960_vm14 = vcmp.ge.f32.partialorder %v721_v61, 0.0  ;;  %v992_v7 = vmul.f32 0.1, %v721_v61 }
 0x12e   : > { %v1010_v5 = vsel %vm946_vm11, %v760_v55, %v978_v0  ;;  %v1009_v6 = vsel %vm945_vm12, %v719_v56, %v977_v1  ;;  %v764_v8 = vadd.f32 %v763_v62, %v1797_v15  ;;  %v723_v12 = vadd.f32 %v722_v63, %v1797_v15 }
 0x12f   : > { %v1378_v9 = vpack.c.bf16 %v1009_v6, %v1008_v2  ;;  %v1011_v10 = vsel %vm947_vm13, %v762_v60, %v979_v3  ;;  %v766_v13 = vadd.f32 %v765_v4, %v1797_v15  ;;  %v1024_v16 = vsel %vm960_vm14, %v721_v61, %v992_v7 }
 0x130   : > { %v1379_v14 = vpack.c.bf16 %v1011_v10, %v1010_v5  ;;  %vm962_vm15 = vcmp.ge.f32.partialorder %v764_v8, 0.0  ;;  %v994_v17 = vmul.f32 0.1, %v764_v8  ;;  %vm961_vm0 = vcmp.ge.f32.partialorder %v723_v12, 0.0 }
 0x131   : > { %1134 = vst [vmem:[%s1809_s12 + $0x10] sm:$0xff] %v1378_v9  ;;  %v993_v18 = vmul.f32 0.1, %v723_v12  ;;  %vm963_vm1 = vcmp.ge.f32.partialorder %v766_v13, 0.0  ;;  %v995_v19 = vmul.f32 0.1, %v766_v13 }
 0x132   : > { %1135 = vst [vmem:[%s1809_s12 + $0x18] sm:$0xff] %v1379_v14  ;;  %v1026_v20 = vsel %vm962_vm15, %v764_v8, %v994_v17 }
 0x133   : > { %v1025_v21 = vsel %vm961_vm0, %v723_v12, %v993_v18  ;;  %v1027_v22 = vsel %vm963_vm1, %v766_v13, %v995_v19 }
 0x134   : > { %v1386_v23 = vpack.c.bf16 %v1025_v21, %v1024_v16  ;;  %v1387_v11 = vpack.c.bf16 %v1027_v22, %v1026_v20  ;;  %v802_v24 = vpop.f32.mrb[8].mxu0  ;;  %v845_v26 = vpop.f32.mrb[8].mxu1 }
 0x135   : > { %v803_v25 = vadd.f32 %v802_v24, %v1795_v40  ;;  %v804_v27 = vpop.f32.mrb[9].mxu0  ;;  %v846_v28 = vadd.f32 %v845_v26, %v1795_v40  ;;  %v847_v30 = vpop.f32.mrb[9].mxu1 }
 0x136   : > { %1142 = vst [vmem:[%s1809_s12 + $0x50] sm:$0xff] %v1386_v23  ;;  %1143 = vst [vmem:[%s1809_s12 + $0x58] sm:$0xff] %v1387_v11  ;;  %v805_v29 = vadd.f32 %v804_v27, %v1795_v40  ;;  %v806_v31 = vpop.f32.mrb[10].mxu0  ;;  %v848_v33 = vadd.f32 %v847_v30, %v1795_v40  ;;  %v849_v35 = vpop.f32.mrb[10].mxu1 }
 0x137   : > { %vm948_vm2 = vcmp.ge.f32.partialorder %v803_v25, 0.0  ;;  %v980_v32 = vmul.f32 0.1, %v803_v25  ;;  %v807_v34 = vadd.f32 %v806_v31, %v1797_v15  ;;  %v808_v36 = vpop.f32.mrb[11].mxu0  ;;  %vm950_vm3 = vcmp.ge.f32.partialorder %v846_v28, 0.0  ;;  %v851_v42 = vpop.f32.mrb[11].mxu1 }
 0x138   : > { %v982_v37 = vmul.f32 0.1, %v846_v28  ;;  %vm949_vm4 = vcmp.ge.f32.partialorder %v805_v29, 0.0  ;;  %v981_v38 = vmul.f32 0.1, %v805_v29  ;;  %vm951_vm5 = vcmp.ge.f32.partialorder %v848_v33, 0.0 }
 0x139   : > { %v1012_v39 = vsel %vm948_vm2, %v803_v25, %v980_v32  ;;  %v983_v41 = vmul.f32 0.1, %v848_v33  ;;  %vm964_vm6 = vcmp.ge.f32.partialorder %v807_v34, 0.0  ;;  %v996_v45 = vmul.f32 0.1, %v807_v34 }
 0x13a   : > { %v1014_v43 = vsel %vm950_vm3, %v846_v28, %v982_v37  ;;  %v1013_v44 = vsel %vm949_vm4, %v805_v29, %v981_v38  ;;  %v850_v46 = vadd.f32 %v849_v35, %v1797_v15  ;;  %v809_v49 = vadd.f32 %v808_v36, %v1797_v15  ;;  %v1178_v35 = vld [vmem:[%s1809_s12 + $0x18] sm:$0xff] (%p1595_p6) }
 0x13b   : > { %v1380_v47 = vpack.c.bf16 %v1013_v44, %v1012_v39  ;;  %v1015_v48 = vsel %vm951_vm5, %v848_v33, %v983_v41  ;;  %v852_v50 = vadd.f32 %v851_v42, %v1797_v15  ;;  %v1028_v52 = vsel %vm964_vm6, %v807_v34, %v996_v45  ;;  %v1174_v33 = vld [vmem:[%s1809_s12 + $0x8] sm:$0xff] (%p1595_p6)  ;;  %v1176_v34 = vld [vmem:[%s1809_s12 + $0x10] sm:$0xff] (%p1595_p6)  ;;  %v1188_v41 = vld [vmem:[%s1809_s12 + $0x40] sm:$0xff] (%p1595_p6)  ;;  %1179 = vst [vmem:[%s1159_s10 + $0x18] sm:$0xff] (%p1595_p6), %v1178_v35 }
 0x13c   : > { %v1381_v51 = vpack.c.bf16 %v1015_v48, %v1014_v43  ;;  %vm966_vm7 = vcmp.ge.f32.partialorder %v850_v46, 0.0  ;;  %v998_v53 = vmul.f32 0.1, %v850_v46  ;;  %vm965_vm8 = vcmp.ge.f32.partialorder %v809_v49, 0.0  ;;  %v1190_v42 = vld [vmem:[%s1809_s12 + $0x48] sm:$0xff] (%p1595_p6)  ;;  %1175 = vst [vmem:[%s1159_s10 + $0x8] sm:$0xff] (%p1595_p6), %v1174_v33 }
 0x13d   : > { %1136 = vst [vmem:[%s1809_s12 + $0x20] sm:$0xff] %v1380_v47  ;;  %v997_v54 = vmul.f32 0.1, %v809_v49  ;;  %vm967_vm9 = vcmp.ge.f32.partialorder %v852_v50, 0.0  ;;  %v999_v55 = vmul.f32 0.1, %v852_v50 }
 0x13e   : > { %1137 = vst [vmem:[%s1809_s12 + $0x28] sm:$0xff] %v1381_v51  ;;  %v1030_v56 = vsel %vm966_vm7, %v850_v46, %v998_v53  ;;  %v1192_v43 = vld [vmem:[%s1809_s12 + $0x50] sm:$0xff] (%p1595_p6)  ;;  %v1194_v44 = vld [vmem:[%s1809_s12 + $0x58] sm:$0xff] (%p1595_p6)  ;;  %1177 = vst [vmem:[%s1159_s10 + $0x10] sm:$0xff] (%p1595_p6), %v1176_v34 }
 0x13f   : > { %v1029_v57 = vsel %vm965_vm8, %v809_v49, %v997_v54  ;;  %v1031_v58 = vsel %vm967_vm9, %v852_v50, %v999_v55  ;;  %1189 = vst [vmem:[%s1159_s10 + $0x200] sm:$0xff] (%p1595_p6), %v1188_v41  ;;  %1191 = vst [vmem:[%s1159_s10 + $0x208] sm:$0xff] (%p1595_p6), %v1190_v42 }
 0x140   : > { %v1388_v59 = vpack.c.bf16 %v1029_v57, %v1028_v52  ;;  %v1389_v60 = vpack.c.bf16 %v1031_v58, %v1030_v56  ;;  %v888_v61 = vpop.f32.mrb[12].mxu0  ;;  %v931_v63 = vpop.f32.mrb[12].mxu1  ;;  %1193 = vst [vmem:[%s1159_s10 + $0x210] sm:$0xff] (%p1595_p6), %v1192_v43  ;;  %1195 = vst [vmem:[%s1159_s10 + $0x218] sm:$0xff] (%p1595_p6), %v1194_v44 }
 0x141   : > { %v889_v62 = vadd.f32 %v888_v61, %v1795_v40  ;;  %v890_v0 = vpop.f32.mrb[13].mxu0  ;;  %v932_v1 = vadd.f32 %v931_v63, %v1795_v40  ;;  %v933_v3 = vpop.f32.mrb[13].mxu1 }
 0x142   : > { %1144 = vst [vmem:[%s1809_s12 + $0x60] sm:$0xff] %v1388_v59  ;;  %1145 = vst [vmem:[%s1809_s12 + $0x68] sm:$0xff] %v1389_v60  ;;  %v891_v2 = vadd.f32 %v890_v0, %v1795_v40  ;;  %v892_v4 = vpop.f32.mrb[14].mxu0  ;;  %v934_v6 = vadd.f32 %v933_v3, %v1795_v40  ;;  %v935_v8 = vpop.f32.mrb[14].mxu1 }
 0x143   : > { %vm952_vm10 = vcmp.ge.f32.partialorder %v889_v62, 0.0  ;;  %v984_v5 = vmul.f32 0.1, %v889_v62  ;;  %v893_v7 = vadd.f32 %v892_v4, %v1797_v15  ;;  %v894_v9 = vpop.f32.mrb[15].mxu0  ;;  %vm954_vm11 = vcmp.ge.f32.partialorder %v932_v1, 0.0  ;;  %v937_v16 = vpop.f32.mrb[15].mxu1 }
 0x144   : > { %v986_v10 = vmul.f32 0.1, %v932_v1  ;;  %vm953_vm12 = vcmp.ge.f32.partialorder %v891_v2, 0.0  ;;  %v985_v12 = vmul.f32 0.1, %v891_v2  ;;  %vm955_vm13 = vcmp.ge.f32.partialorder %v934_v6, 0.0 }
 0x145   : > { %v1016_v13 = vsel %vm952_vm10, %v889_v62, %v984_v5  ;;  %v987_v14 = vmul.f32 0.1, %v934_v6  ;;  %vm968_vm14 = vcmp.ge.f32.partialorder %v893_v7, 0.0  ;;  %v1000_v19 = vmul.f32 0.1, %v893_v7  ;;  %v1180_v36 = vld [vmem:[%s1809_s12 + $0x20] sm:$0xff] (%p1595_p6) }
 0x146   : > { %v1018_v17 = vsel %vm954_vm11, %v932_v1, %v986_v10  ;;  %v1017_v18 = vsel %vm953_vm12, %v891_v2, %v985_v12  ;;  %v936_v40 = vadd.f32 %v935_v8, %v1797_v15  ;;  %v895_v22 = vadd.f32 %v894_v9, %v1797_v15  ;;  %v1182_v37 = vld [vmem:[%s1809_s12 + $0x28] sm:$0xff] (%p1595_p6)  ;;  %1181 = vst [vmem:[%s1159_s10 + $0x20] sm:$0xff] (%p1595_p6), %v1180_v36 }
 0x147   : > { %v1382_v20 = vpack.c.bf16 %v1017_v18, %v1016_v13  ;;  %v1019_v21 = vsel %vm955_vm13, %v934_v6, %v987_v14  ;;  %v938_v23 = vadd.f32 %v937_v16, %v1797_v15  ;;  %v1032_v24 = vsel %vm968_vm14, %v893_v7, %v1000_v19  ;;  %v1172_v15 = vld [vmem:[%s1809_s12] sm:$0xff] (%p1595_p6)  ;;  %1183 = vst [vmem:[%s1159_s10 + $0x28] sm:$0xff] (%p1595_p6), %v1182_v37 }
 0x148   : > { %v1383_v11 = vpack.c.bf16 %v1019_v21, %v1018_v17  ;;  %vm970_vm15 = vcmp.ge.f32.partialorder %v936_v40, 0.0  ;;  %v1002_v25 = vmul.f32 0.1, %v936_v40  ;;  %vm969_vm0 = vcmp.ge.f32.partialorder %v895_v22, 0.0  ;;  %1154 = sbr.rel (!%p1595_p6) target bundleno = 343 (0x157), region = 59  ;;  %1173 = vst [vmem:[%s1159_s10] sm:$0xff] (%p1595_p6), %v1172_v15 }
 0x149   : > { %1138 = vst [vmem:[%s1809_s12 + $0x30] sm:$0xff] %v1382_v20  ;;  %v1001_v26 = vmul.f32 0.1, %v895_v22  ;;  %vm971_vm1 = vcmp.ge.f32.partialorder %v938_v23, 0.0  ;;  %v1003_v27 = vmul.f32 0.1, %v938_v23 }
 0x14a   : > { %1139 = vst [vmem:[%s1809_s12 + $0x38] sm:$0xff] %v1383_v11  ;;  %v1034_v28 = vsel %vm970_vm15, %v936_v40, %v1002_v25  ;;  %v1196_v45 = vld [vmem:[%s1809_s12 + $0x60] sm:$0xff] (%p1595_p6)  ;;  %v1198_v46 = vld [vmem:[%s1809_s12 + $0x68] sm:$0xff] (%p1595_p6) }
 0x14b   : > { %v1033_v29 = vsel %vm969_vm0, %v895_v22, %v1001_v26  ;;  %v1035_v30 = vsel %vm971_vm1, %v938_v23, %v1003_v27  ;;  %1197 = vst [vmem:[%s1159_s10 + $0x220] sm:$0xff] (%p1595_p6), %v1196_v45  ;;  %1199 = vst [vmem:[%s1159_s10 + $0x228] sm:$0xff] (%p1595_p6), %v1198_v46 }
 0x14c   : > { %v1390_v31 = vpack.c.bf16 %v1033_v29, %v1032_v24  ;;  %v1391_v32 = vpack.c.bf16 %v1035_v30, %v1034_v28 }
 0x14e   : > { %1146 = vst [vmem:[%s1809_s12 + $0x70] sm:$0xff] %v1390_v31  ;;  %1147 = vst [vmem:[%s1809_s12 + $0x78] sm:$0xff] %v1391_v32 }
 0x150   : > { %v1184_v38 = vld [vmem:[%s1809_s12 + $0x30] sm:$0xff] }
 0x151   : > { %v1186_v39 = vld [vmem:[%s1809_s12 + $0x38] sm:$0xff]  ;;  %1185 = vst [vmem:[%s1159_s10 + $0x30] sm:$0xff] %v1184_v38 }
 0x152   : > { %1187 = vst [vmem:[%s1159_s10 + $0x38] sm:$0xff] %v1186_v39 }
 0x155   : > { %v1200_v47 = vld [vmem:[%s1809_s12 + $0x70] sm:$0xff]  ;;  %v1202_v48 = vld [vmem:[%s1809_s12 + $0x78] sm:$0xff] }
 0x156   : > { %1201 = vst [vmem:[%s1159_s10 + $0x230] sm:$0xff] %v1200_v47  ;;  %1203 = vst [vmem:[%s1159_s10 + $0x238] sm:$0xff] %v1202_v48 }
 0x157 PF: > { %s13_s18 = sadd.s32 1, %s1524_s18   ;;  %s1900_s12 = smov %s1504_s13 }
 0x158   : > { %p10_p12 = scmp.ge.s32.totalorder %s13_s18, 18   ;;  %s1901_s13 = smov %s1603_s27 }
 0x159   : > { %s1902_s14 = smov %s1516_s16  ;;  %s1903_s15 = smov %s1520_s17 }
 0x15a   : > { %s1904_s16 = smov %s1907_s19  ;;  %s1905_s17 = smov %s1911_s20 }
 0x15b   :  { %12 = sbr.rel (!%p10_p12) target bundleno = 4 (0x4), region = 113 }

// kernel: run.5
= control target key start
LH: loop header
LB: loop body
LE: loop exit
PB: predicated region body
PF: predicated region fallthrough
CT: control target
= control target key end

     0   :  { %s2409_s12 = smov 0   ;;  %s2411_s13 = smov 0   ;;  %s3057_s0 = inlined_call_operand.vmem [shape: bf16[2,144,4096], index: 0, kind: input, shape index: {}]   ;;  %s3058_s1 = inlined_call_operand.vmem [shape: bf16[16,144], index: 1, kind: input, shape index: {}]   ;;  %s3059_s2 = inlined_call_operand.vmem [shape: f32[16,1], index: 2, kind: input, shape index: {}]   ;;  %s3060_s3 = inlined_call_operand.vmem [shape: bf16[2,16,4096], index: 3, kind: output, shape index: {}]  }
   0x1   :  { %s2413_s14 = smov 0   ;;  %s2415_s15 = smov 0  }
   0x2   :  { %s2417_s16 = smov 0   ;;  %s2419_s17 = smov 0  }
   0x3   :  { %s2421_s18 = smov 0  }
   0x4 LB: > { %s22_s19 = sadd.s32 1, %s2378_s16  ;;  %s25_s20 = sadd.s32 1, %s2382_s17  ;;  %s2386_s18 = sphi %s2421_s18, %s13_s18   ;;  %s2382_s17 = sphi %s2419_s17, %s3067_s17   ;;  %s2378_s16 = sphi %s2417_s16, %s3066_s16   ;;  %s2374_s15 = sphi %s2415_s15, %s3065_s15   ;;  %s2370_s14 = sphi %s2413_s14, %s3064_s14   ;;  %s2366_s13 = sphi %s2411_s13, %s3063_s13   ;;  %s2362_s12 = sphi %s2409_s12, %s3062_s12  }
   0x5   : > { %p23_p0 = scmp.ge.s32.totalorder %s22_s19, 2  ;;  %s2068_s21 = sadd.s32 4294967295, %s2386_s18  }
   0x6   : > { %p41_p1 = scmp.ne.s32.totalorder %s2366_s13, %s2362_s12  ;;  %p42_p2 = scmp.eq.s32.totalorder %s2386_s18, 0 }
   0x7   : > { %s3069_s19 = smov (%p23_p0, %s22_s19), 0  ;;  %s3071_s20 = smov (!%p23_p0, %s25_s20), %s2382_s17 }
   0x8   : > { %p27_p3 = scmp.ge.s32.totalorder %s3071_s20, 2  ;;  %p115_p4 = scmp.eq.s32.totalorder %s2068_s21, 3 }
   0x9   : > { %s30_s22 = ssub.s32 %s2378_s16, %s3069_s19  ;;  %p43_p5 = por %p42_p2, %p41_p1 }
   0xa   : > { %s3073_s20 = smov (%p27_p3, %s3071_s20), 0  ;;  %p2457_p6 = por %p115_p4, %p41_p1 }
   0xb   : > { %s29_s24 = ssub.s32 %s2382_s17, %s3073_s20  ;;  %s34_s26 = sadd.s32 1, %s2366_s13 }
   0xc   : > { %s31_s25 = sor.u32 %s30_s22, %s29_s24  ;;  %p2071_p8 = scmp.ge.s32.totalorder %s2386_s18, 4 }
   0xd   : > { %p32_p7 = scmp.eq.s32.totalorder %s31_s25, 0 }
   0xe   : > { %143 = sbr.rel (%p2071_p8) target bundleno = 101 (0x65), region = 24 }
   0xf   : > { %s2465_s27 = scalar_select %p32_p7, %s2366_s13, %s34_s26  }
  0x15   : > { %146 = sbr.rel (!%p43_p5) target bundleno = 101 (0x65), region = 28  ;;  %s148_s28 = sand.u32 (%p43_p5), 1, %s2366_s13  }
  0x16   : > { %s2268_s29 = smul.u32 (%p43_p5), 1152, %s148_s28  ;;  %s2072_s30 = sshll.u32 (%p43_p5), %s2378_s16, 4 }
  0x17   : > { %s2269_s4 = smul.u32 (%p43_p5), 576, %s2382_s17 }
  0x18   : > { %s2479_s10 = scalar_lea.vmem (%p43_p5), [#allocation2], %s2268_s29 }
  0x19   : > { %s153_s5 = sadd.s32 (%p43_p5), %s2269_s4, %s2072_s30 }
  0x1a   : > { %s2073_s6 = sshll.u32 (%p43_p5), %s153_s5, 2 }
  0x1b   : > { %s2474_s9 = scalar_lea.vmem (%p43_p5), %s3057_s0, %s2073_s6 }
  0x1c   : > { %v168_v0 = vld [vmem:[%s2474_s9] sm:$0xff]  ;;  %v170_v1 = vld [vmem:[%s2474_s9 + $0x8] sm:$0xff]  ;;  %v172_v2 = vld [vmem:[%s2474_s9 + $0x10] sm:$0xff] }
  0x1d   : > { %169 = vst [vmem:[%s2479_s10] sm:$0xff] %v168_v0  ;;  %171 = vst [vmem:[%s2479_s10 + $0x8] sm:$0xff] %v170_v1  ;;  %v174_v3 = vld [vmem:[%s2474_s9 + $0x18] sm:$0xff]  ;;  %v176_v4 = vld [vmem:[%s2474_s9 + $0x20] sm:$0xff] }
  0x1e   : > { %173 = vst [vmem:[%s2479_s10 + $0x10] sm:$0xff] %v172_v2  ;;  %v178_v5 = vld [vmem:[%s2474_s9 + $0x28] sm:$0xff]  ;;  %175 = vst [vmem:[%s2479_s10 + $0x18] sm:$0xff] %v174_v3  ;;  %v180_v6 = vld [vmem:[%s2474_s9 + $0x30] sm:$0xff] }
  0x1f   : > { %177 = vst [vmem:[%s2479_s10 + $0x20] sm:$0xff] %v176_v4  ;;  %179 = vst [vmem:[%s2479_s10 + $0x28] sm:$0xff] %v178_v5  ;;  %v182_v7 = vld [vmem:[%s2474_s9 + $0x38] sm:$0xff]  ;;  %v184_v8 = vld [vmem:[%s2474_s9 + $0x80] sm:$0xff] }
  0x20   : > { %181 = vst [vmem:[%s2479_s10 + $0x30] sm:$0xff] %v180_v6  ;;  %183 = vst [vmem:[%s2479_s10 + $0x38] sm:$0xff] %v182_v7  ;;  %v186_v9 = vld [vmem:[%s2474_s9 + $0x88] sm:$0xff]  ;;  %v188_v10 = vld [vmem:[%s2474_s9 + $0x90] sm:$0xff] }
  0x21   : > { %185 = vst [vmem:[%s2479_s10 + $0x40] sm:$0xff] %v184_v8  ;;  %v190_v11 = vld [vmem:[%s2474_s9 + $0x98] sm:$0xff]  ;;  %187 = vst [vmem:[%s2479_s10 + $0x48] sm:$0xff] %v186_v9  ;;  %v192_v12 = vld [vmem:[%s2474_s9 + $0xa0] sm:$0xff] }
  0x22   : > { %189 = vst [vmem:[%s2479_s10 + $0x50] sm:$0xff] %v188_v10  ;;  %191 = vst [vmem:[%s2479_s10 + $0x58] sm:$0xff] %v190_v11  ;;  %v194_v13 = vld [vmem:[%s2474_s9 + $0xa8] sm:$0xff]  ;;  %v196_v14 = vld [vmem:[%s2474_s9 + $0xb0] sm:$0xff] }
  0x23   : > { %193 = vst [vmem:[%s2479_s10 + $0x60] sm:$0xff] %v192_v12  ;;  %195 = vst [vmem:[%s2479_s10 + $0x68] sm:$0xff] %v194_v13  ;;  %v198_v15 = vld [vmem:[%s2474_s9 + $0xb8] sm:$0xff]  ;;  %v200_v16 = vld [vmem:[%s2474_s9 + $0x100] sm:$0xff] }
  0x24   : > { %197 = vst [vmem:[%s2479_s10 + $0x70] sm:$0xff] %v196_v14  ;;  %v202_v17 = vld [vmem:[%s2474_s9 + $0x108] sm:$0xff]  ;;  %199 = vst [vmem:[%s2479_s10 + $0x78] sm:$0xff] %v198_v15  ;;  %v204_v18 = vld [vmem:[%s2474_s9 + $0x110] sm:$0xff] }
  0x25   : > { %201 = vst [vmem:[%s2479_s10 + $0x80] sm:$0xff] %v200_v16  ;;  %203 = vst [vmem:[%s2479_s10 + $0x88] sm:$0xff] %v202_v17  ;;  %v206_v19 = vld [vmem:[%s2474_s9 + $0x118] sm:$0xff]  ;;  %v208_v20 = vld [vmem:[%s2474_s9 + $0x120] sm:$0xff] }
  0x26   : > { %205 = vst [vmem:[%s2479_s10 + $0x90] sm:$0xff] %v204_v18  ;;  %207 = vst [vmem:[%s2479_s10 + $0x98] sm:$0xff] %v206_v19  ;;  %v210_v21 = vld [vmem:[%s2474_s9 + $0x128] sm:$0xff]  ;;  %v212_v22 = vld [vmem:[%s2474_s9 + $0x130] sm:$0xff] }
  0x27   : > { %209 = vst [vmem:[%s2479_s10 + $0xa0] sm:$0xff] %v208_v20  ;;  %v214_v23 = vld [vmem:[%s2474_s9 + $0x138] sm:$0xff]  ;;  %211 = vst [vmem:[%s2479_s10 + $0xa8] sm:$0xff] %v210_v21  ;;  %v216_v24 = vld [vmem:[%s2474_s9 + $0x180] sm:$0xff] }
  0x28   : > { %213 = vst [vmem:[%s2479_s10 + $0xb0] sm:$0xff] %v212_v22  ;;  %215 = vst [vmem:[%s2479_s10 + $0xb8] sm:$0xff] %v214_v23  ;;  %v218_v25 = vld [vmem:[%s2474_s9 + $0x188] sm:$0xff]  ;;  %v220_v26 = vld [vmem:[%s2474_s9 + $0x190] sm:$0xff] }
  0x29   : > { %217 = vst [vmem:[%s2479_s10 + $0xc0] sm:$0xff] %v216_v24  ;;  %219 = vst [vmem:[%s2479_s10 + $0xc8] sm:$0xff] %v218_v25  ;;  %v222_v27 = vld [vmem:[%s2474_s9 + $0x198] sm:$0xff]  ;;  %v224_v28 = vld [vmem:[%s2474_s9 + $0x1a0] sm:$0xff] }
  0x2a   : > { %221 = vst [vmem:[%s2479_s10 + $0xd0] sm:$0xff] %v220_v26  ;;  %v226_v29 = vld [vmem:[%s2474_s9 + $0x1a8] sm:$0xff]  ;;  %223 = vst [vmem:[%s2479_s10 + $0xd8] sm:$0xff] %v222_v27  ;;  %v228_v30 = vld [vmem:[%s2474_s9 + $0x1b0] sm:$0xff] }
  0x2b   : > { %225 = vst [vmem:[%s2479_s10 + $0xe0] sm:$0xff] %v224_v28  ;;  %227 = vst [vmem:[%s2479_s10 + $0xe8] sm:$0xff] %v226_v29  ;;  %v230_v31 = vld [vmem:[%s2474_s9 + $0x1b8] sm:$0xff]  ;;  %v232_v32 = vld [vmem:[%s2474_s9 + $0x200] sm:$0xff] }
  0x2c   : > { %229 = vst [vmem:[%s2479_s10 + $0xf0] sm:$0xff] %v228_v30  ;;  %231 = vst [vmem:[%s2479_s10 + $0xf8] sm:$0xff] %v230_v31  ;;  %v234_v33 = vld [vmem:[%s2474_s9 + $0x208] sm:$0xff]  ;;  %v236_v34 = vld [vmem:[%s2474_s9 + $0x210] sm:$0xff] }
  0x2d   : > { %233 = vst [vmem:[%s2479_s10 + $0x100] sm:$0xff] %v232_v32  ;;  %v238_v35 = vld [vmem:[%s2474_s9 + $0x218] sm:$0xff]  ;;  %235 = vst [vmem:[%s2479_s10 + $0x108] sm:$0xff] %v234_v33  ;;  %v240_v36 = vld [vmem:[%s2474_s9 + $0x220] sm:$0xff] }
  0x2e   : > { %237 = vst [vmem:[%s2479_s10 + $0x110] sm:$0xff] %v236_v34  ;;  %239 = vst [vmem:[%s2479_s10 + $0x118] sm:$0xff] %v238_v35  ;;  %v242_v37 = vld [vmem:[%s2474_s9 + $0x228] sm:$0xff]  ;;  %v244_v38 = vld [vmem:[%s2474_s9 + $0x230] sm:$0xff] }
  0x2f   : > { %241 = vst [vmem:[%s2479_s10 + $0x120] sm:$0xff] %v240_v36  ;;  %243 = vst [vmem:[%s2479_s10 + $0x128] sm:$0xff] %v242_v37  ;;  %v246_v39 = vld [vmem:[%s2474_s9 + $0x238] sm:$0xff]  ;;  %v248_v40 = vld [vmem:[%s2474_s9 + $0x280] sm:$0xff] }
  0x30   : > { %245 = vst [vmem:[%s2479_s10 + $0x130] sm:$0xff] %v244_v38  ;;  %v250_v41 = vld [vmem:[%s2474_s9 + $0x288] sm:$0xff]  ;;  %247 = vst [vmem:[%s2479_s10 + $0x138] sm:$0xff] %v246_v39  ;;  %v252_v42 = vld [vmem:[%s2474_s9 + $0x290] sm:$0xff] }
  0x31   : > { %249 = vst [vmem:[%s2479_s10 + $0x140] sm:$0xff] %v248_v40  ;;  %251 = vst [vmem:[%s2479_s10 + $0x148] sm:$0xff] %v250_v41  ;;  %v254_v43 = vld [vmem:[%s2474_s9 + $0x298] sm:$0xff]  ;;  %v256_v44 = vld [vmem:[%s2474_s9 + $0x2a0] sm:$0xff] }
  0x32   : > { %253 = vst [vmem:[%s2479_s10 + $0x150] sm:$0xff] %v252_v42  ;;  %255 = vst [vmem:[%s2479_s10 + $0x158] sm:$0xff] %v254_v43  ;;  %v258_v45 = vld [vmem:[%s2474_s9 + $0x2a8] sm:$0xff]  ;;  %v260_v46 = vld [vmem:[%s2474_s9 + $0x2b0] sm:$0xff] }
  0x33   : > { %257 = vst [vmem:[%s2479_s10 + $0x160] sm:$0xff] %v256_v44  ;;  %v262_v47 = vld [vmem:[%s2474_s9 + $0x2b8] sm:$0xff]  ;;  %259 = vst [vmem:[%s2479_s10 + $0x168] sm:$0xff] %v258_v45  ;;  %v264_v48 = vld [vmem:[%s2474_s9 + $0x300] sm:$0xff] }
  0x34   : > { %261 = vst [vmem:[%s2479_s10 + $0x170] sm:$0xff] %v260_v46  ;;  %263 = vst [vmem:[%s2479_s10 + $0x178] sm:$0xff] %v262_v47  ;;  %v266_v49 = vld [vmem:[%s2474_s9 + $0x308] sm:$0xff]  ;;  %v268_v50 = vld [vmem:[%s2474_s9 + $0x310] sm:$0xff] }
  0x35   : > { %265 = vst [vmem:[%s2479_s10 + $0x180] sm:$0xff] %v264_v48  ;;  %267 = vst [vmem:[%s2479_s10 + $0x188] sm:$0xff] %v266_v49  ;;  %v270_v51 = vld [vmem:[%s2474_s9 + $0x318] sm:$0xff]  ;;  %v272_v52 = vld [vmem:[%s2474_s9 + $0x320] sm:$0xff] }
  0x36   : > { %269 = vst [vmem:[%s2479_s10 + $0x190] sm:$0xff] %v268_v50  ;;  %v274_v53 = vld [vmem:[%s2474_s9 + $0x328] sm:$0xff]  ;;  %271 = vst [vmem:[%s2479_s10 + $0x198] sm:$0xff] %v270_v51  ;;  %v276_v54 = vld [vmem:[%s2474_s9 + $0x330] sm:$0xff] }
  0x37   : > { %273 = vst [vmem:[%s2479_s10 + $0x1a0] sm:$0xff] %v272_v52  ;;  %275 = vst [vmem:[%s2479_s10 + $0x1a8] sm:$0xff] %v274_v53  ;;  %v278_v55 = vld [vmem:[%s2474_s9 + $0x338] sm:$0xff]  ;;  %v280_v56 = vld [vmem:[%s2474_s9 + $0x380] sm:$0xff] }
  0x38   : > { %277 = vst [vmem:[%s2479_s10 + $0x1b0] sm:$0xff] %v276_v54  ;;  %279 = vst [vmem:[%s2479_s10 + $0x1b8] sm:$0xff] %v278_v55  ;;  %v282_v57 = vld [vmem:[%s2474_s9 + $0x388] sm:$0xff]  ;;  %v284_v58 = vld [vmem:[%s2474_s9 + $0x390] sm:$0xff] }
  0x39   : > { %281 = vst [vmem:[%s2479_s10 + $0x1c0] sm:$0xff] %v280_v56  ;;  %v286_v59 = vld [vmem:[%s2474_s9 + $0x398] sm:$0xff]  ;;  %283 = vst [vmem:[%s2479_s10 + $0x1c8] sm:$0xff] %v282_v57  ;;  %v288_v60 = vld [vmem:[%s2474_s9 + $0x3a0] sm:$0xff] }
  0x3a   : > { %285 = vst [vmem:[%s2479_s10 + $0x1d0] sm:$0xff] %v284_v58  ;;  %287 = vst [vmem:[%s2479_s10 + $0x1d8] sm:$0xff] %v286_v59  ;;  %v290_v61 = vld [vmem:[%s2474_s9 + $0x3a8] sm:$0xff]  ;;  %v292_v62 = vld [vmem:[%s2474_s9 + $0x3b0] sm:$0xff] }
  0x3b   : > { %289 = vst [vmem:[%s2479_s10 + $0x1e0] sm:$0xff] %v288_v60  ;;  %291 = vst [vmem:[%s2479_s10 + $0x1e8] sm:$0xff] %v290_v61  ;;  %v294_v63 = vld [vmem:[%s2474_s9 + $0x3b8] sm:$0xff]  ;;  %v296_v0 = vld [vmem:[%s2474_s9 + $0x400] sm:$0xff] }
  0x3c   : > { %293 = vst [vmem:[%s2479_s10 + $0x1f0] sm:$0xff] %v292_v62  ;;  %v298_v1 = vld [vmem:[%s2474_s9 + $0x408] sm:$0xff]  ;;  %295 = vst [vmem:[%s2479_s10 + $0x1f8] sm:$0xff] %v294_v63  ;;  %v300_v2 = vld [vmem:[%s2474_s9 + $0x410] sm:$0xff] }
  0x3d   : > { %297 = vst [vmem:[%s2479_s10 + $0x200] sm:$0xff] %v296_v0  ;;  %299 = vst [vmem:[%s2479_s10 + $0x208] sm:$0xff] %v298_v1  ;;  %v302_v3 = vld [vmem:[%s2474_s9 + $0x418] sm:$0xff]  ;;  %v304_v4 = vld [vmem:[%s2474_s9 + $0x420] sm:$0xff] }
  0x3e   : > { %301 = vst [vmem:[%s2479_s10 + $0x210] sm:$0xff] %v300_v2  ;;  %303 = vst [vmem:[%s2479_s10 + $0x218] sm:$0xff] %v302_v3  ;;  %v306_v5 = vld [vmem:[%s2474_s9 + $0x428] sm:$0xff]  ;;  %v308_v6 = vld [vmem:[%s2474_s9 + $0x430] sm:$0xff] }
  0x3f   : > { %305 = vst [vmem:[%s2479_s10 + $0x220] sm:$0xff] %v304_v4  ;;  %v310_v7 = vld [vmem:[%s2474_s9 + $0x438] sm:$0xff]  ;;  %307 = vst [vmem:[%s2479_s10 + $0x228] sm:$0xff] %v306_v5  ;;  %v312_v8 = vld [vmem:[%s2474_s9 + $0x480] sm:$0xff] }
  0x40   : > { %309 = vst [vmem:[%s2479_s10 + $0x230] sm:$0xff] %v308_v6  ;;  %311 = vst [vmem:[%s2479_s10 + $0x238] sm:$0xff] %v310_v7  ;;  %v314_v9 = vld [vmem:[%s2474_s9 + $0x488] sm:$0xff]  ;;  %v316_v10 = vld [vmem:[%s2474_s9 + $0x490] sm:$0xff] }
  0x41   : > { %313 = vst [vmem:[%s2479_s10 + $0x240] sm:$0xff] %v312_v8  ;;  %315 = vst [vmem:[%s2479_s10 + $0x248] sm:$0xff] %v314_v9  ;;  %v318_v11 = vld [vmem:[%s2474_s9 + $0x498] sm:$0xff]  ;;  %v320_v12 = vld [vmem:[%s2474_s9 + $0x4a0] sm:$0xff] }
  0x42   : > { %317 = vst [vmem:[%s2479_s10 + $0x250] sm:$0xff] %v316_v10  ;;  %v322_v13 = vld [vmem:[%s2474_s9 + $0x4a8] sm:$0xff]  ;;  %319 = vst [vmem:[%s2479_s10 + $0x258] sm:$0xff] %v318_v11  ;;  %v324_v14 = vld [vmem:[%s2474_s9 + $0x4b0] sm:$0xff] }
  0x43   : > { %321 = vst [vmem:[%s2479_s10 + $0x260] sm:$0xff] %v320_v12  ;;  %323 = vst [vmem:[%s2479_s10 + $0x268] sm:$0xff] %v322_v13  ;;  %v326_v15 = vld [vmem:[%s2474_s9 + $0x4b8] sm:$0xff]  ;;  %v328_v16 = vld [vmem:[%s2474_s9 + $0x500] sm:$0xff] }
  0x44   : > { %325 = vst [vmem:[%s2479_s10 + $0x270] sm:$0xff] %v324_v14  ;;  %327 = vst [vmem:[%s2479_s10 + $0x278] sm:$0xff] %v326_v15  ;;  %v330_v17 = vld [vmem:[%s2474_s9 + $0x508] sm:$0xff]  ;;  %v332_v18 = vld [vmem:[%s2474_s9 + $0x510] sm:$0xff] }
  0x45   : > { %329 = vst [vmem:[%s2479_s10 + $0x280] sm:$0xff] %v328_v16  ;;  %v334_v19 = vld [vmem:[%s2474_s9 + $0x518] sm:$0xff]  ;;  %331 = vst [vmem:[%s2479_s10 + $0x288] sm:$0xff] %v330_v17  ;;  %v336_v20 = vld [vmem:[%s2474_s9 + $0x520] sm:$0xff] }
  0x46   : > { %333 = vst [vmem:[%s2479_s10 + $0x290] sm:$0xff] %v332_v18  ;;  %335 = vst [vmem:[%s2479_s10 + $0x298] sm:$0xff] %v334_v19  ;;  %v338_v21 = vld [vmem:[%s2474_s9 + $0x528] sm:$0xff]  ;;  %v340_v22 = vld [vmem:[%s2474_s9 + $0x530] sm:$0xff] }
  0x47   : > { %337 = vst [vmem:[%s2479_s10 + $0x2a0] sm:$0xff] %v336_v20  ;;  %339 = vst [vmem:[%s2479_s10 + $0x2a8] sm:$0xff] %v338_v21  ;;  %v342_v23 = vld [vmem:[%s2474_s9 + $0x538] sm:$0xff]  ;;  %v344_v24 = vld [vmem:[%s2474_s9 + $0x580] sm:$0xff] }
  0x48   : > { %341 = vst [vmem:[%s2479_s10 + $0x2b0] sm:$0xff] %v340_v22  ;;  %v346_v25 = vld [vmem:[%s2474_s9 + $0x588] sm:$0xff]  ;;  %343 = vst [vmem:[%s2479_s10 + $0x2b8] sm:$0xff] %v342_v23  ;;  %v348_v26 = vld [vmem:[%s2474_s9 + $0x590] sm:$0xff] }
  0x49   : > { %345 = vst [vmem:[%s2479_s10 + $0x2c0] sm:$0xff] %v344_v24  ;;  %347 = vst [vmem:[%s2479_s10 + $0x2c8] sm:$0xff] %v346_v25  ;;  %v350_v27 = vld [vmem:[%s2474_s9 + $0x598] sm:$0xff]  ;;  %v352_v28 = vld [vmem:[%s2474_s9 + $0x5a0] sm:$0xff] }
  0x4a   : > { %349 = vst [vmem:[%s2479_s10 + $0x2d0] sm:$0xff] %v348_v26  ;;  %351 = vst [vmem:[%s2479_s10 + $0x2d8] sm:$0xff] %v350_v27  ;;  %v354_v29 = vld [vmem:[%s2474_s9 + $0x5a8] sm:$0xff]  ;;  %v356_v30 = vld [vmem:[%s2474_s9 + $0x5b0] sm:$0xff] }
  0x4b   : > { %353 = vst [vmem:[%s2479_s10 + $0x2e0] sm:$0xff] %v352_v28  ;;  %v358_v31 = vld [vmem:[%s2474_s9 + $0x5b8] sm:$0xff]  ;;  %355 = vst [vmem:[%s2479_s10 + $0x2e8] sm:$0xff] %v354_v29  ;;  %v360_v32 = vld [vmem:[%s2474_s9 + $0x600] sm:$0xff] }
  0x4c   : > { %357 = vst [vmem:[%s2479_s10 + $0x2f0] sm:$0xff] %v356_v30  ;;  %359 = vst [vmem:[%s2479_s10 + $0x2f8] sm:$0xff] %v358_v31  ;;  %v362_v33 = vld [vmem:[%s2474_s9 + $0x608] sm:$0xff]  ;;  %v364_v34 = vld [vmem:[%s2474_s9 + $0x610] sm:$0xff] }
  0x4d   : > { %361 = vst [vmem:[%s2479_s10 + $0x300] sm:$0xff] %v360_v32  ;;  %363 = vst [vmem:[%s2479_s10 + $0x308] sm:$0xff] %v362_v33  ;;  %v366_v35 = vld [vmem:[%s2474_s9 + $0x618] sm:$0xff]  ;;  %v368_v36 = vld [vmem:[%s2474_s9 + $0x620] sm:$0xff] }
  0x4e   : > { %365 = vst [vmem:[%s2479_s10 + $0x310] sm:$0xff] %v364_v34  ;;  %v370_v37 = vld [vmem:[%s2474_s9 + $0x628] sm:$0xff]  ;;  %367 = vst [vmem:[%s2479_s10 + $0x318] sm:$0xff] %v366_v35  ;;  %v372_v38 = vld [vmem:[%s2474_s9 + $0x630] sm:$0xff] }
  0x4f   : > { %369 = vst [vmem:[%s2479_s10 + $0x320] sm:$0xff] %v368_v36  ;;  %371 = vst [vmem:[%s2479_s10 + $0x328] sm:$0xff] %v370_v37  ;;  %v374_v39 = vld [vmem:[%s2474_s9 + $0x638] sm:$0xff]  ;;  %v376_v40 = vld [vmem:[%s2474_s9 + $0x680] sm:$0xff] }
  0x50   : > { %373 = vst [vmem:[%s2479_s10 + $0x330] sm:$0xff] %v372_v38  ;;  %375 = vst [vmem:[%s2479_s10 + $0x338] sm:$0xff] %v374_v39  ;;  %v378_v41 = vld [vmem:[%s2474_s9 + $0x688] sm:$0xff]  ;;  %v380_v42 = vld [vmem:[%s2474_s9 + $0x690] sm:$0xff] }
  0x51   : > { %377 = vst [vmem:[%s2479_s10 + $0x340] sm:$0xff] %v376_v40  ;;  %v382_v43 = vld [vmem:[%s2474_s9 + $0x698] sm:$0xff]  ;;  %379 = vst [vmem:[%s2479_s10 + $0x348] sm:$0xff] %v378_v41  ;;  %v384_v44 = vld [vmem:[%s2474_s9 + $0x6a0] sm:$0xff] }
  0x52   : > { %381 = vst [vmem:[%s2479_s10 + $0x350] sm:$0xff] %v380_v42  ;;  %383 = vst [vmem:[%s2479_s10 + $0x358] sm:$0xff] %v382_v43  ;;  %v386_v45 = vld [vmem:[%s2474_s9 + $0x6a8] sm:$0xff]  ;;  %v388_v46 = vld [vmem:[%s2474_s9 + $0x6b0] sm:$0xff] }
  0x53   : > { %385 = vst [vmem:[%s2479_s10 + $0x360] sm:$0xff] %v384_v44  ;;  %387 = vst [vmem:[%s2479_s10 + $0x368] sm:$0xff] %v386_v45  ;;  %v390_v47 = vld [vmem:[%s2474_s9 + $0x6b8] sm:$0xff]  ;;  %v392_v48 = vld [vmem:[%s2474_s9 + $0x700] sm:$0xff] }
  0x54   : > { %389 = vst [vmem:[%s2479_s10 + $0x370] sm:$0xff] %v388_v46  ;;  %v394_v49 = vld [vmem:[%s2474_s9 + $0x708] sm:$0xff]  ;;  %391 = vst [vmem:[%s2479_s10 + $0x378] sm:$0xff] %v390_v47  ;;  %v396_v50 = vld [vmem:[%s2474_s9 + $0x710] sm:$0xff] }
  0x55   : > { %393 = vst [vmem:[%s2479_s10 + $0x380] sm:$0xff] %v392_v48  ;;  %395 = vst [vmem:[%s2479_s10 + $0x388] sm:$0xff] %v394_v49  ;;  %v398_v51 = vld [vmem:[%s2474_s9 + $0x718] sm:$0xff]  ;;  %v400_v52 = vld [vmem:[%s2474_s9 + $0x720] sm:$0xff] }
  0x56   : > { %397 = vst [vmem:[%s2479_s10 + $0x390] sm:$0xff] %v396_v50  ;;  %399 = vst [vmem:[%s2479_s10 + $0x398] sm:$0xff] %v398_v51  ;;  %v402_v53 = vld [vmem:[%s2474_s9 + $0x728] sm:$0xff]  ;;  %v404_v54 = vld [vmem:[%s2474_s9 + $0x730] sm:$0xff] }
  0x57   : > { %401 = vst [vmem:[%s2479_s10 + $0x3a0] sm:$0xff] %v400_v52  ;;  %v406_v55 = vld [vmem:[%s2474_s9 + $0x738] sm:$0xff]  ;;  %403 = vst [vmem:[%s2479_s10 + $0x3a8] sm:$0xff] %v402_v53  ;;  %v408_v56 = vld [vmem:[%s2474_s9 + $0x780] sm:$0xff] }
  0x58   : > { %405 = vst [vmem:[%s2479_s10 + $0x3b0] sm:$0xff] %v404_v54  ;;  %407 = vst [vmem:[%s2479_s10 + $0x3b8] sm:$0xff] %v406_v55  ;;  %v410_v57 = vld [vmem:[%s2474_s9 + $0x788] sm:$0xff]  ;;  %v412_v58 = vld [vmem:[%s2474_s9 + $0x790] sm:$0xff] }
  0x59   : > { %409 = vst [vmem:[%s2479_s10 + $0x3c0] sm:$0xff] %v408_v56  ;;  %411 = vst [vmem:[%s2479_s10 + $0x3c8] sm:$0xff] %v410_v57  ;;  %v414_v59 = vld [vmem:[%s2474_s9 + $0x798] sm:$0xff]  ;;  %v416_v60 = vld [vmem:[%s2474_s9 + $0x7a0] sm:$0xff] }
  0x5a   : > { %413 = vst [vmem:[%s2479_s10 + $0x3d0] sm:$0xff] %v412_v58  ;;  %v418_v61 = vld [vmem:[%s2474_s9 + $0x7a8] sm:$0xff]  ;;  %415 = vst [vmem:[%s2479_s10 + $0x3d8] sm:$0xff] %v414_v59  ;;  %v420_v62 = vld [vmem:[%s2474_s9 + $0x7b0] sm:$0xff] }
  0x5b   : > { %417 = vst [vmem:[%s2479_s10 + $0x3e0] sm:$0xff] %v416_v60  ;;  %419 = vst [vmem:[%s2479_s10 + $0x3e8] sm:$0xff] %v418_v61  ;;  %v422_v63 = vld [vmem:[%s2474_s9 + $0x7b8] sm:$0xff]  ;;  %v424_v0 = vld [vmem:[%s2474_s9 + $0x800] sm:$0xff] }
  0x5c   : > { %421 = vst [vmem:[%s2479_s10 + $0x3f0] sm:$0xff] %v420_v62  ;;  %423 = vst [vmem:[%s2479_s10 + $0x3f8] sm:$0xff] %v422_v63  ;;  %v426_v1 = vld [vmem:[%s2474_s9 + $0x808] sm:$0xff]  ;;  %v428_v2 = vld [vmem:[%s2474_s9 + $0x810] sm:$0xff] }
  0x5d   : > { %425 = vst [vmem:[%s2479_s10 + $0x400] sm:$0xff] %v424_v0  ;;  %v430_v3 = vld [vmem:[%s2474_s9 + $0x818] sm:$0xff]  ;;  %427 = vst [vmem:[%s2479_s10 + $0x408] sm:$0xff] %v426_v1  ;;  %v432_v4 = vld [vmem:[%s2474_s9 + $0x820] sm:$0xff] }
  0x5e   : > { %429 = vst [vmem:[%s2479_s10 + $0x410] sm:$0xff] %v428_v2  ;;  %431 = vst [vmem:[%s2479_s10 + $0x418] sm:$0xff] %v430_v3  ;;  %v434_v5 = vld [vmem:[%s2474_s9 + $0x828] sm:$0xff]  ;;  %v436_v6 = vld [vmem:[%s2474_s9 + $0x830] sm:$0xff] }
  0x5f   : > { %433 = vst [vmem:[%s2479_s10 + $0x420] sm:$0xff] %v432_v4  ;;  %435 = vst [vmem:[%s2479_s10 + $0x428] sm:$0xff] %v434_v5  ;;  %v438_v7 = vld [vmem:[%s2474_s9 + $0x838] sm:$0xff]  ;;  %v440_v8 = vld [vmem:[%s2474_s9 + $0x880] sm:$0xff] }
  0x60   : > { %437 = vst [vmem:[%s2479_s10 + $0x430] sm:$0xff] %v436_v6  ;;  %v442_v9 = vld [vmem:[%s2474_s9 + $0x888] sm:$0xff]  ;;  %439 = vst [vmem:[%s2479_s10 + $0x438] sm:$0xff] %v438_v7  ;;  %v444_v10 = vld [vmem:[%s2474_s9 + $0x890] sm:$0xff] }
  0x61   : > { %441 = vst [vmem:[%s2479_s10 + $0x440] sm:$0xff] %v440_v8  ;;  %443 = vst [vmem:[%s2479_s10 + $0x448] sm:$0xff] %v442_v9  ;;  %v446_v11 = vld [vmem:[%s2474_s9 + $0x898] sm:$0xff]  ;;  %v448_v12 = vld [vmem:[%s2474_s9 + $0x8a0] sm:$0xff] }
  0x62   : > { %445 = vst [vmem:[%s2479_s10 + $0x450] sm:$0xff] %v444_v10  ;;  %447 = vst [vmem:[%s2479_s10 + $0x458] sm:$0xff] %v446_v11  ;;  %v450_v13 = vld [vmem:[%s2474_s9 + $0x8a8] sm:$0xff]  ;;  %v452_v14 = vld [vmem:[%s2474_s9 + $0x8b0] sm:$0xff] }
  0x63   : > { %449 = vst [vmem:[%s2479_s10 + $0x460] sm:$0xff] %v448_v12  ;;  %v454_v15 = vld [vmem:[%s2474_s9 + $0x8b8] sm:$0xff]  ;;  %451 = vst [vmem:[%s2479_s10 + $0x468] sm:$0xff] %v450_v13 }
  0x64   : > { %453 = vst [vmem:[%s2479_s10 + $0x470] sm:$0xff] %v452_v14  ;;  %455 = vst [vmem:[%s2479_s10 + $0x478] sm:$0xff] %v454_v15 }
  0x65 PF: > { %p2074_p9 = scmp.ge.s32.totalorder %s2386_s18, 1  ;;  %p460_p10 = scmp.lt.s32.totalorder %s2386_s18, 5 }
  0x67   : > { %p461_p11 = pnand %p2074_p9, %p460_p10 }
  0x68   : > { %s467_s11 = sand.u32 (!%p461_p11), 1, %s2362_s12   ;;  %v2772_v16 = vld [vmem:[%s3058_s1 + $0x4] ss:$8 sps:$4 sm:$0xff] (!%p461_p11)   ;;  %vm1379_vm0 = vcmask (!%p461_p11), 130048   ;;  %v2388_v18 = vmov (!%p461_p11), 0  }
  0x69   : > { %464 = sbr.rel (%p461_p11) target bundleno = 491 (0x1eb), region = 51  ;;  %v638_v17 = vld [vmem:[%s3059_s2] sm:$0xff] (!%p461_p11)  ;;  %2222 = vmatprep.mubr.msk.bf16.mxu0 (!%p461_p11), %vm1379_vm0, %v2772_v16  ;;  %2223 = vmatprep.mubr.msk.bf16.mxu1 (!%p461_p11), %vm1379_vm0, %v2772_v16  ;;  %v639_v38 = vld [vmem:[%s3059_s2 + $0x8] sm:$0xff] (!%p461_p11)  ;;  %s2075_s6 = sshll.u32 (!%p461_p11), %s467_s11, 7 }
  0x6a   : > { %s2270_s24 = smul.u32 (!%p461_p11), 1152, %s467_s11  ;;  %2328 = vset.pattern.permute.xlu0 (!%p461_p11), %v2388_v18  ;;  %s2971_s12 = scalar_lea.vmem (!%p461_p11), [#allocation3], %s2075_s6 }
  0x6b   : > { %642 = vperm.xlu0 (!%p461_p11), %2328, %v638_v17  }
  0x6c   : > { %s2783_s28 = scalar_lea.vmem (!%p461_p11), [#allocation2], %s2270_s24 }
  0x6d   : > { %v494_v19 = vld [vmem:[%s2783_s28] sm:$0xff] (!%p461_p11)  ;;  %v495_v21 = vld [vmem:[%s2783_s28 + $0x8] sm:$0xff] (!%p461_p11) }
  0x6e   : > { %v502_v20 = vld [vmem:[%s2783_s28 + $0x40] sm:$0xff] (!%p461_p11)  ;;  %v503_v23 = vld [vmem:[%s2783_s28 + $0x48] sm:$0xff] (!%p461_p11) }
  0x6f   : > { %v2079_v22 = vcombine.high (!%p461_p11), %v494_v19, %v502_v20  ;;  %v2078_v24 = vcombine.low (!%p461_p11), %v494_v19, %v502_v20  ;;  %v510_v25 = vld [vmem:[%s2783_s28 + $0x80] sm:$0xff] (!%p461_p11)  ;;  %v2081_v27 = vcombine.high (!%p461_p11), %v495_v21, %v503_v23  ;;  %v2080_v28 = vcombine.low (!%p461_p11), %v495_v21, %v503_v23  ;;  %v511_v30 = vld [vmem:[%s2783_s28 + $0x88] sm:$0xff] (!%p461_p11)  ;;  %647 = vperm.xlu0 (!%p461_p11), %2328, %v639_v38   ;;  %v513_v38 = vld [vmem:[%s2783_s28 + $0x98] sm:$0xff] (!%p461_p11) }
  0x70   : > { %v518_v26 = vld [vmem:[%s2783_s28 + $0xc0] sm:$0xff]  ;;  %v519_v31 = vld [vmem:[%s2783_s28 + $0xc8] sm:$0xff]  ;;  %s2247_s7 = sshll.u32 (%p2457_p6), %s2370_s14, 4  ;;  %s2248_s8 = sshll.u32 (%p2457_p6), %s2374_s15, 6 }
  0x71   : > { %v2095_v29 = vcombine.high %v510_v25, %v518_v26  ;;  %v526_v32 = vld [vmem:[%s2783_s28 + $0x100] sm:$0xff]  ;;  %1383 = vmatprep.subr.bf16.mxu0 %v2079_v22  ;;  %v2097_v33 = vcombine.high %v511_v30, %v519_v31  ;;  %v527_v35 = vld [vmem:[%s2783_s28 + $0x108] sm:$0xff]  ;;  %1426 = vmatprep.subr.bf16.mxu1 %v2081_v27  ;;  %v2094_v37 = vcombine.low %v510_v25, %v518_v26  ;;  %v496_v27 = vld [vmem:[%s2783_s28 + $0x10] sm:$0xff]  ;;  %s1944_s23 = sadd.s32 (%p2457_p6), %s2248_s8, %s2247_s7 }
  0x72   : > { %v534_v34 = vld [vmem:[%s2783_s28 + $0x140] sm:$0xff]  ;;  %v535_v36 = vld [vmem:[%s2783_s28 + $0x148] sm:$0xff]  ;;  %1384 = vmatpush1.bf16.msra.mxu0 %v2078_v24  ;;  %1427 = vmatpush1.bf16.msra.mxu1 %v2080_v28  ;;  %v2096_v39 = vcombine.low %v511_v30, %v519_v31  ;;  %v504_v28 = vld [vmem:[%s2783_s28 + $0x50] sm:$0xff]  ;;  %s2249_s9 = sshll.u32 (%p2457_p6), %s1944_s23, 2 }
  0x73   : > { %1385 = vmatprep.subr.bf16.mxu0 %v2095_v29  ;;  %v2111_v40 = vcombine.high %v526_v32, %v534_v34  ;;  %1428 = vmatprep.subr.bf16.mxu1 %v2097_v33  ;;  %v2113_v41 = vcombine.high %v527_v35, %v535_v36  ;;  %v542_v42 = vld [vmem:[%s2783_s28 + $0x180] sm:$0xff]  ;;  %v543_v44 = vld [vmem:[%s2783_s28 + $0x188] sm:$0xff]  ;;  %v2110_v46 = vcombine.low %v526_v32, %v534_v34  ;;  %v497_v29 = vld [vmem:[%s2783_s28 + $0x18] sm:$0xff]  ;;  %s1946_s21 = scalar_lea.vmem (%p2457_p6), %s3060_s3, %s2249_s9 }
  0x74   : > { %v550_v43 = vld [vmem:[%s2783_s28 + $0x1c0] sm:$0xff]  ;;  %v551_v45 = vld [vmem:[%s2783_s28 + $0x1c8] sm:$0xff]  ;;  %v2112_v47 = vcombine.low %v527_v35, %v535_v36  ;;  %v505_v30 = vld [vmem:[%s2783_s28 + $0x58] sm:$0xff]  ;;  %v2083_v33 = vcombine.high %v496_v27, %v504_v28 }
  0x75   : > { %v2127_v48 = vcombine.high %v542_v42, %v550_v43  ;;  %v2129_v49 = vcombine.high %v543_v44, %v551_v45  ;;  %v558_v50 = vld [vmem:[%s2783_s28 + $0x200] sm:$0xff]  ;;  %v559_v52 = vld [vmem:[%s2783_s28 + $0x208] sm:$0xff]  ;;  %v2126_v54 = vcombine.low %v542_v42, %v550_v43  ;;  %v2128_v55 = vcombine.low %v543_v44, %v551_v45  ;;  %v512_v35 = vld [vmem:[%s2783_s28 + $0x90] sm:$0xff] }
  0x76   : > { %1386 = vmatpush1.bf16.msra.mxu0 %v2094_v37  ;;  %1429 = vmatpush1.bf16.msra.mxu1 %v2096_v39  ;;  %v566_v51 = vld [vmem:[%s2783_s28 + $0x240] sm:$0xff]  ;;  %v567_v53 = vld [vmem:[%s2783_s28 + $0x248] sm:$0xff]  ;;  %v2085_v34 = vcombine.high %v497_v29, %v505_v30  ;;  %v520_v36 = vld [vmem:[%s2783_s28 + $0xd0] sm:$0xff] }
  0x77   : > { %1387 = vmatprep.subr.bf16.mxu0 %v2111_v40  ;;  %1430 = vmatprep.subr.bf16.mxu1 %v2113_v41  ;;  %v2143_v56 = vcombine.high %v558_v50, %v566_v51  ;;  %v2145_v57 = vcombine.high %v559_v52, %v567_v53  ;;  %v574_v58 = vld [vmem:[%s2783_s28 + $0x280] sm:$0xff]  ;;  %v575_v60 = vld [vmem:[%s2783_s28 + $0x288] sm:$0xff]  ;;  %v2142_v62 = vcombine.low %v558_v50, %v566_v51  ;;  %v521_v39 = vld [vmem:[%s2783_s28 + $0xd8] sm:$0xff] }
  0x78   : > { %v582_v59 = vld [vmem:[%s2783_s28 + $0x2c0] sm:$0xff]  ;;  %v583_v61 = vld [vmem:[%s2783_s28 + $0x2c8] sm:$0xff]  ;;  %v2144_v63 = vcombine.low %v559_v52, %v567_v53  ;;  %v2082_v40 = vcombine.low %v496_v27, %v504_v28  ;;  %v2084_v41 = vcombine.low %v497_v29, %v505_v30  ;;  %v2099_v42 = vcombine.high %v512_v35, %v520_v36  ;;  %v528_v44 = vld [vmem:[%s2783_s28 + $0x110] sm:$0xff] }
  0x79   : > { %v2159_v0 = vcombine.high %v574_v58, %v582_v59  ;;  %v2161_v1 = vcombine.high %v575_v60, %v583_v61  ;;  %v590_v2 = vld [vmem:[%s2783_s28 + $0x300] sm:$0xff]  ;;  %v591_v4 = vld [vmem:[%s2783_s28 + $0x308] sm:$0xff]  ;;  %v2158_v6 = vcombine.low %v574_v58, %v582_v59  ;;  %v2160_v7 = vcombine.low %v575_v60, %v583_v61  ;;  %v536_v45 = vld [vmem:[%s2783_s28 + $0x150] sm:$0xff] }
  0x7a   : > { %1388 = vmatpush1.bf16.msra.mxu0 %v2110_v46  ;;  %1431 = vmatpush1.bf16.msra.mxu1 %v2112_v47  ;;  %v598_v3 = vld [vmem:[%s2783_s28 + $0x340] sm:$0xff]  ;;  %v599_v5 = vld [vmem:[%s2783_s28 + $0x348] sm:$0xff]  ;;  %v2101_v43 = vcombine.high %v513_v38, %v521_v39  ;;  %v529_v46 = vld [vmem:[%s2783_s28 + $0x118] sm:$0xff]  ;;  %v2115_v50 = vcombine.high %v528_v44, %v536_v45 }
  0x7b   : > { %1389 = vmatprep.subr.bf16.mxu0 %v2127_v48  ;;  %1432 = vmatprep.subr.bf16.mxu1 %v2129_v49  ;;  %v2175_v8 = vcombine.high %v590_v2, %v598_v3  ;;  %v2177_v9 = vcombine.high %v591_v4, %v599_v5  ;;  %v606_v10 = vld [vmem:[%s2783_s28 + $0x380] sm:$0xff]  ;;  %v607_v12 = vld [vmem:[%s2783_s28 + $0x388] sm:$0xff]  ;;  %v2174_v14 = vcombine.low %v590_v2, %v598_v3  ;;  %v537_v47 = vld [vmem:[%s2783_s28 + $0x158] sm:$0xff] }
  0x7c   : > { %v614_v11 = vld [vmem:[%s2783_s28 + $0x3c0] sm:$0xff]  ;;  %v615_v13 = vld [vmem:[%s2783_s28 + $0x3c8] sm:$0xff]  ;;  %v2176_v15 = vcombine.low %v591_v4, %v599_v5  ;;  %v2098_v48 = vcombine.low %v512_v35, %v520_v36  ;;  %v2100_v49 = vcombine.low %v513_v38, %v521_v39  ;;  %v2117_v51 = vcombine.high %v529_v46, %v537_v47  ;;  %v544_v52 = vld [vmem:[%s2783_s28 + $0x190] sm:$0xff] }
  0x7d   : > { %v2191_v17 = vcombine.high %v606_v10, %v614_v11  ;;  %v2193_v18 = vcombine.high %v607_v12, %v615_v13  ;;  %v622_v19 = vld [vmem:[%s2783_s28 + $0x400] sm:$0xff]  ;;  %v623_v21 = vld [vmem:[%s2783_s28 + $0x408] sm:$0xff]  ;;  %v2190_v23 = vcombine.low %v606_v10, %v614_v11  ;;  %v2192_v24 = vcombine.low %v607_v12, %v615_v13  ;;  %v552_v53 = vld [vmem:[%s2783_s28 + $0x1d0] sm:$0xff] }
  0x7e   : > { %1390 = vmatpush1.bf16.msra.mxu0 %v2126_v54  ;;  %1433 = vmatpush1.bf16.msra.mxu1 %v2128_v55  ;;  %v630_v20 = vld [vmem:[%s2783_s28 + $0x440] sm:$0xff]  ;;  %v631_v22 = vld [vmem:[%s2783_s28 + $0x448] sm:$0xff]  ;;  %v545_v54 = vld [vmem:[%s2783_s28 + $0x198] sm:$0xff]  ;;  %v2131_v58 = vcombine.high %v544_v52, %v552_v53 }
  0x7f   : > { %1391 = vmatprep.subr.bf16.mxu0 %v2143_v56  ;;  %1434 = vmatprep.subr.bf16.mxu1 %v2145_v57  ;;  %v2207_v25 = vcombine.high %v622_v19, %v630_v20  ;;  %v2209_v26 = vcombine.high %v623_v21, %v631_v22  ;;  %v2206_v31 = vcombine.low %v622_v19, %v630_v20  ;;  %v2833_v37 = vld [vmem:[%s3058_s1] ss:$8 sps:$4 sm:$0xff]   ;;  %v553_v55 = vld [vmem:[%s2783_s28 + $0x1d8] sm:$0xff]  ;;  %v560_v60 = vld [vmem:[%s2783_s28 + $0x210] sm:$0xff] }
  0x80   : > { %v2208_v32 = vcombine.low %v623_v21, %v631_v22  ;;  %v2114_v56 = vcombine.low %v528_v44, %v536_v45  ;;  %v2116_v57 = vcombine.low %v529_v46, %v537_v47  ;;  %v2133_v59 = vcombine.high %v545_v54, %v553_v55  ;;  %v568_v61 = vld [vmem:[%s2783_s28 + $0x250] sm:$0xff]  ;;  %v498_v38 = vld [vmem:[%s2783_s28 + $0x20] sm:$0xff] }
  0x81   : > { %v2147_v2 = vcombine.high %v560_v60, %v568_v61  ;;  %v576_v4 = vld [vmem:[%s2783_s28 + $0x290] sm:$0xff]  ;;  %v506_v39 = vld [vmem:[%s2783_s28 + $0x60] sm:$0xff] }
  0x82   : > { %1392 = vmatpush1.bf16.msra.mxu0 %v2142_v62  ;;  %1435 = vmatpush1.bf16.msra.mxu1 %v2144_v63  ;;  %v561_v62 = vld [vmem:[%s2783_s28 + $0x218] sm:$0xff]  ;;  %v584_v5 = vld [vmem:[%s2783_s28 + $0x2d0] sm:$0xff]  ;;  %v2087_v44 = vcombine.high %v498_v38, %v506_v39  ;;  %v514_v46 = vld [vmem:[%s2783_s28 + $0xa0] sm:$0xff] }
  0x83   : > { %1393 = vmatprep.subr.bf16.mxu0 %v2159_v0  ;;  %1436 = vmatprep.subr.bf16.mxu1 %v2161_v1  ;;  %v569_v63 = vld [vmem:[%s2783_s28 + $0x258] sm:$0xff]  ;;  %v2130_v0 = vcombine.low %v544_v52, %v552_v53  ;;  %v2132_v1 = vcombine.low %v545_v54, %v553_v55  ;;  %v2163_v10 = vcombine.high %v576_v4, %v584_v5  ;;  %v592_v12 = vld [vmem:[%s2783_s28 + $0x310] sm:$0xff]  ;;  %v522_v47 = vld [vmem:[%s2783_s28 + $0xe0] sm:$0xff] }
  0x84   : > { %v2149_v3 = vcombine.high %v561_v62, %v569_v63  ;;  %v600_v13 = vld [vmem:[%s2783_s28 + $0x350] sm:$0xff]  ;;  %v2103_v52 = vcombine.high %v514_v46, %v522_v47  ;;  %v530_v54 = vld [vmem:[%s2783_s28 + $0x120] sm:$0xff] }
  0x85   : > { %v2179_v19 = vcombine.high %v592_v12, %v600_v13  ;;  %v608_v21 = vld [vmem:[%s2783_s28 + $0x390] sm:$0xff]  ;;  %v538_v55 = vld [vmem:[%s2783_s28 + $0x160] sm:$0xff] }
  0x86   : > { %1394 = vmatpush1.bf16.msra.mxu0 %v2158_v6  ;;  %1437 = vmatpush1.bf16.msra.mxu1 %v2160_v7  ;;  %v577_v6 = vld [vmem:[%s2783_s28 + $0x298] sm:$0xff]  ;;  %v616_v22 = vld [vmem:[%s2783_s28 + $0x3d0] sm:$0xff] }
  0x87   : > { %1395 = vmatprep.subr.bf16.mxu0 %v2175_v8  ;;  %1438 = vmatprep.subr.bf16.mxu1 %v2177_v9  ;;  %v585_v7 = vld [vmem:[%s2783_s28 + $0x2d8] sm:$0xff]  ;;  %v2146_v8 = vcombine.low %v560_v60, %v568_v61  ;;  %v2148_v9 = vcombine.low %v561_v62, %v569_v63  ;;  %v2195_v27 = vcombine.high %v608_v21, %v616_v22  ;;  %v624_v29 = vld [vmem:[%s2783_s28 + $0x410] sm:$0xff]  ;;  %v546_v62 = vld [vmem:[%s2783_s28 + $0x1a0] sm:$0xff] }
  0x88   : > { %v2165_v11 = vcombine.high %v577_v6, %v585_v7  ;;  %v632_v30 = vld [vmem:[%s2783_s28 + $0x450] sm:$0xff]  ;;  %v2119_v60 = vcombine.high %v530_v54, %v538_v55  ;;  %v554_v63 = vld [vmem:[%s2783_s28 + $0x1e0] sm:$0xff] }
  0x89   : > { %v2211_v35 = vcombine.high %v624_v29, %v632_v30 }
  0x8a   : > { %1396 = vmatpush1.bf16.msra.mxu0 %v2174_v14  ;;  %1439 = vmatpush1.bf16.msra.mxu1 %v2176_v15  ;;  %v593_v14 = vld [vmem:[%s2783_s28 + $0x318] sm:$0xff] }
  0x8b   : > { %1397 = vmatprep.subr.bf16.mxu0 %v2191_v17  ;;  %1440 = vmatprep.subr.bf16.mxu1 %v2193_v18  ;;  %v601_v15 = vld [vmem:[%s2783_s28 + $0x358] sm:$0xff]  ;;  %v2162_v17 = vcombine.low %v576_v4, %v584_v5  ;;  %v2164_v18 = vcombine.low %v577_v6, %v585_v7  ;;  %v2135_v4 = vcombine.high %v546_v62, %v554_v63  ;;  %v562_v6 = vld [vmem:[%s2783_s28 + $0x220] sm:$0xff] }
  0x8c   : > { %v2181_v20 = vcombine.high %v593_v14, %v601_v15  ;;  %v570_v7 = vld [vmem:[%s2783_s28 + $0x260] sm:$0xff] }
  0x8e   : > { %1398 = vmatpush1.bf16.msra.mxu0 %v2190_v23  ;;  %1441 = vmatpush1.bf16.msra.mxu1 %v2192_v24  ;;  %v609_v23 = vld [vmem:[%s2783_s28 + $0x398] sm:$0xff] }
  0x8f   : > { %1399 = vmatprep.subr.bf16.mxu0 %v2207_v25  ;;  %1442 = vmatprep.subr.bf16.mxu1 %v2209_v26  ;;  %v617_v24 = vld [vmem:[%s2783_s28 + $0x3d8] sm:$0xff]  ;;  %v2178_v25 = vcombine.low %v592_v12, %v600_v13  ;;  %v2180_v26 = vcombine.low %v593_v14, %v601_v15  ;;  %v2151_v12 = vcombine.high %v562_v6, %v570_v7  ;;  %v578_v14 = vld [vmem:[%s2783_s28 + $0x2a0] sm:$0xff] }
  0x90   : > { %v2197_v28 = vcombine.high %v609_v23, %v617_v24  ;;  %v586_v15 = vld [vmem:[%s2783_s28 + $0x2e0] sm:$0xff] }
  0x92   : > { %1400 = vmatpush1.bf16.msra.mxu0 %v2206_v31  ;;  %1443 = vmatpush1.bf16.msra.mxu1 %v2208_v32  ;;  %v625_v31 = vld [vmem:[%s2783_s28 + $0x418] sm:$0xff] }
  0x93   : > { %1469 = vmatprep.subr.bf16.mxu0 %v2083_v33  ;;  %1512 = vmatprep.subr.bf16.mxu1 %v2085_v34  ;;  %v633_v32 = vld [vmem:[%s2783_s28 + $0x458] sm:$0xff]  ;;  %v2194_v33 = vcombine.low %v608_v21, %v616_v22  ;;  %v2196_v34 = vcombine.low %v609_v23, %v617_v24  ;;  %v2167_v21 = vcombine.high %v578_v14, %v586_v15  ;;  %v594_v23 = vld [vmem:[%s2783_s28 + $0x320] sm:$0xff] }
  0x94   : > { %v2213_v36 = vcombine.high %v625_v31, %v633_v32  ;;  %v602_v24 = vld [vmem:[%s2783_s28 + $0x360] sm:$0xff] }
  0x95   : > { %1416 = vmatmul.mubr.bf16.vlgmr.msra.gmra.mrb[0].mxu0 %v2833_v37  ;;  %1459 = vmatmul.mubr.bf16.vlgmr.msra.gmra.mrb[0].mxu1 %v2833_v37 }
  0x96   : > { %1470 = vmatpush1.bf16.msra.mxu0 %v2082_v40  ;;  %1513 = vmatpush1.bf16.msra.mxu1 %v2084_v41  ;;  %v499_v40 = vld [vmem:[%s2783_s28 + $0x28] sm:$0xff] }
  0x97   : > { %1471 = vmatprep.subr.bf16.mxu0 %v2099_v42  ;;  %1514 = vmatprep.subr.bf16.mxu1 %v2101_v43  ;;  %v507_v41 = vld [vmem:[%s2783_s28 + $0x68] sm:$0xff]  ;;  %v2210_v42 = vcombine.low %v624_v29, %v632_v30  ;;  %v2212_v43 = vcombine.low %v625_v31, %v633_v32  ;;  %v2183_v29 = vcombine.high %v594_v23, %v602_v24  ;;  %v610_v31 = vld [vmem:[%s2783_s28 + $0x3a0] sm:$0xff] }
  0x98   : > { %2224 = vmatprep.mubr.msk.bf16.mxu0 %vm1379_vm0, %v2772_v16  ;;  %2225 = vmatprep.mubr.msk.bf16.mxu1 %vm1379_vm0, %v2772_v16  ;;  %v2089_v45 = vcombine.high %v499_v40, %v507_v41  ;;  %v618_v32 = vld [vmem:[%s2783_s28 + $0x3e0] sm:$0xff] }
  0x9a   : > { %1472 = vmatpush1.bf16.msra.mxu0 %v2098_v48  ;;  %1515 = vmatpush1.bf16.msra.mxu1 %v2100_v49  ;;  %v515_v48 = vld [vmem:[%s2783_s28 + $0xa8] sm:$0xff] }
  0x9b   : > { %1473 = vmatprep.subr.bf16.mxu0 %v2115_v50  ;;  %1516 = vmatprep.subr.bf16.mxu1 %v2117_v51  ;;  %v523_v49 = vld [vmem:[%s2783_s28 + $0xe8] sm:$0xff]  ;;  %v2086_v50 = vcombine.low %v498_v38, %v506_v39  ;;  %v2088_v51 = vcombine.low %v499_v40, %v507_v41  ;;  %v2199_v38 = vcombine.high %v610_v31, %v618_v32  ;;  %v626_v40 = vld [vmem:[%s2783_s28 + $0x420] sm:$0xff] }
  0x9c   : > { %v2105_v53 = vcombine.high %v515_v48, %v523_v49  ;;  %v634_v41 = vld [vmem:[%s2783_s28 + $0x460] sm:$0xff] }
  0x9e   : > { %1474 = vmatpush1.bf16.msra.mxu0 %v2114_v56  ;;  %1517 = vmatpush1.bf16.msra.mxu1 %v2116_v57  ;;  %v531_v56 = vld [vmem:[%s2783_s28 + $0x128] sm:$0xff] }
  0x9f   : > { %1475 = vmatprep.subr.bf16.mxu0 %v2131_v58  ;;  %1518 = vmatprep.subr.bf16.mxu1 %v2133_v59  ;;  %v539_v57 = vld [vmem:[%s2783_s28 + $0x168] sm:$0xff]  ;;  %v2102_v58 = vcombine.low %v514_v46, %v522_v47  ;;  %v2104_v59 = vcombine.low %v515_v48, %v523_v49  ;;  %v2215_v46 = vcombine.high %v626_v40, %v634_v41  ;;  %v500_v48 = vld [vmem:[%s2783_s28 + $0x30] sm:$0xff] }
  0xa0   : > { %v2121_v61 = vcombine.high %v531_v56, %v539_v57  ;;  %v508_v49 = vld [vmem:[%s2783_s28 + $0x70] sm:$0xff] }
  0xa2   : > { %1476 = vmatpush1.bf16.msra.mxu0 %v2130_v0  ;;  %1519 = vmatpush1.bf16.msra.mxu1 %v2132_v1  ;;  %v547_v0 = vld [vmem:[%s2783_s28 + $0x1a8] sm:$0xff] }
  0xa3   : > { %1477 = vmatprep.subr.bf16.mxu0 %v2147_v2  ;;  %1520 = vmatprep.subr.bf16.mxu1 %v2149_v3  ;;  %v555_v1 = vld [vmem:[%s2783_s28 + $0x1e8] sm:$0xff]  ;;  %v2118_v2 = vcombine.low %v530_v54, %v538_v55  ;;  %v2120_v3 = vcombine.low %v531_v56, %v539_v57  ;;  %v2091_v54 = vcombine.high %v500_v48, %v508_v49  ;;  %v516_v56 = vld [vmem:[%s2783_s28 + $0xb0] sm:$0xff] }
  0xa4   : > { %v2137_v5 = vcombine.high %v547_v0, %v555_v1  ;;  %v524_v57 = vld [vmem:[%s2783_s28 + $0xf0] sm:$0xff] }
  0xa6   : > { %1478 = vmatpush1.bf16.msra.mxu0 %v2146_v8  ;;  %1521 = vmatpush1.bf16.msra.mxu1 %v2148_v9  ;;  %v563_v8 = vld [vmem:[%s2783_s28 + $0x228] sm:$0xff] }
  0xa7   : > { %1479 = vmatprep.subr.bf16.mxu0 %v2163_v10  ;;  %1522 = vmatprep.subr.bf16.mxu1 %v2165_v11  ;;  %v571_v9 = vld [vmem:[%s2783_s28 + $0x268] sm:$0xff]  ;;  %v2134_v10 = vcombine.low %v546_v62, %v554_v63  ;;  %v2136_v11 = vcombine.low %v547_v0, %v555_v1  ;;  %v2107_v62 = vcombine.high %v516_v56, %v524_v57  ;;  %v532_v0 = vld [vmem:[%s2783_s28 + $0x130] sm:$0xff] }
  0xa8   : > { %v2153_v13 = vcombine.high %v563_v8, %v571_v9  ;;  %v540_v1 = vld [vmem:[%s2783_s28 + $0x170] sm:$0xff] }
  0xaa   : > { %1480 = vmatpush1.bf16.msra.mxu0 %v2162_v17  ;;  %1523 = vmatpush1.bf16.msra.mxu1 %v2164_v18  ;;  %v579_v17 = vld [vmem:[%s2783_s28 + $0x2a8] sm:$0xff] }
  0xab   : > { %1481 = vmatprep.subr.bf16.mxu0 %v2179_v19  ;;  %1524 = vmatprep.subr.bf16.mxu1 %v2181_v20  ;;  %v587_v18 = vld [vmem:[%s2783_s28 + $0x2e8] sm:$0xff]  ;;  %v2150_v19 = vcombine.low %v562_v6, %v570_v7  ;;  %v2152_v20 = vcombine.low %v563_v8, %v571_v9  ;;  %v2123_v6 = vcombine.high %v532_v0, %v540_v1  ;;  %v548_v8 = vld [vmem:[%s2783_s28 + $0x1b0] sm:$0xff] }
  0xac   : > { %v2169_v22 = vcombine.high %v579_v17, %v587_v18  ;;  %v556_v9 = vld [vmem:[%s2783_s28 + $0x1f0] sm:$0xff] }
  0xae   : > { %1482 = vmatpush1.bf16.msra.mxu0 %v2178_v25  ;;  %1525 = vmatpush1.bf16.msra.mxu1 %v2180_v26  ;;  %v595_v25 = vld [vmem:[%s2783_s28 + $0x328] sm:$0xff] }
  0xaf   : > { %1483 = vmatprep.subr.bf16.mxu0 %v2195_v27  ;;  %1526 = vmatprep.subr.bf16.mxu1 %v2197_v28  ;;  %v603_v26 = vld [vmem:[%s2783_s28 + $0x368] sm:$0xff]  ;;  %v2166_v27 = vcombine.low %v578_v14, %v586_v15  ;;  %v2168_v28 = vcombine.low %v579_v17, %v587_v18  ;;  %v2139_v14 = vcombine.high %v548_v8, %v556_v9  ;;  %v564_v17 = vld [vmem:[%s2783_s28 + $0x230] sm:$0xff] }
  0xb0   : > { %v2185_v30 = vcombine.high %v595_v25, %v603_v26  ;;  %v572_v18 = vld [vmem:[%s2783_s28 + $0x270] sm:$0xff] }
  0xb2   : > { %1484 = vmatpush1.bf16.msra.mxu0 %v2194_v33  ;;  %1527 = vmatpush1.bf16.msra.mxu1 %v2196_v34  ;;  %v611_v33 = vld [vmem:[%s2783_s28 + $0x3a8] sm:$0xff] }
  0xb3   : > { %1485 = vmatprep.subr.bf16.mxu0 %v2211_v35  ;;  %1528 = vmatprep.subr.bf16.mxu1 %v2213_v36  ;;  %v619_v34 = vld [vmem:[%s2783_s28 + $0x3e8] sm:$0xff]  ;;  %v2182_v35 = vcombine.low %v594_v23, %v602_v24  ;;  %v2184_v36 = vcombine.low %v595_v25, %v603_v26  ;;  %v580_v24 = vld [vmem:[%s2783_s28 + $0x2b0] sm:$0xff]  ;;  %v581_v26 = vld [vmem:[%s2783_s28 + $0x2b8] sm:$0xff] }
  0xb4   : > { %v2201_v39 = vcombine.high %v611_v33, %v619_v34  ;;  %v588_v25 = vld [vmem:[%s2783_s28 + $0x2f0] sm:$0xff] }
  0xb6   : > { %1486 = vmatpush1.bf16.msra.mxu0 %v2210_v42  ;;  %1529 = vmatpush1.bf16.msra.mxu1 %v2212_v43  ;;  %v627_v42 = vld [vmem:[%s2783_s28 + $0x428] sm:$0xff] }
  0xb7   : > { %1555 = vmatprep.subr.bf16.mxu0 %v2087_v44  ;;  %1598 = vmatprep.subr.bf16.mxu1 %v2089_v45  ;;  %v635_v43 = vld [vmem:[%s2783_s28 + $0x468] sm:$0xff]  ;;  %v2198_v44 = vcombine.low %v610_v31, %v618_v32  ;;  %v2200_v45 = vcombine.low %v611_v33, %v619_v34  ;;  %v596_v32 = vld [vmem:[%s2783_s28 + $0x330] sm:$0xff]  ;;  %v597_v34 = vld [vmem:[%s2783_s28 + $0x338] sm:$0xff] }
  0xb8   : > { %v2217_v47 = vcombine.high %v627_v42, %v635_v43  ;;  %v604_v33 = vld [vmem:[%s2783_s28 + $0x370] sm:$0xff] }
  0xb9   : > { %1502 = vmatmul.mubr.bf16.vlgmr.msra.gmra.mrb[4].mxu0 %v2833_v37  ;;  %1545 = vmatmul.mubr.bf16.vlgmr.msra.gmra.mrb[4].mxu1 %v2833_v37 }
  0xba   : > { %1556 = vmatpush1.bf16.msra.mxu0 %v2086_v50  ;;  %1599 = vmatpush1.bf16.msra.mxu1 %v2088_v51  ;;  %v501_v50 = vld [vmem:[%s2783_s28 + $0x38] sm:$0xff] }
  0xbb   : > { %1557 = vmatprep.subr.bf16.mxu0 %v2103_v52  ;;  %1600 = vmatprep.subr.bf16.mxu1 %v2105_v53  ;;  %v509_v51 = vld [vmem:[%s2783_s28 + $0x78] sm:$0xff]  ;;  %v2214_v52 = vcombine.low %v626_v40, %v634_v41  ;;  %v2216_v53 = vcombine.low %v627_v42, %v635_v43  ;;  %v612_v41 = vld [vmem:[%s2783_s28 + $0x3b0] sm:$0xff] }
  0xbc   : > { %2226 = vmatprep.mubr.msk.bf16.mxu0 %vm1379_vm0, %v2772_v16  ;;  %2227 = vmatprep.mubr.msk.bf16.mxu1 %vm1379_vm0, %v2772_v16  ;;  %v2093_v55 = vcombine.high %v501_v50, %v509_v51  ;;  %v620_v42 = vld [vmem:[%s2783_s28 + $0x3f0] sm:$0xff]  ;;  %v613_v43 = vld [vmem:[%s2783_s28 + $0x3b8] sm:$0xff] }
  0xbe   : > { %1558 = vmatpush1.bf16.msra.mxu0 %v2102_v58  ;;  %1601 = vmatpush1.bf16.msra.mxu1 %v2104_v59  ;;  %v517_v58 = vld [vmem:[%s2783_s28 + $0xb8] sm:$0xff] }
  0xbf   : > { %1559 = vmatprep.subr.bf16.mxu0 %v2119_v60  ;;  %1602 = vmatprep.subr.bf16.mxu1 %v2121_v61  ;;  %v525_v59 = vld [vmem:[%s2783_s28 + $0xf8] sm:$0xff]  ;;  %v2090_v60 = vcombine.low %v500_v48, %v508_v49  ;;  %v2092_v61 = vcombine.low %v501_v50, %v509_v51  ;;  %v628_v49 = vld [vmem:[%s2783_s28 + $0x430] sm:$0xff] }
  0xc0   : > { %v2109_v63 = vcombine.high %v517_v58, %v525_v59  ;;  %v636_v50 = vld [vmem:[%s2783_s28 + $0x470] sm:$0xff]  ;;  %v629_v51 = vld [vmem:[%s2783_s28 + $0x438] sm:$0xff] }
  0xc2   : > { %1560 = vmatpush1.bf16.msra.mxu0 %v2118_v2  ;;  %1603 = vmatpush1.bf16.msra.mxu1 %v2120_v3  ;;  %v533_v2 = vld [vmem:[%s2783_s28 + $0x138] sm:$0xff] }
  0xc3   : > { %1561 = vmatprep.subr.bf16.mxu0 %v2135_v4  ;;  %1604 = vmatprep.subr.bf16.mxu1 %v2137_v5  ;;  %v541_v3 = vld [vmem:[%s2783_s28 + $0x178] sm:$0xff]  ;;  %v2106_v4 = vcombine.low %v516_v56, %v524_v57  ;;  %v2108_v5 = vcombine.low %v517_v58, %v525_v59  ;;  %v2218_v57 = vcombine.low %v628_v49, %v636_v50 }
  0xc4   : > { %v2125_v7 = vcombine.high %v533_v2, %v541_v3 }
  0xc6   : > { %1562 = vmatpush1.bf16.msra.mxu0 %v2134_v10  ;;  %1605 = vmatpush1.bf16.msra.mxu1 %v2136_v11  ;;  %v549_v10 = vld [vmem:[%s2783_s28 + $0x1b8] sm:$0xff] }
  0xc7   : > { %1563 = vmatprep.subr.bf16.mxu0 %v2151_v12  ;;  %1606 = vmatprep.subr.bf16.mxu1 %v2153_v13  ;;  %v557_v11 = vld [vmem:[%s2783_s28 + $0x1f8] sm:$0xff]  ;;  %v2122_v12 = vcombine.low %v532_v0, %v540_v1  ;;  %v2124_v13 = vcombine.low %v533_v2, %v541_v3 }
  0xc8   : > { %v2141_v15 = vcombine.high %v549_v10, %v557_v11 }
  0xca   : > { %1564 = vmatpush1.bf16.msra.mxu0 %v2150_v19  ;;  %1607 = vmatpush1.bf16.msra.mxu1 %v2152_v20  ;;  %v565_v19 = vld [vmem:[%s2783_s28 + $0x238] sm:$0xff] }
  0xcb   : > { %1565 = vmatprep.subr.bf16.mxu0 %v2167_v21  ;;  %1608 = vmatprep.subr.bf16.mxu1 %v2169_v22  ;;  %v573_v20 = vld [vmem:[%s2783_s28 + $0x278] sm:$0xff]  ;;  %v2138_v21 = vcombine.low %v548_v8, %v556_v9  ;;  %v2155_v22 = vcombine.high %v564_v17, %v572_v18 }
  0xcc   : > { %v2157_v23 = vcombine.high %v565_v19, %v573_v20 }
  0xce   : > { %1566 = vmatpush1.bf16.msra.mxu0 %v2166_v27  ;;  %1609 = vmatpush1.bf16.msra.mxu1 %v2168_v28  ;;  %v589_v27 = vld [vmem:[%s2783_s28 + $0x2f8] sm:$0xff]  ;;  %v2154_v28 = vcombine.low %v564_v17, %v572_v18 }
  0xcf   : > { %1567 = vmatprep.subr.bf16.mxu0 %v2183_v29  ;;  %1610 = vmatprep.subr.bf16.mxu1 %v2185_v30  ;;  %v2156_v29 = vcombine.low %v565_v19, %v573_v20  ;;  %v2171_v30 = vcombine.high %v580_v24, %v588_v25  ;;  %v2173_v31 = vcombine.high %v581_v26, %v589_v27 }
  0xd2   : > { %1568 = vmatpush1.bf16.msra.mxu0 %v2182_v35  ;;  %1611 = vmatpush1.bf16.msra.mxu1 %v2184_v36  ;;  %v605_v35 = vld [vmem:[%s2783_s28 + $0x378] sm:$0xff]  ;;  %v2170_v36 = vcombine.low %v580_v24, %v588_v25 }
  0xd3   : > { %1569 = vmatprep.subr.bf16.mxu0 %v2199_v38  ;;  %1612 = vmatprep.subr.bf16.mxu1 %v2201_v39  ;;  %v2172_v38 = vcombine.low %v581_v26, %v589_v27  ;;  %v2187_v39 = vcombine.high %v596_v32, %v604_v33  ;;  %v2189_v40 = vcombine.high %v597_v34, %v605_v35 }
  0xd6   : > { %1570 = vmatpush1.bf16.msra.mxu0 %v2198_v44  ;;  %1613 = vmatpush1.bf16.msra.mxu1 %v2200_v45  ;;  %v621_v44 = vld [vmem:[%s2783_s28 + $0x3f8] sm:$0xff]  ;;  %v2186_v45 = vcombine.low %v596_v32, %v604_v33 }
  0xd7   : > { %1571 = vmatprep.subr.bf16.mxu0 %v2215_v46  ;;  %1614 = vmatprep.subr.bf16.mxu1 %v2217_v47  ;;  %v2188_v46 = vcombine.low %v597_v34, %v605_v35  ;;  %v2203_v47 = vcombine.high %v612_v41, %v620_v42  ;;  %v2205_v48 = vcombine.high %v613_v43, %v621_v44 }
  0xda   : > { %1572 = vmatpush1.bf16.msra.mxu0 %v2214_v52  ;;  %1615 = vmatpush1.bf16.msra.mxu1 %v2216_v53  ;;  %v637_v52 = vld [vmem:[%s2783_s28 + $0x478] sm:$0xff]  ;;  %v2202_v53 = vcombine.low %v612_v41, %v620_v42 }
  0xdb   : > { %1641 = vmatprep.subr.bf16.mxu0 %v2091_v54  ;;  %1684 = vmatprep.subr.bf16.mxu1 %v2093_v55  ;;  %v2204_v54 = vcombine.low %v613_v43, %v621_v44  ;;  %v2219_v55 = vcombine.high %v628_v49, %v636_v50  ;;  %v2221_v56 = vcombine.high %v629_v51, %v637_v52 }
  0xdc   : > { %v2220_v58 = vcombine.low %v629_v51, %v637_v52 }
  0xdd   : > { %1588 = vmatmul.mubr.bf16.vlgmr.msra.gmra.mrb[8].mxu0 %v2833_v37  ;;  %1631 = vmatmul.mubr.bf16.vlgmr.msra.gmra.mrb[8].mxu1 %v2833_v37 }
  0xde   : > { %1642 = vmatpush1.bf16.msra.mxu0 %v2090_v60  ;;  %1685 = vmatpush1.bf16.msra.mxu1 %v2092_v61 }
  0xdf   : > { %1643 = vmatprep.subr.bf16.mxu0 %v2107_v62  ;;  %1686 = vmatprep.subr.bf16.mxu1 %v2109_v63 }
  0xe0   : > { %2228 = vmatprep.mubr.msk.bf16.mxu0 %vm1379_vm0, %v2772_v16  ;;  %2229 = vmatprep.mubr.msk.bf16.mxu1 %vm1379_vm0, %v2772_v16  ;;  %v2140_v16 = vcombine.low %v549_v10, %v557_v11 }
  0xe2   : > { %1644 = vmatpush1.bf16.msra.mxu0 %v2106_v4  ;;  %1687 = vmatpush1.bf16.msra.mxu1 %v2108_v5 }
  0xe3   : > { %1645 = vmatprep.subr.bf16.mxu0 %v2123_v6  ;;  %1688 = vmatprep.subr.bf16.mxu1 %v2125_v7 }
  0xe6   : > { %1646 = vmatpush1.bf16.msra.mxu0 %v2122_v12  ;;  %1689 = vmatpush1.bf16.msra.mxu1 %v2124_v13 }
  0xe7   : > { %1647 = vmatprep.subr.bf16.mxu0 %v2139_v14  ;;  %1690 = vmatprep.subr.bf16.mxu1 %v2141_v15 }
  0xea   : > { %1648 = vmatpush1.bf16.msra.mxu0 %v2138_v21  ;;  %1691 = vmatpush1.bf16.msra.mxu1 %v2140_v16  ;;  %v2957_v59 = vpop.permute.xlu0 %642 }
  0xeb   : > { %1649 = vmatprep.subr.bf16.mxu0 %v2155_v22  ;;  %1692 = vmatprep.subr.bf16.mxu1 %v2157_v23 }
  0xee   : > { %1650 = vmatpush1.bf16.msra.mxu0 %v2154_v28  ;;  %1693 = vmatpush1.bf16.msra.mxu1 %v2156_v29  ;;  %v2959_v61 = vpop.permute.xlu0 %647 }
  0xef   : > { %1651 = vmatprep.subr.bf16.mxu0 %v2171_v30  ;;  %1694 = vmatprep.subr.bf16.mxu1 %v2173_v31 }
  0xf2   : > { %1652 = vmatpush1.bf16.msra.mxu0 %v2170_v36  ;;  %1695 = vmatpush1.bf16.msra.mxu1 %v2172_v38 }
  0xf3   : > { %1653 = vmatprep.subr.bf16.mxu0 %v2187_v39  ;;  %1696 = vmatprep.subr.bf16.mxu1 %v2189_v40 }
  0xf6   : > { %1654 = vmatpush1.bf16.msra.mxu0 %v2186_v45  ;;  %1697 = vmatpush1.bf16.msra.mxu1 %v2188_v46 }
  0xf7   : > { %1655 = vmatprep.subr.bf16.mxu0 %v2203_v47  ;;  %1698 = vmatprep.subr.bf16.mxu1 %v2205_v48 }
  0xfa   : > { %1656 = vmatpush1.bf16.msra.mxu0 %v2202_v53  ;;  %1699 = vmatpush1.bf16.msra.mxu1 %v2204_v54 }
  0xfb   : > { %1657 = vmatprep.subr.bf16.mxu0 %v2219_v55  ;;  %1700 = vmatprep.subr.bf16.mxu1 %v2221_v56 }
  0xfe   : > { %1658 = vmatpush1.bf16.msra.mxu0 %v2218_v57  ;;  %1701 = vmatpush1.bf16.msra.mxu1 %v2220_v58 }
 0x101   : > { %1674 = vmatmul.mubr.bf16.vlgmr.msra.gmra.mrb[12].mxu0 %v2833_v37  ;;  %1717 = vmatmul.mubr.bf16.vlgmr.msra.gmra.mrb[12].mxu1 %v2833_v37 }
 0x168   : > { %v1417_v60 = vpop.f32.mrb[0].mxu0  ;;  %v1460_v63 = vpop.f32.mrb[0].mxu1 }
 0x169   : > { %v1418_v62 = vadd.f32 %v1417_v60, %v2957_v59  ;;  %v1419_v0 = vpop.f32.mrb[1].mxu0  ;;  %v1461_v1 = vadd.f32 %v1460_v63, %v2957_v59  ;;  %v1462_v3 = vpop.f32.mrb[1].mxu1 }
 0x16a   : > { %v1420_v2 = vadd.f32 %v1419_v0, %v2957_v59  ;;  %v1421_v4 = vpop.f32.mrb[2].mxu0  ;;  %v1463_v37 = vadd.f32 %v1462_v3, %v2957_v59  ;;  %v1464_v7 = vpop.f32.mrb[2].mxu1 }
 0x16b   : > { %vm1727_vm1 = vcmp.ge.f32.partialorder %v1418_v62, 0.0  ;;  %v1759_v5 = vmul.f32 0.1, %v1418_v62  ;;  %v1422_v6 = vadd.f32 %v1421_v4, %v2959_v61  ;;  %v1423_v8 = vpop.f32.mrb[3].mxu0  ;;  %vm1729_vm2 = vcmp.ge.f32.partialorder %v1461_v1, 0.0  ;;  %v1466_v13 = vpop.f32.mrb[3].mxu1 }
 0x16c   : > { %v1761_v9 = vmul.f32 0.1, %v1461_v1  ;;  %vm1728_vm3 = vcmp.ge.f32.partialorder %v1420_v2, 0.0  ;;  %v1760_v10 = vmul.f32 0.1, %v1420_v2  ;;  %vm1730_vm4 = vcmp.ge.f32.partialorder %v1463_v37, 0.0 }
 0x16d   : > { %v1791_v11 = vsel %vm1727_vm1, %v1418_v62, %v1759_v5  ;;  %v1762_v12 = vmul.f32 0.1, %v1463_v37  ;;  %vm1743_vm5 = vcmp.ge.f32.partialorder %v1422_v6, 0.0  ;;  %v1775_v17 = vmul.f32 0.1, %v1422_v6 }
 0x16e   : > { %v1793_v14 = vsel %vm1729_vm2, %v1461_v1, %v1761_v9  ;;  %v1792_v15 = vsel %vm1728_vm3, %v1420_v2, %v1760_v10  ;;  %v1465_v18 = vadd.f32 %v1464_v7, %v2959_v61  ;;  %v1424_v21 = vadd.f32 %v1423_v8, %v2959_v61 }
 0x16f   : > { %v2252_v19 = vpack.c.bf16 %v1792_v15, %v1791_v11  ;;  %v1794_v20 = vsel %vm1730_vm4, %v1463_v37, %v1762_v12  ;;  %v1467_v16 = vadd.f32 %v1466_v13, %v2959_v61  ;;  %v1807_v23 = vsel %vm1743_vm5, %v1422_v6, %v1775_v17 }
 0x170   : > { %v2253_v22 = vpack.c.bf16 %v1794_v20, %v1793_v14  ;;  %vm1745_vm6 = vcmp.ge.f32.partialorder %v1465_v18, 0.0  ;;  %v1777_v24 = vmul.f32 0.1, %v1465_v18  ;;  %vm1744_vm7 = vcmp.ge.f32.partialorder %v1424_v21, 0.0 }
 0x171   : > { %1919 = vst [vmem:[%s2971_s12] sm:$0xff] %v2252_v19  ;;  %v1776_v25 = vmul.f32 0.1, %v1424_v21  ;;  %vm1746_vm8 = vcmp.ge.f32.partialorder %v1467_v16, 0.0  ;;  %v1778_v26 = vmul.f32 0.1, %v1467_v16 }
 0x172   : > { %1920 = vst [vmem:[%s2971_s12 + $0x8] sm:$0xff] %v2253_v22  ;;  %v1809_v27 = vsel %vm1745_vm6, %v1465_v18, %v1777_v24 }
 0x173   : > { %v1808_v28 = vsel %vm1744_vm7, %v1424_v21, %v1776_v25  ;;  %v1810_v29 = vsel %vm1746_vm8, %v1467_v16, %v1778_v26 }
 0x174   : > { %v2260_v30 = vpack.c.bf16 %v1808_v28, %v1807_v23  ;;  %v2261_v31 = vpack.c.bf16 %v1810_v29, %v1809_v27 }
 0x176   : > { %1927 = vst [vmem:[%s2971_s12 + $0x40] sm:$0xff] %v2260_v30  ;;  %1928 = vst [vmem:[%s2971_s12 + $0x48] sm:$0xff] %v2261_v31 }
 0x18c   : > { %v1503_v32 = vpop.f32.mrb[4].mxu0  ;;  %v1546_v34 = vpop.f32.mrb[4].mxu1 }
 0x18d   : > { %v1504_v33 = vadd.f32 %v1503_v32, %v2957_v59  ;;  %v1505_v35 = vpop.f32.mrb[5].mxu0  ;;  %v1547_v36 = vadd.f32 %v1546_v34, %v2957_v59  ;;  %v1548_v39 = vpop.f32.mrb[5].mxu1 }
 0x18e   : > { %v1506_v38 = vadd.f32 %v1505_v35, %v2957_v59  ;;  %v1507_v40 = vpop.f32.mrb[6].mxu0  ;;  %v1549_v42 = vadd.f32 %v1548_v39, %v2957_v59  ;;  %v1550_v44 = vpop.f32.mrb[6].mxu1 }
 0x18f   : > { %vm1731_vm9 = vcmp.ge.f32.partialorder %v1504_v33, 0.0  ;;  %v1763_v41 = vmul.f32 0.1, %v1504_v33  ;;  %v1508_v43 = vadd.f32 %v1507_v40, %v2959_v61  ;;  %v1509_v45 = vpop.f32.mrb[7].mxu0  ;;  %vm1733_vm10 = vcmp.ge.f32.partialorder %v1547_v36, 0.0  ;;  %v1552_v50 = vpop.f32.mrb[7].mxu1 }
 0x190   : > { %v1765_v46 = vmul.f32 0.1, %v1547_v36  ;;  %vm1732_vm11 = vcmp.ge.f32.partialorder %v1506_v38, 0.0  ;;  %v1764_v47 = vmul.f32 0.1, %v1506_v38  ;;  %vm1734_vm12 = vcmp.ge.f32.partialorder %v1549_v42, 0.0 }
 0x191   : > { %v1795_v48 = vsel %vm1731_vm9, %v1504_v33, %v1763_v41  ;;  %v1766_v49 = vmul.f32 0.1, %v1549_v42  ;;  %vm1747_vm13 = vcmp.ge.f32.partialorder %v1508_v43, 0.0  ;;  %v1779_v53 = vmul.f32 0.1, %v1508_v43 }
 0x192   : > { %v1797_v51 = vsel %vm1733_vm10, %v1547_v36, %v1765_v46  ;;  %v1796_v52 = vsel %vm1732_vm11, %v1506_v38, %v1764_v47  ;;  %v1551_v54 = vadd.f32 %v1550_v44, %v2959_v61  ;;  %v1510_v57 = vadd.f32 %v1509_v45, %v2959_v61 }
 0x193   : > { %v2254_v55 = vpack.c.bf16 %v1796_v52, %v1795_v48  ;;  %v1798_v56 = vsel %vm1734_vm12, %v1549_v42, %v1766_v49  ;;  %v1553_v58 = vadd.f32 %v1552_v50, %v2959_v61  ;;  %v1811_v62 = vsel %vm1747_vm13, %v1508_v43, %v1779_v53 }
 0x194   : > { %v2255_v60 = vpack.c.bf16 %v1798_v56, %v1797_v51  ;;  %vm1749_vm14 = vcmp.ge.f32.partialorder %v1551_v54, 0.0  ;;  %v1781_v63 = vmul.f32 0.1, %v1551_v54  ;;  %vm1748_vm15 = vcmp.ge.f32.partialorder %v1510_v57, 0.0 }
 0x195   : > { %1921 = vst [vmem:[%s2971_s12 + $0x10] sm:$0xff] %v2254_v55  ;;  %v1780_v0 = vmul.f32 0.1, %v1510_v57  ;;  %vm1750_vm0 = vcmp.ge.f32.partialorder %v1553_v58, 0.0  ;;  %v1782_v1 = vmul.f32 0.1, %v1553_v58 }
 0x196   : > { %1922 = vst [vmem:[%s2971_s12 + $0x18] sm:$0xff] %v2255_v60  ;;  %v1813_v2 = vsel %vm1749_vm14, %v1551_v54, %v1781_v63 }
 0x197   : > { %v1812_v3 = vsel %vm1748_vm15, %v1510_v57, %v1780_v0  ;;  %v1814_v4 = vsel %vm1750_vm0, %v1553_v58, %v1782_v1 }
 0x198   : > { %v2262_v5 = vpack.c.bf16 %v1812_v3, %v1811_v62  ;;  %v2263_v37 = vpack.c.bf16 %v1814_v4, %v1813_v2 }
 0x19a   : > { %1929 = vst [vmem:[%s2971_s12 + $0x50] sm:$0xff] %v2262_v5  ;;  %1930 = vst [vmem:[%s2971_s12 + $0x58] sm:$0xff] %v2263_v37 }
 0x1b0   : > { %v1589_v6 = vpop.f32.mrb[8].mxu0  ;;  %v1632_v8 = vpop.f32.mrb[8].mxu1 }
 0x1b1   : > { %v1590_v7 = vadd.f32 %v1589_v6, %v2957_v59  ;;  %v1591_v9 = vpop.f32.mrb[9].mxu0  ;;  %v1633_v10 = vadd.f32 %v1632_v8, %v2957_v59  ;;  %v1634_v12 = vpop.f32.mrb[9].mxu1 }
 0x1b2   : > { %v1592_v11 = vadd.f32 %v1591_v9, %v2957_v59  ;;  %v1593_v13 = vpop.f32.mrb[10].mxu0  ;;  %v1635_v15 = vadd.f32 %v1634_v12, %v2957_v59  ;;  %v1636_v18 = vpop.f32.mrb[10].mxu1 }
 0x1b3   : > { %vm1735_vm1 = vcmp.ge.f32.partialorder %v1590_v7, 0.0  ;;  %v1767_v14 = vmul.f32 0.1, %v1590_v7  ;;  %v1594_v17 = vadd.f32 %v1593_v13, %v2959_v61  ;;  %v1595_v19 = vpop.f32.mrb[11].mxu0  ;;  %vm1737_vm2 = vcmp.ge.f32.partialorder %v1633_v10, 0.0  ;;  %v1638_v23 = vpop.f32.mrb[11].mxu1 }
 0x1b4   : > { %v1769_v20 = vmul.f32 0.1, %v1633_v10  ;;  %vm1736_vm3 = vcmp.ge.f32.partialorder %v1592_v11, 0.0  ;;  %v1768_v21 = vmul.f32 0.1, %v1592_v11  ;;  %vm1738_vm4 = vcmp.ge.f32.partialorder %v1635_v15, 0.0 }
 0x1b5   : > { %v1799_v16 = vsel %vm1735_vm1, %v1590_v7, %v1767_v14  ;;  %v1770_v22 = vmul.f32 0.1, %v1635_v15  ;;  %vm1751_vm5 = vcmp.ge.f32.partialorder %v1594_v17, 0.0  ;;  %v1783_v26 = vmul.f32 0.1, %v1594_v17 }
 0x1b6   : > { %v1801_v24 = vsel %vm1737_vm2, %v1633_v10, %v1769_v20  ;;  %v1800_v25 = vsel %vm1736_vm3, %v1592_v11, %v1768_v21  ;;  %v1637_v27 = vadd.f32 %v1636_v18, %v2959_v61  ;;  %v1596_v30 = vadd.f32 %v1595_v19, %v2959_v61  ;;  %v1965_v18 = vld [vmem:[%s2971_s12 + $0x18] sm:$0xff] (%p2457_p6) }
 0x1b7   : > { %v2256_v28 = vpack.c.bf16 %v1800_v25, %v1799_v16  ;;  %v1802_v29 = vsel %vm1738_vm4, %v1635_v15, %v1770_v22  ;;  %v1639_v31 = vadd.f32 %v1638_v23, %v2959_v61  ;;  %v1815_v33 = vsel %vm1751_vm5, %v1594_v17, %v1783_v26  ;;  %v1961_v15 = vld [vmem:[%s2971_s12 + $0x8] sm:$0xff] (%p2457_p6)  ;;  %v1963_v17 = vld [vmem:[%s2971_s12 + $0x10] sm:$0xff] (%p2457_p6)  ;;  %v1975_v22 = vld [vmem:[%s2971_s12 + $0x40] sm:$0xff] (%p2457_p6)  ;;  %1966 = vst [vmem:[%s1946_s21 + $0x18] sm:$0xff] (%p2457_p6), %v1965_v18 }
 0x1b8   : > { %v2257_v32 = vpack.c.bf16 %v1802_v29, %v1801_v24  ;;  %vm1753_vm6 = vcmp.ge.f32.partialorder %v1637_v27, 0.0  ;;  %v1785_v34 = vmul.f32 0.1, %v1637_v27  ;;  %vm1752_vm7 = vcmp.ge.f32.partialorder %v1596_v30, 0.0  ;;  %v1977_v23 = vld [vmem:[%s2971_s12 + $0x48] sm:$0xff] (%p2457_p6)  ;;  %v1979_v24 = vld [vmem:[%s2971_s12 + $0x50] sm:$0xff] (%p2457_p6) }
 0x1b9   : > { %1923 = vst [vmem:[%s2971_s12 + $0x20] sm:$0xff] %v2256_v28  ;;  %v1784_v35 = vmul.f32 0.1, %v1596_v30  ;;  %vm1754_vm8 = vcmp.ge.f32.partialorder %v1639_v31, 0.0  ;;  %v1786_v36 = vmul.f32 0.1, %v1639_v31 }
 0x1ba   : > { %1924 = vst [vmem:[%s2971_s12 + $0x28] sm:$0xff] %v2257_v32  ;;  %v1817_v38 = vsel %vm1753_vm6, %v1637_v27, %v1785_v34  ;;  %v1981_v25 = vld [vmem:[%s2971_s12 + $0x58] sm:$0xff] (%p2457_p6)  ;;  %1962 = vst [vmem:[%s1946_s21 + $0x8] sm:$0xff] (%p2457_p6), %v1961_v15 }
 0x1bb   : > { %v1816_v39 = vsel %vm1752_vm7, %v1596_v30, %v1784_v35  ;;  %v1818_v40 = vsel %vm1754_vm8, %v1639_v31, %v1786_v36  ;;  %1964 = vst [vmem:[%s1946_s21 + $0x10] sm:$0xff] (%p2457_p6), %v1963_v17  ;;  %1976 = vst [vmem:[%s1946_s21 + $0x80] sm:$0xff] (%p2457_p6), %v1975_v22 }
 0x1bc   : > { %v2264_v41 = vpack.c.bf16 %v1816_v39, %v1815_v33  ;;  %v2265_v42 = vpack.c.bf16 %v1818_v40, %v1817_v38  ;;  %1978 = vst [vmem:[%s1946_s21 + $0x88] sm:$0xff] (%p2457_p6), %v1977_v23  ;;  %1980 = vst [vmem:[%s1946_s21 + $0x90] sm:$0xff] (%p2457_p6), %v1979_v24 }
 0x1bd   : > { %1982 = vst [vmem:[%s1946_s21 + $0x98] sm:$0xff] (%p2457_p6), %v1981_v25 }
 0x1be   : > { %1931 = vst [vmem:[%s2971_s12 + $0x60] sm:$0xff] %v2264_v41  ;;  %1932 = vst [vmem:[%s2971_s12 + $0x68] sm:$0xff] %v2265_v42 }
 0x1c0   : > { %v1967_v19 = vld [vmem:[%s2971_s12 + $0x20] sm:$0xff] (%p2457_p6) }
 0x1c1   : > { %v1969_v20 = vld [vmem:[%s2971_s12 + $0x28] sm:$0xff] (%p2457_p6)  ;;  %1968 = vst [vmem:[%s1946_s21 + $0x20] sm:$0xff] (%p2457_p6), %v1967_v19 }
 0x1c2   : > { %1970 = vst [vmem:[%s1946_s21 + $0x28] sm:$0xff] (%p2457_p6), %v1969_v20 }
 0x1c5   : > { %v1983_v26 = vld [vmem:[%s2971_s12 + $0x60] sm:$0xff] (%p2457_p6)  ;;  %v1985_v27 = vld [vmem:[%s2971_s12 + $0x68] sm:$0xff] (%p2457_p6) }
 0x1c6   : > { %1984 = vst [vmem:[%s1946_s21 + $0xa0] sm:$0xff] (%p2457_p6), %v1983_v26  ;;  %1986 = vst [vmem:[%s1946_s21 + $0xa8] sm:$0xff] (%p2457_p6), %v1985_v27 }
 0x1d4   : > { %v1675_v43 = vpop.f32.mrb[12].mxu0  ;;  %v1718_v45 = vpop.f32.mrb[12].mxu1 }
 0x1d5   : > { %v1676_v44 = vadd.f32 %v1675_v43, %v2957_v59  ;;  %v1677_v46 = vpop.f32.mrb[13].mxu0  ;;  %v1719_v47 = vadd.f32 %v1718_v45, %v2957_v59  ;;  %v1720_v49 = vpop.f32.mrb[13].mxu1 }
 0x1d6   : > { %v1678_v48 = vadd.f32 %v1677_v46, %v2957_v59  ;;  %v1679_v50 = vpop.f32.mrb[14].mxu0  ;;  %v1721_v52 = vadd.f32 %v1720_v49, %v2957_v59  ;;  %v1722_v54 = vpop.f32.mrb[14].mxu1 }
 0x1d7   : > { %vm1739_vm9 = vcmp.ge.f32.partialorder %v1676_v44, 0.0  ;;  %v1771_v51 = vmul.f32 0.1, %v1676_v44  ;;  %v1680_v53 = vadd.f32 %v1679_v50, %v2959_v61  ;;  %v1681_v55 = vpop.f32.mrb[15].mxu0  ;;  %vm1741_vm10 = vcmp.ge.f32.partialorder %v1719_v47, 0.0  ;;  %v1724_v62 = vpop.f32.mrb[15].mxu1 }
 0x1d8   : > { %v1773_v56 = vmul.f32 0.1, %v1719_v47  ;;  %vm1740_vm11 = vcmp.ge.f32.partialorder %v1678_v48, 0.0  ;;  %v1772_v57 = vmul.f32 0.1, %v1678_v48  ;;  %vm1742_vm12 = vcmp.ge.f32.partialorder %v1721_v52, 0.0 }
 0x1d9   : > { %v1803_v58 = vsel %vm1739_vm9, %v1676_v44, %v1771_v51  ;;  %v1774_v60 = vmul.f32 0.1, %v1721_v52  ;;  %vm1755_vm13 = vcmp.ge.f32.partialorder %v1680_v53, 0.0  ;;  %v1787_v1 = vmul.f32 0.1, %v1680_v53 }
 0x1da   : > { %v1805_v63 = vsel %vm1741_vm10, %v1719_v47, %v1773_v56  ;;  %v1804_v0 = vsel %vm1740_vm11, %v1678_v48, %v1772_v57  ;;  %v1723_v59 = vadd.f32 %v1722_v54, %v2959_v61  ;;  %v1682_v4 = vadd.f32 %v1681_v55, %v2959_v61 }
 0x1db   : > { %v2258_v2 = vpack.c.bf16 %v1804_v0, %v1803_v58  ;;  %v1806_v3 = vsel %vm1742_vm12, %v1721_v52, %v1774_v60  ;;  %v1725_v5 = vadd.f32 %v1724_v62, %v2959_v61  ;;  %v1819_v6 = vsel %vm1755_vm13, %v1680_v53, %v1787_v1  ;;  %v1959_v61 = vld [vmem:[%s2971_s12] sm:$0xff] (%p2457_p6) }
 0x1dc   : > { %v2259_v37 = vpack.c.bf16 %v1806_v3, %v1805_v63  ;;  %vm1757_vm14 = vcmp.ge.f32.partialorder %v1723_v59, 0.0  ;;  %v1789_v7 = vmul.f32 0.1, %v1723_v59  ;;  %vm1756_vm15 = vcmp.ge.f32.partialorder %v1682_v4, 0.0  ;;  %1941 = sbr.rel (!%p2457_p6) target bundleno = 491 (0x1eb), region = 59  ;;  %1960 = vst [vmem:[%s1946_s21] sm:$0xff] (%p2457_p6), %v1959_v61 }
 0x1dd   : > { %1925 = vst [vmem:[%s2971_s12 + $0x30] sm:$0xff] %v2258_v2  ;;  %v1788_v8 = vmul.f32 0.1, %v1682_v4  ;;  %vm1758_vm0 = vcmp.ge.f32.partialorder %v1725_v5, 0.0  ;;  %v1790_v9 = vmul.f32 0.1, %v1725_v5 }
 0x1de   : > { %1926 = vst [vmem:[%s2971_s12 + $0x38] sm:$0xff] %v2259_v37  ;;  %v1821_v10 = vsel %vm1757_vm14, %v1723_v59, %v1789_v7 }
 0x1df   : > { %v1820_v11 = vsel %vm1756_vm15, %v1682_v4, %v1788_v8  ;;  %v1822_v12 = vsel %vm1758_vm0, %v1725_v5, %v1790_v9 }
 0x1e0   : > { %v2266_v13 = vpack.c.bf16 %v1820_v11, %v1819_v6  ;;  %v2267_v14 = vpack.c.bf16 %v1822_v12, %v1821_v10 }
 0x1e2   : > { %1933 = vst [vmem:[%s2971_s12 + $0x70] sm:$0xff] %v2266_v13  ;;  %1934 = vst [vmem:[%s2971_s12 + $0x78] sm:$0xff] %v2267_v14 }
 0x1e4   : > { %v1971_v21 = vld [vmem:[%s2971_s12 + $0x30] sm:$0xff] }
 0x1e5   : > { %v1973_v16 = vld [vmem:[%s2971_s12 + $0x38] sm:$0xff]  ;;  %1972 = vst [vmem:[%s1946_s21 + $0x30] sm:$0xff] %v1971_v21 }
 0x1e6   : > { %1974 = vst [vmem:[%s1946_s21 + $0x38] sm:$0xff] %v1973_v16 }
 0x1e9   : > { %v1987_v28 = vld [vmem:[%s2971_s12 + $0x70] sm:$0xff]  ;;  %v1989_v29 = vld [vmem:[%s2971_s12 + $0x78] sm:$0xff] }
 0x1ea   : > { %1988 = vst [vmem:[%s1946_s21 + $0xb0] sm:$0xff] %v1987_v28  ;;  %1990 = vst [vmem:[%s1946_s21 + $0xb8] sm:$0xff] %v1989_v29 }
 0x1eb PF: > { %s13_s18 = sadd.s32 1, %s2386_s18   ;;  %s3062_s12 = smov %s2366_s13 }
 0x1ec   : > { %p10_p12 = scmp.ge.s32.totalorder %s13_s18, 6   ;;  %s3063_s13 = smov %s2465_s27 }
 0x1ed   : > { %s3064_s14 = smov %s2378_s16  ;;  %s3065_s15 = smov %s2382_s17 }
 0x1ee   : > { %s3066_s16 = smov %s3069_s19  ;;  %s3067_s17 = smov %s3073_s20 }
 0x1ef   :  { %12 = sbr.rel (!%p10_p12) target bundleno = 4 (0x4), region = 113 }

// kernel: run.6
= control target key start
LH: loop header
LB: loop body
LE: loop exit
PB: predicated region body
PF: predicated region fallthrough
CT: control target
= control target key end

     0   :  { %s1213_s12 = smov 0   ;;  %s1215_s13 = smov 0   ;;  %s1372_s0 = inlined_call_operand.vmem [shape: bf16[2,144,1024], index: 0, kind: input, shape index: {}]   ;;  %s1373_s1 = inlined_call_operand.vmem [shape: bf16[16,144], index: 1, kind: input, shape index: {}]   ;;  %s1374_s2 = inlined_call_operand.vmem [shape: f32[16,1], index: 2, kind: input, shape index: {}]   ;;  %s1375_s3 = inlined_call_operand.vmem [shape: bf16[2,16,1024], index: 3, kind: output, shape index: {}]  }
   0x1   :  { %s1217_s14 = smov 0  }
   0x2 LB: > { %s25_s15 = sadd.s32 1, %s1186_s13  ;;  %p1037_p0 = scmp.ge.s32.totalorder %s1190_s14, 1  ;;  %s1190_s14 = sphi %s1217_s14, %s13_s14   ;;  %s1186_s13 = sphi %s1215_s13, %s1377_s13   ;;  %s1182_s12 = sphi %s1213_s12, %s1376_s12  }
   0x3   : > { %p27_p1 = scmp.ge.s32.totalorder %s25_s15, 2  ;;  %p158_p2 = scmp.lt.s32.totalorder %s1190_s14, 3 }
   0x5   : > { %s1379_s15 = smov (%p27_p1, %s25_s15), 0  ;;  %p159_p3 = pnand %p1037_p0, %p158_p2 }
   0x6   : > { %p191_p4 = scmp.lt.s32.totalorder (!%p159_p3), %s1182_s12, 1  ;;  %v1234_v0 = vld [vmem:[%s1373_s1 + $0x4] ss:$8 sps:$4 sm:$0xff] (!%p159_p3)   ;;  %vm666_vm0 = vcmask (!%p159_p3), 130048   ;;  %v1192_v2 = vmov (!%p159_p3), 0  }
   0x7   : > { %162 = sbr.rel (%p159_p3) target bundleno = 320 (0x140), region = 32  ;;  %v285_v1 = vld [vmem:[%s1374_s2] sm:$0xff] (!%p159_p3)  ;;  %1115 = vmatprep.mubr.msk.bf16.mxu0 (!%p159_p3), %vm666_vm0, %v1234_v0  ;;  %1116 = vmatprep.mubr.msk.bf16.mxu1 (!%p159_p3), %vm666_vm0, %v1234_v0  ;;  %v286_v3 = vld [vmem:[%s1374_s2 + $0x8] sm:$0xff] (!%p159_p3) }
   0x8   : > { %1164 = vset.pattern.permute.xlu0 (!%p159_p3), %v1192_v2 }
   0x9   : > { %289 = vperm.xlu0 (!%p159_p3), %1164, %v285_v1  }
   0xd   : > { %294 = vperm.xlu0 (!%p159_p3), %1164, %v286_v3  }
   0xe   : > { %s1381_s12 = smov (!%p191_p4, %s1182_s12), 1 }
   0xf   : > { %s1138_s20 = smul.u32 576, %s1381_s12  ;;  %s1129_s28 = sshll.u32 %s1381_s12, 6 }
  0x10   : > { %s1346_s4 = scalar_lea.vmem %s1375_s3, %s1129_s28 }
  0x11   : > { %s1252_s25 = scalar_lea.vmem %s1372_s0, %s1138_s20 }
  0x12   : > { %v213_v4 = vld [vmem:[%s1252_s25] sm:$0xff]  ;;  %v214_v6 = vld [vmem:[%s1252_s25 + $0x8] sm:$0xff] }
  0x13   : > { %v217_v5 = vld [vmem:[%s1252_s25 + $0x20] sm:$0xff]  ;;  %v218_v8 = vld [vmem:[%s1252_s25 + $0x28] sm:$0xff] }
  0x14   : > { %v1044_v7 = vcombine.high %v213_v4, %v217_v5  ;;  %v1043_v9 = vcombine.low %v213_v4, %v217_v5  ;;  %v221_v10 = vld [vmem:[%s1252_s25 + $0x40] sm:$0xff]  ;;  %v1046_v12 = vcombine.high %v214_v6, %v218_v8  ;;  %v1045_v13 = vcombine.low %v214_v6, %v218_v8  ;;  %v222_v15 = vld [vmem:[%s1252_s25 + $0x48] sm:$0xff] }
  0x15   : > { %v225_v11 = vld [vmem:[%s1252_s25 + $0x60] sm:$0xff]  ;;  %v226_v16 = vld [vmem:[%s1252_s25 + $0x68] sm:$0xff] }
  0x16   : > { %v1052_v14 = vcombine.high %v221_v10, %v225_v11  ;;  %v229_v17 = vld [vmem:[%s1252_s25 + $0x80] sm:$0xff]  ;;  %670 = vmatprep.subr.bf16.mxu0 %v1044_v7  ;;  %v1054_v18 = vcombine.high %v222_v15, %v226_v16  ;;  %v230_v20 = vld [vmem:[%s1252_s25 + $0x88] sm:$0xff]  ;;  %713 = vmatprep.subr.bf16.mxu1 %v1046_v12  ;;  %v1051_v22 = vcombine.low %v221_v10, %v225_v11  ;;  %v215_v11 = vld [vmem:[%s1252_s25 + $0x10] sm:$0xff] }
  0x17   : > { %v233_v19 = vld [vmem:[%s1252_s25 + $0xa0] sm:$0xff]  ;;  %v234_v21 = vld [vmem:[%s1252_s25 + $0xa8] sm:$0xff]  ;;  %671 = vmatpush1.bf16.msra.mxu0 %v1043_v9  ;;  %714 = vmatpush1.bf16.msra.mxu1 %v1045_v13  ;;  %v1053_v23 = vcombine.low %v222_v15, %v226_v16  ;;  %v219_v12 = vld [vmem:[%s1252_s25 + $0x30] sm:$0xff] }
  0x18   : > { %672 = vmatprep.subr.bf16.mxu0 %v1052_v14  ;;  %v1060_v24 = vcombine.high %v229_v17, %v233_v19  ;;  %715 = vmatprep.subr.bf16.mxu1 %v1054_v18  ;;  %v1062_v25 = vcombine.high %v230_v20, %v234_v21  ;;  %v237_v26 = vld [vmem:[%s1252_s25 + $0xc0] sm:$0xff]  ;;  %v238_v28 = vld [vmem:[%s1252_s25 + $0xc8] sm:$0xff]  ;;  %v1059_v30 = vcombine.low %v229_v17, %v233_v19  ;;  %v216_v13 = vld [vmem:[%s1252_s25 + $0x18] sm:$0xff] }
  0x19   : > { %v241_v27 = vld [vmem:[%s1252_s25 + $0xe0] sm:$0xff]  ;;  %v242_v29 = vld [vmem:[%s1252_s25 + $0xe8] sm:$0xff]  ;;  %v1061_v31 = vcombine.low %v230_v20, %v234_v21  ;;  %v220_v14 = vld [vmem:[%s1252_s25 + $0x38] sm:$0xff]  ;;  %v1048_v17 = vcombine.high %v215_v11, %v219_v12 }
  0x1a   : > { %v1068_v32 = vcombine.high %v237_v26, %v241_v27  ;;  %v1070_v33 = vcombine.high %v238_v28, %v242_v29  ;;  %v245_v34 = vld [vmem:[%s1252_s25 + $0x100] sm:$0xff]  ;;  %v246_v36 = vld [vmem:[%s1252_s25 + $0x108] sm:$0xff]  ;;  %v1067_v38 = vcombine.low %v237_v26, %v241_v27  ;;  %v1069_v39 = vcombine.low %v238_v28, %v242_v29  ;;  %v223_v19 = vld [vmem:[%s1252_s25 + $0x50] sm:$0xff] }
  0x1b   : > { %673 = vmatpush1.bf16.msra.mxu0 %v1051_v22  ;;  %716 = vmatpush1.bf16.msra.mxu1 %v1053_v23  ;;  %v249_v35 = vld [vmem:[%s1252_s25 + $0x120] sm:$0xff]  ;;  %v250_v37 = vld [vmem:[%s1252_s25 + $0x128] sm:$0xff]  ;;  %v1050_v18 = vcombine.high %v216_v13, %v220_v14  ;;  %v227_v20 = vld [vmem:[%s1252_s25 + $0x70] sm:$0xff] }
  0x1c   : > { %674 = vmatprep.subr.bf16.mxu0 %v1060_v24  ;;  %717 = vmatprep.subr.bf16.mxu1 %v1062_v25  ;;  %v1076_v40 = vcombine.high %v245_v34, %v249_v35  ;;  %v1078_v41 = vcombine.high %v246_v36, %v250_v37  ;;  %v253_v42 = vld [vmem:[%s1252_s25 + $0x140] sm:$0xff]  ;;  %v254_v44 = vld [vmem:[%s1252_s25 + $0x148] sm:$0xff]  ;;  %v1075_v46 = vcombine.low %v245_v34, %v249_v35  ;;  %v224_v22 = vld [vmem:[%s1252_s25 + $0x58] sm:$0xff] }
  0x1d   : > { %v257_v43 = vld [vmem:[%s1252_s25 + $0x160] sm:$0xff]  ;;  %v258_v45 = vld [vmem:[%s1252_s25 + $0x168] sm:$0xff]  ;;  %v1077_v47 = vcombine.low %v246_v36, %v250_v37  ;;  %v228_v23 = vld [vmem:[%s1252_s25 + $0x78] sm:$0xff]  ;;  %v1047_v24 = vcombine.low %v215_v11, %v219_v12  ;;  %v1049_v25 = vcombine.low %v216_v13, %v220_v14  ;;  %v1056_v26 = vcombine.high %v223_v19, %v227_v20 }
  0x1e   : > { %v1084_v48 = vcombine.high %v253_v42, %v257_v43  ;;  %v1086_v49 = vcombine.high %v254_v44, %v258_v45  ;;  %v261_v50 = vld [vmem:[%s1252_s25 + $0x180] sm:$0xff]  ;;  %v262_v52 = vld [vmem:[%s1252_s25 + $0x188] sm:$0xff]  ;;  %v1083_v54 = vcombine.low %v253_v42, %v257_v43  ;;  %v1085_v55 = vcombine.low %v254_v44, %v258_v45  ;;  %v231_v28 = vld [vmem:[%s1252_s25 + $0x90] sm:$0xff] }
  0x1f   : > { %675 = vmatpush1.bf16.msra.mxu0 %v1059_v30  ;;  %718 = vmatpush1.bf16.msra.mxu1 %v1061_v31  ;;  %v265_v51 = vld [vmem:[%s1252_s25 + $0x1a0] sm:$0xff]  ;;  %v266_v53 = vld [vmem:[%s1252_s25 + $0x1a8] sm:$0xff]  ;;  %v1058_v27 = vcombine.high %v224_v22, %v228_v23  ;;  %v235_v29 = vld [vmem:[%s1252_s25 + $0xb0] sm:$0xff] }
  0x20   : > { %676 = vmatprep.subr.bf16.mxu0 %v1068_v32  ;;  %719 = vmatprep.subr.bf16.mxu1 %v1070_v33  ;;  %v1092_v56 = vcombine.high %v261_v50, %v265_v51  ;;  %v1094_v57 = vcombine.high %v262_v52, %v266_v53  ;;  %v269_v58 = vld [vmem:[%s1252_s25 + $0x1c0] sm:$0xff]  ;;  %v270_v60 = vld [vmem:[%s1252_s25 + $0x1c8] sm:$0xff]  ;;  %v1091_v62 = vcombine.low %v261_v50, %v265_v51  ;;  %v232_v30 = vld [vmem:[%s1252_s25 + $0x98] sm:$0xff] }
  0x21   : > { %v273_v59 = vld [vmem:[%s1252_s25 + $0x1e0] sm:$0xff]  ;;  %v274_v61 = vld [vmem:[%s1252_s25 + $0x1e8] sm:$0xff]  ;;  %v1093_v63 = vcombine.low %v262_v52, %v266_v53  ;;  %v236_v31 = vld [vmem:[%s1252_s25 + $0xb8] sm:$0xff]  ;;  %v1055_v32 = vcombine.low %v223_v19, %v227_v20  ;;  %v1057_v33 = vcombine.low %v224_v22, %v228_v23  ;;  %v1064_v34 = vcombine.high %v231_v28, %v235_v29 }
  0x22   : > { %v1100_v1 = vcombine.high %v269_v58, %v273_v59  ;;  %v1102_v2 = vcombine.high %v270_v60, %v274_v61  ;;  %v277_v3 = vld [vmem:[%s1252_s25 + $0x200] sm:$0xff]  ;;  %v278_v5 = vld [vmem:[%s1252_s25 + $0x208] sm:$0xff]  ;;  %v1099_v7 = vcombine.low %v269_v58, %v273_v59  ;;  %v1101_v8 = vcombine.low %v270_v60, %v274_v61  ;;  %v239_v36 = vld [vmem:[%s1252_s25 + $0xd0] sm:$0xff] }
  0x23   : > { %677 = vmatpush1.bf16.msra.mxu0 %v1067_v38  ;;  %720 = vmatpush1.bf16.msra.mxu1 %v1069_v39  ;;  %v281_v4 = vld [vmem:[%s1252_s25 + $0x220] sm:$0xff]  ;;  %v282_v6 = vld [vmem:[%s1252_s25 + $0x228] sm:$0xff]  ;;  %v1066_v35 = vcombine.high %v232_v30, %v236_v31  ;;  %v243_v37 = vld [vmem:[%s1252_s25 + $0xf0] sm:$0xff] }
  0x24   : > { %678 = vmatprep.subr.bf16.mxu0 %v1076_v40  ;;  %721 = vmatprep.subr.bf16.mxu1 %v1078_v41  ;;  %v1108_v9 = vcombine.high %v277_v3, %v281_v4  ;;  %v1110_v10 = vcombine.high %v278_v5, %v282_v6  ;;  %v1107_v15 = vcombine.low %v277_v3, %v281_v4  ;;  %v1299_v21 = vld [vmem:[%s1373_s1] ss:$8 sps:$4 sm:$0xff]   ;;  %v240_v38 = vld [vmem:[%s1252_s25 + $0xd8] sm:$0xff]  ;;  %v247_v44 = vld [vmem:[%s1252_s25 + $0x110] sm:$0xff] }
  0x25   : > { %v1109_v16 = vcombine.low %v278_v5, %v282_v6  ;;  %v244_v39 = vld [vmem:[%s1252_s25 + $0xf8] sm:$0xff]  ;;  %v1063_v40 = vcombine.low %v231_v28, %v235_v29  ;;  %v1065_v41 = vcombine.low %v232_v30, %v236_v31  ;;  %v1072_v42 = vcombine.high %v239_v36, %v243_v37  ;;  %v251_v45 = vld [vmem:[%s1252_s25 + $0x130] sm:$0xff] }
  0x26   : > { %v1074_v43 = vcombine.high %v240_v38, %v244_v39  ;;  %v255_v51 = vld [vmem:[%s1252_s25 + $0x150] sm:$0xff]  ;;  %v256_v53 = vld [vmem:[%s1252_s25 + $0x158] sm:$0xff] }
  0x27   : > { %679 = vmatpush1.bf16.msra.mxu0 %v1075_v46  ;;  %722 = vmatpush1.bf16.msra.mxu1 %v1077_v47  ;;  %v248_v46 = vld [vmem:[%s1252_s25 + $0x118] sm:$0xff]  ;;  %v259_v52 = vld [vmem:[%s1252_s25 + $0x170] sm:$0xff] }
  0x28   : > { %680 = vmatprep.subr.bf16.mxu0 %v1084_v48  ;;  %723 = vmatprep.subr.bf16.mxu1 %v1086_v49  ;;  %v252_v47 = vld [vmem:[%s1252_s25 + $0x138] sm:$0xff]  ;;  %v1071_v48 = vcombine.low %v239_v36, %v243_v37  ;;  %v1080_v49 = vcombine.high %v247_v44, %v251_v45  ;;  %v263_v59 = vld [vmem:[%s1252_s25 + $0x190] sm:$0xff] }
  0x29   : > { %v1082_v50 = vcombine.high %v248_v46, %v252_v47  ;;  %v267_v60 = vld [vmem:[%s1252_s25 + $0x1b0] sm:$0xff]  ;;  %v264_v61 = vld [vmem:[%s1252_s25 + $0x198] sm:$0xff] }
  0x2a   : > { %v271_v4 = vld [vmem:[%s1252_s25 + $0x1d0] sm:$0xff]  ;;  %v272_v6 = vld [vmem:[%s1252_s25 + $0x1d8] sm:$0xff] }
  0x2b   : > { %681 = vmatpush1.bf16.msra.mxu0 %v1083_v54  ;;  %724 = vmatpush1.bf16.msra.mxu1 %v1085_v55  ;;  %v260_v54 = vld [vmem:[%s1252_s25 + $0x178] sm:$0xff]  ;;  %v1079_v55 = vcombine.low %v247_v44, %v251_v45  ;;  %v275_v5 = vld [vmem:[%s1252_s25 + $0x1f0] sm:$0xff] }
  0x2c   : > { %682 = vmatprep.subr.bf16.mxu0 %v1092_v56  ;;  %725 = vmatprep.subr.bf16.mxu1 %v1094_v57  ;;  %v1081_v56 = vcombine.low %v248_v46, %v252_v47  ;;  %v1088_v57 = vcombine.high %v255_v51, %v259_v52  ;;  %v1090_v58 = vcombine.high %v256_v53, %v260_v54  ;;  %v279_v12 = vld [vmem:[%s1252_s25 + $0x210] sm:$0xff]  ;;  %v280_v14 = vld [vmem:[%s1252_s25 + $0x218] sm:$0xff] }
  0x2d   : > { %v283_v13 = vld [vmem:[%s1252_s25 + $0x230] sm:$0xff] }
  0x2e   : > { %v1111_v20 = vcombine.low %v279_v12, %v283_v13 }
  0x2f   : > { %683 = vmatpush1.bf16.msra.mxu0 %v1091_v62  ;;  %726 = vmatpush1.bf16.msra.mxu1 %v1093_v63  ;;  %v268_v62 = vld [vmem:[%s1252_s25 + $0x1b8] sm:$0xff]  ;;  %v1087_v63 = vcombine.low %v255_v51, %v259_v52 }
  0x30   : > { %684 = vmatprep.subr.bf16.mxu0 %v1100_v1  ;;  %727 = vmatprep.subr.bf16.mxu1 %v1102_v2  ;;  %v1089_v1 = vcombine.low %v256_v53, %v260_v54  ;;  %v1096_v2 = vcombine.high %v263_v59, %v267_v60  ;;  %v1098_v3 = vcombine.high %v264_v61, %v268_v62 }
  0x33   : > { %685 = vmatpush1.bf16.msra.mxu0 %v1099_v7  ;;  %728 = vmatpush1.bf16.msra.mxu1 %v1101_v8  ;;  %v276_v7 = vld [vmem:[%s1252_s25 + $0x1f8] sm:$0xff]  ;;  %v1095_v8 = vcombine.low %v263_v59, %v267_v60 }
  0x34   : > { %686 = vmatprep.subr.bf16.mxu0 %v1108_v9  ;;  %729 = vmatprep.subr.bf16.mxu1 %v1110_v10  ;;  %v1097_v9 = vcombine.low %v264_v61, %v268_v62  ;;  %v1104_v10 = vcombine.high %v271_v4, %v275_v5  ;;  %v1106_v11 = vcombine.high %v272_v6, %v276_v7 }
  0x37   : > { %687 = vmatpush1.bf16.msra.mxu0 %v1107_v15  ;;  %730 = vmatpush1.bf16.msra.mxu1 %v1109_v16  ;;  %v284_v15 = vld [vmem:[%s1252_s25 + $0x238] sm:$0xff]  ;;  %v1103_v16 = vcombine.low %v271_v4, %v275_v5 }
  0x38   : > { %756 = vmatprep.subr.bf16.mxu0 %v1048_v17  ;;  %799 = vmatprep.subr.bf16.mxu1 %v1050_v18  ;;  %v1105_v17 = vcombine.low %v272_v6, %v276_v7  ;;  %v1112_v18 = vcombine.high %v279_v12, %v283_v13  ;;  %v1114_v19 = vcombine.high %v280_v14, %v284_v15 }
  0x39   : > { %v1113_v22 = vcombine.low %v280_v14, %v284_v15 }
  0x3a   : > { %703 = vmatmul.mubr.bf16.vlgmr.msra.gmra.mrb[0].mxu0 %v1299_v21  ;;  %746 = vmatmul.mubr.bf16.vlgmr.msra.gmra.mrb[0].mxu1 %v1299_v21 }
  0x3b   : > { %757 = vmatpush1.bf16.msra.mxu0 %v1047_v24  ;;  %800 = vmatpush1.bf16.msra.mxu1 %v1049_v25 }
  0x3c   : > { %758 = vmatprep.subr.bf16.mxu0 %v1056_v26  ;;  %801 = vmatprep.subr.bf16.mxu1 %v1058_v27 }
  0x3d   : > { %1117 = vmatprep.mubr.msk.bf16.mxu0 %vm666_vm0, %v1234_v0  ;;  %1118 = vmatprep.mubr.msk.bf16.mxu1 %vm666_vm0, %v1234_v0  ;;  %v1073_v0 = vcombine.low %v240_v38, %v244_v39 }
  0x3f   : > { %759 = vmatpush1.bf16.msra.mxu0 %v1055_v32  ;;  %802 = vmatpush1.bf16.msra.mxu1 %v1057_v33 }
  0x40   : > { %760 = vmatprep.subr.bf16.mxu0 %v1064_v34  ;;  %803 = vmatprep.subr.bf16.mxu1 %v1066_v35 }
  0x43   : > { %761 = vmatpush1.bf16.msra.mxu0 %v1063_v40  ;;  %804 = vmatpush1.bf16.msra.mxu1 %v1065_v41 }
  0x44   : > { %762 = vmatprep.subr.bf16.mxu0 %v1072_v42  ;;  %805 = vmatprep.subr.bf16.mxu1 %v1074_v43 }
  0x47   : > { %763 = vmatpush1.bf16.msra.mxu0 %v1071_v48  ;;  %806 = vmatpush1.bf16.msra.mxu1 %v1073_v0 }
  0x48   : > { %764 = vmatprep.subr.bf16.mxu0 %v1080_v49  ;;  %807 = vmatprep.subr.bf16.mxu1 %v1082_v50 }
  0x4b   : > { %765 = vmatpush1.bf16.msra.mxu0 %v1079_v55  ;;  %808 = vmatpush1.bf16.msra.mxu1 %v1081_v56 }
  0x4c   : > { %766 = vmatprep.subr.bf16.mxu0 %v1088_v57  ;;  %809 = vmatprep.subr.bf16.mxu1 %v1090_v58 }
  0x4f   : > { %767 = vmatpush1.bf16.msra.mxu0 %v1087_v63  ;;  %810 = vmatpush1.bf16.msra.mxu1 %v1089_v1 }
  0x50   : > { %768 = vmatprep.subr.bf16.mxu0 %v1096_v2  ;;  %811 = vmatprep.subr.bf16.mxu1 %v1098_v3 }
  0x53   : > { %769 = vmatpush1.bf16.msra.mxu0 %v1095_v8  ;;  %812 = vmatpush1.bf16.msra.mxu1 %v1097_v9 }
  0x54   : > { %770 = vmatprep.subr.bf16.mxu0 %v1104_v10  ;;  %813 = vmatprep.subr.bf16.mxu1 %v1106_v11 }
  0x57   : > { %771 = vmatpush1.bf16.msra.mxu0 %v1103_v16  ;;  %814 = vmatpush1.bf16.msra.mxu1 %v1105_v17 }
  0x58   : > { %772 = vmatprep.subr.bf16.mxu0 %v1112_v18  ;;  %815 = vmatprep.subr.bf16.mxu1 %v1114_v19 }
  0x5b   : > { %773 = vmatpush1.bf16.msra.mxu0 %v1111_v20  ;;  %816 = vmatpush1.bf16.msra.mxu1 %v1113_v22 }
  0x5e   : > { %789 = vmatmul.mubr.bf16.vlgmr.msra.gmra.mrb[4].mxu0 %v1299_v21  ;;  %832 = vmatmul.mubr.bf16.vlgmr.msra.gmra.mrb[4].mxu1 %v1299_v21 }
  0x88   : > { %v290_v23 = vpop.permute.xlu0 %289 }
  0x8c   : > { %v1339_v25 = vpop.permute.xlu0 %294 }
 0x10d   : > { %v704_v24 = vpop.f32.mrb[0].mxu0  ;;  %v747_v27 = vpop.f32.mrb[0].mxu1 }
 0x10e   : > { %v705_v26 = vadd.f32 %v704_v24, %v290_v23  ;;  %v706_v28 = vpop.f32.mrb[1].mxu0  ;;  %v748_v29 = vadd.f32 %v747_v27, %v290_v23  ;;  %v749_v31 = vpop.f32.mrb[1].mxu1 }
 0x10f   : > { %v707_v30 = vadd.f32 %v706_v28, %v290_v23  ;;  %v708_v32 = vpop.f32.mrb[2].mxu0  ;;  %v750_v34 = vadd.f32 %v749_v31, %v290_v23  ;;  %v751_v36 = vpop.f32.mrb[2].mxu1 }
 0x110   : > { %vm842_vm1 = vcmp.ge.f32.partialorder %v705_v26, 0.0  ;;  %v858_v33 = vmul.f32 0.1, %v705_v26  ;;  %v709_v35 = vadd.f32 %v708_v32, %v1339_v25  ;;  %v710_v37 = vpop.f32.mrb[3].mxu0  ;;  %vm844_vm2 = vcmp.ge.f32.partialorder %v748_v29, 0.0  ;;  %v753_v41 = vpop.f32.mrb[3].mxu1 }
 0x111   : > { %v860_v21 = vmul.f32 0.1, %v748_v29  ;;  %vm843_vm3 = vcmp.ge.f32.partialorder %v707_v30, 0.0  ;;  %v859_v38 = vmul.f32 0.1, %v707_v30  ;;  %vm845_vm4 = vcmp.ge.f32.partialorder %v750_v34, 0.0 }
 0x112   : > { %v874_v39 = vsel %vm842_vm1, %v705_v26, %v858_v33  ;;  %v861_v40 = vmul.f32 0.1, %v750_v34  ;;  %vm850_vm5 = vcmp.ge.f32.partialorder %v709_v35, 0.0  ;;  %v866_v44 = vmul.f32 0.1, %v709_v35 }
 0x113   : > { %v876_v42 = vsel %vm844_vm2, %v748_v29, %v860_v21  ;;  %v875_v43 = vsel %vm843_vm3, %v707_v30, %v859_v38  ;;  %v752_v45 = vadd.f32 %v751_v36, %v1339_v25  ;;  %v711_v48 = vadd.f32 %v710_v37, %v1339_v25 }
 0x114   : > { %v1130_v46 = vpack.c.bf16 %v875_v43, %v874_v39  ;;  %v877_v47 = vsel %vm845_vm4, %v750_v34, %v861_v40  ;;  %v754_v0 = vadd.f32 %v753_v41, %v1339_v25  ;;  %v882_v50 = vsel %vm850_vm5, %v709_v35, %v866_v44 }
 0x115   : > { %v1131_v49 = vpack.c.bf16 %v877_v47, %v876_v42  ;;  %vm852_vm6 = vcmp.ge.f32.partialorder %v752_v45, 0.0  ;;  %v868_v51 = vmul.f32 0.1, %v752_v45  ;;  %vm851_vm7 = vcmp.ge.f32.partialorder %v711_v48, 0.0 }
 0x116   : > { %938 = vst [vmem:[%s1346_s4] sm:$0xff] %v1130_v46  ;;  %v867_v52 = vmul.f32 0.1, %v711_v48  ;;  %vm853_vm8 = vcmp.ge.f32.partialorder %v754_v0, 0.0  ;;  %v869_v53 = vmul.f32 0.1, %v754_v0 }
 0x117   : > { %939 = vst [vmem:[%s1346_s4 + $0x8] sm:$0xff] %v1131_v49  ;;  %v884_v54 = vsel %vm852_vm6, %v752_v45, %v868_v51 }
 0x118   : > { %v883_v55 = vsel %vm851_vm7, %v711_v48, %v867_v52  ;;  %v885_v56 = vsel %vm853_vm8, %v754_v0, %v869_v53 }
 0x119   : > { %v1134_v57 = vpack.c.bf16 %v883_v55, %v882_v50  ;;  %v1135_v58 = vpack.c.bf16 %v885_v56, %v884_v54 }
 0x11b   : > { %942 = vst [vmem:[%s1346_s4 + $0x20] sm:$0xff] %v1134_v57  ;;  %943 = vst [vmem:[%s1346_s4 + $0x28] sm:$0xff] %v1135_v58 }
 0x131   : > { %v790_v59 = vpop.f32.mrb[4].mxu0  ;;  %v833_v61 = vpop.f32.mrb[4].mxu1 }
 0x132   : > { %v791_v60 = vadd.f32 %v790_v59, %v290_v23  ;;  %v792_v62 = vpop.f32.mrb[5].mxu0  ;;  %v834_v63 = vadd.f32 %v833_v61, %v290_v23  ;;  %v835_v2 = vpop.f32.mrb[5].mxu1 }
 0x133   : > { %v793_v1 = vadd.f32 %v792_v62, %v290_v23  ;;  %v794_v3 = vpop.f32.mrb[6].mxu0  ;;  %v836_v5 = vadd.f32 %v835_v2, %v290_v23  ;;  %v837_v7 = vpop.f32.mrb[6].mxu1 }
 0x134   : > { %vm846_vm9 = vcmp.ge.f32.partialorder %v791_v60, 0.0  ;;  %v862_v4 = vmul.f32 0.1, %v791_v60  ;;  %v795_v6 = vadd.f32 %v794_v3, %v1339_v25  ;;  %v796_v8 = vpop.f32.mrb[7].mxu0  ;;  %vm848_vm10 = vcmp.ge.f32.partialorder %v834_v63, 0.0  ;;  %v839_v13 = vpop.f32.mrb[7].mxu1 }
 0x135   : > { %v864_v9 = vmul.f32 0.1, %v834_v63  ;;  %vm847_vm11 = vcmp.ge.f32.partialorder %v793_v1, 0.0  ;;  %v863_v10 = vmul.f32 0.1, %v793_v1  ;;  %vm849_vm12 = vcmp.ge.f32.partialorder %v836_v5, 0.0 }
 0x136   : > { %v878_v11 = vsel %vm846_vm9, %v791_v60, %v862_v4  ;;  %v865_v12 = vmul.f32 0.1, %v836_v5  ;;  %vm854_vm13 = vcmp.ge.f32.partialorder %v795_v6, 0.0  ;;  %v870_v16 = vmul.f32 0.1, %v795_v6 }
 0x137   : > { %v880_v14 = vsel %vm848_vm10, %v834_v63, %v864_v9  ;;  %v879_v15 = vsel %vm847_vm11, %v793_v1, %v863_v10  ;;  %v838_v17 = vadd.f32 %v837_v7, %v1339_v25  ;;  %v797_v20 = vadd.f32 %v796_v8, %v1339_v25 }
 0x138   : > { %v1132_v18 = vpack.c.bf16 %v879_v15, %v878_v11  ;;  %v881_v19 = vsel %vm849_vm12, %v836_v5, %v865_v12  ;;  %v840_v22 = vadd.f32 %v839_v13, %v1339_v25  ;;  %v886_v24 = vsel %vm854_vm13, %v795_v6, %v870_v16 }
 0x139   : > { %v1133_v23 = vpack.c.bf16 %v881_v19, %v880_v14  ;;  %vm856_vm14 = vcmp.ge.f32.partialorder %v838_v17, 0.0  ;;  %v872_v26 = vmul.f32 0.1, %v838_v17  ;;  %vm855_vm15 = vcmp.ge.f32.partialorder %v797_v20, 0.0 }
 0x13a   : > { %940 = vst [vmem:[%s1346_s4 + $0x10] sm:$0xff] %v1132_v18  ;;  %v871_v27 = vmul.f32 0.1, %v797_v20  ;;  %vm857_vm0 = vcmp.ge.f32.partialorder %v840_v22, 0.0  ;;  %v873_v28 = vmul.f32 0.1, %v840_v22 }
 0x13b   : > { %941 = vst [vmem:[%s1346_s4 + $0x18] sm:$0xff] %v1133_v23  ;;  %v888_v29 = vsel %vm856_vm14, %v838_v17, %v872_v26 }
 0x13c   : > { %v887_v30 = vsel %vm855_vm15, %v797_v20, %v871_v27  ;;  %v889_v31 = vsel %vm857_vm0, %v840_v22, %v873_v28 }
 0x13d   : > { %v1136_v32 = vpack.c.bf16 %v887_v30, %v886_v24  ;;  %v1137_v33 = vpack.c.bf16 %v889_v31, %v888_v29 }
 0x13f   : > { %944 = vst [vmem:[%s1346_s4 + $0x30] sm:$0xff] %v1136_v32  ;;  %945 = vst [vmem:[%s1346_s4 + $0x38] sm:$0xff] %v1137_v33 }
 0x140 PF: > { %s13_s14 = sadd.s32 1, %s1190_s14   ;;  %s1376_s12 = smov %s1186_s13 }
 0x141   : > { %p10_p5 = scmp.ge.s32.totalorder %s13_s14, 4   ;;  %s1377_s13 = smov %s1379_s15 }
 0x143   :  { %12 = sbr.rel (!%p10_p5) target bundleno = 2 (0x2), region = 62 }

// kernel: run.7
= control target key start
LH: loop header
LB: loop body
LE: loop exit
PB: predicated region body
PF: predicated region fallthrough
CT: control target
= control target key end

     0   :  { %s4747_s29 = smov 0   ;;  %s5744_s0 = inlined_call_operand.vmem [shape: bf16[2,144,225], index: 0, kind: input, shape index: {}]   ;;  %s5745_s1 = inlined_call_operand.vmem [shape: bf16[16,144], index: 1, kind: input, shape index: {}]   ;;  %s5746_s2 = inlined_call_operand.vmem [shape: f32[16,1], index: 2, kind: input, shape index: {}]   ;;  %s5747_s3 = inlined_call_operand.vmem [shape: bf16[9,225,49], index: 3, kind: input, shape index: {}]   ;;  %s5748_s4 = inlined_call_operand.vmem [shape: bf16[16,144], index: 4, kind: input, shape index: {}]   ;;  %s5749_s5 = inlined_call_operand.vmem [shape: f32[16,1], index: 5, kind: input, shape index: {}]   ;;  %s5750_s6 = inlined_call_operand.vmem [shape: bf16[9,49,9], index: 6, kind: input, shape index: {}]   ;;  %s5751_s7 = inlined_call_operand.vmem [shape: bf16[16,144], index: 7, kind: input, shape index: {}]   ;;  %s5752_s8 = inlined_call_operand.vmem [shape: f32[16,1], index: 8, kind: input, shape index: {}]   ;;  %s5753_s9 = inlined_call_operand.vmem [shape: bf16[9,9,1], index: 9, kind: input, shape index: {}]   ;;  %s5754_s10 = inlined_call_operand.vmem [shape: bf16[16,144], index: 10, kind: input, shape index: {}]   ;;  %s5755_s11 = inlined_call_operand.vmem [shape: f32[16,1], index: 11, kind: input, shape index: {}]   ;;  %s5756_s12 = inlined_call_operand.vmem [shape: bf16[8,16], index: 12, kind: input, shape index: {}]   ;;  %s5757_s13 = inlined_call_operand.vmem [shape: f32[8,1], index: 13, kind: input, shape index: {}]   ;;  %s5758_s14 = inlined_call_operand.vmem [shape: f32[2,8,1], index: 14, kind: output, shape index: {}]  }
   0x1 LB: > { %s3642_s30 = sadd.s32 4294967295, %s4666_s29   ;;  %p3646_p0 = scmp.ge.s32.totalorder %s4666_s29, 1  ;;  %s4666_s29 = sphi %s4747_s29, %s24_s29  }
   0x2   : > { %p412_p1 = scmp.lt.s32.totalorder %s4666_s29, 3 }
   0x4   : > { %p413_p2 = pnand %p3646_p0, %p412_p1 }
   0x5   : > { %p457_p3 = scmp.lt.s32.totalorder (!%p413_p2), %s3642_s30, 1  ;;  %vm598_vm0 = vcmask (!%p413_p2), 130048   ;;  %v4470_v0 = vld [vmem:[%s5745_s1 + $0x4] ss:$8 sps:$4 sm:$0xff] (!%p413_p2)   ;;  %v4668_v2 = vmov (!%p413_p2), 0   ;;  %v4475_v16 = vld [vmem:[%s5747_s3 + $0x10] sm:$0xff] (!%p413_p2)  }
   0x6   : > { %416 = sbr.rel (%p413_p2) target bundleno = 2179 (0x883), region = 76  ;;  %v487_v1 = vld [vmem:[%s5746_s2] sm:$0xff] (!%p413_p2)  ;;  %4439 = vset.pattern.permute.xlu0 (!%p413_p2), %v4668_v2  ;;  %785 = vmatprep.subr.bf16.mxu1 (!%p413_p2), %v4668_v2  ;;  %v488_v4 = vld [vmem:[%s5746_s2 + $0x8] sm:$0xff] (!%p413_p2)  ;;  %v4477_v17 = vld [vmem:[%s5747_s3 + $0x18] sm:$0xff] (!%p413_p2)   ;;  %vm779_vm1 = vcmask (!%p413_p2), 1040384   ;;  %vm775_vm6 = vcmask (!%p413_p2), 793600  }
   0x7   : > { %3669 = vmatprep.mubr.msk.bf16.mxu0 (!%p413_p2), %vm598_vm0, %v4470_v0  ;;  %491 = vperm.xlu0 (!%p413_p2), %4439, %v487_v1   ;;  %v4471_v3 = vld [vmem:[%s5747_s3] sm:$0xff] (!%p413_p2)   ;;  %v4473_v5 = vld [vmem:[%s5747_s3 + $0x8] sm:$0xff] (!%p413_p2)   ;;  %v4483_v26 = vld [vmem:[%s5747_s3 + $0x30] sm:$0xff] (!%p413_p2)   ;;  %v4917_v53 = vsel (!%p413_p2), %vm779_vm1, 65535, %v4668_v2  ;;  %vm827_vm7 = vcmask (!%p413_p2), 400384   ;;  %vm4670_vm8 = vmmov (!%p413_p2), 0  }
   0x8   : > { %4440 = vset.pattern.permute.xlu1 (!%p413_p2), %v4668_v2  ;;  %786 = vmatpush1.bf16.msra.mxu1 (!%p413_p2), %v4471_v3  ;;  %v2905_v6 = vld [vmem:[%s5752_s8] sm:$0xff] (!%p413_p2)  ;;  %v4481_v23 = vld [vmem:[%s5747_s3 + $0x28] sm:$0xff] (!%p413_p2)   ;;  %v4485_v29 = vld [vmem:[%s5747_s3 + $0x38] sm:$0xff] (!%p413_p2)   ;;  %vm2292_vm11 = vcmask (!%p413_p2), 72704   ;;  %vm2987_vm12 = vcmask (!%p413_p2), 1043456   ;;  %vm2988_vm13 = vcmask (!%p413_p2), 1044480  }
   0x9   : > { %787 = vmatprep.subr.bf16.mxu1 (!%p413_p2), %v4668_v2  ;;  %v4479_v20 = vld [vmem:[%s5747_s3 + $0x20] sm:$0xff] (!%p413_p2)   ;;  %v4472_v33 = vld [vmem:[%s5747_s3 + $0x74] sm:$0xff] (!%p413_p2)   ;;  %v4489_v34 = vld [vmem:[%s5747_s3 + $0x48] sm:$0xff] (!%p413_p2)   ;;  %vm3036_vm1 = vcmask (!%p413_p2), 7168  }
   0xa   : > { %v4468_v31 = vld [vmem:[%s5745_s1] ss:$8 sps:$4 sm:$0xff] (!%p413_p2)   ;;  %v4491_v36 = vld [vmem:[%s5747_s3 + $0x50] sm:$0xff] (!%p413_p2)   ;;  %v4493_v38 = vld [vmem:[%s5747_s3 + $0x58] sm:$0xff] (!%p413_p2)  }
   0xb   : > { %496 = vperm.xlu0 (!%p413_p2), %4439, %v488_v4   ;;  %v4487_v32 = vld [vmem:[%s5747_s3 + $0x40] sm:$0xff] (!%p413_p2)   ;;  %v4478_v39 = vld [vmem:[%s5747_s3 + $0x8c] sm:$0xff] (!%p413_p2)   ;;  %v4480_v40 = vld [vmem:[%s5747_s3 + $0x94] sm:$0xff] (!%p413_p2)  }
   0xc   : > { %788 = vmatpush1.bf16.msra.mxu1 (!%p413_p2), %v4473_v5  ;;  %v4474_v35 = vld [vmem:[%s5747_s3 + $0x7c] sm:$0xff] (!%p413_p2)   ;;  %v4476_v37 = vld [vmem:[%s5747_s3 + $0x84] sm:$0xff] (!%p413_p2)   ;;  %v4486_v43 = vld [vmem:[%s5747_s3 + $0xac] sm:$0xff] (!%p413_p2)  }
   0xd   : > { %s5760_s30 = smov (!%p457_p3, %s3642_s30), 1  ;;  %789 = vmatprep.subr.bf16.mxu1 %v4668_v2  ;;  %v4482_v41 = vld [vmem:[%s5747_s3 + $0x9c] sm:$0xff]   ;;  %v4484_v42 = vld [vmem:[%s5747_s3 + $0xa4] sm:$0xff]   ;;  %v4488_v44 = vld [vmem:[%s5747_s3 + $0xb4] sm:$0xff]  }
   0xe   : > { %s4426_s21 = smul.u32 144, %s5760_s30  ;;  %v4490_v45 = vld [vmem:[%s5747_s3 + $0xbc] sm:$0xff]   ;;  %v4492_v46 = vld [vmem:[%s5747_s3 + $0xc4] sm:$0xff]   ;;  %v4494_v47 = vld [vmem:[%s5747_s3 + $0xcc] sm:$0xff]  }
   0xf   : > { %2909 = vperm.xlu0 %4439, %v2905_v6   ;;  %v4495_v48 = vld [vmem:[%s5747_s3 + $0x60] sm:$0xff]   ;;  %v4496_v49 = vld [vmem:[%s5747_s3 + $0xd4] sm:$0xff]   ;;  %v4497_v50 = vld [vmem:[%s5747_s3 + $0x68] sm:$0xff]  }
  0x10   : > { %s4780_s28 = scalar_lea.vmem %s5744_s0, %s4426_s21  ;;  %790 = vmatpush1.bf16.msra.mxu1 %v4475_v16  ;;  %v4498_v51 = vld [vmem:[%s5747_s3 + $0xdc] sm:$0xff]   ;;  %v4499_v52 = vld [vmem:[%s5747_s3 + $0x70] ss:$0 sps:$4 sm:$0x11]  }
  0x11   : > { %v4441_v7 = vld [vmem:[%s4780_s28 + $0x4] ss:$8 sps:$4 sm:$0xff]   ;;  %v4443_v8 = vld [vmem:[%s4780_s28] ss:$8 sps:$4 sm:$0xff]   ;;  %v4444_v9 = vld [vmem:[%s4780_s28 + $0x14] ss:$8 sps:$4 sm:$0xff]   ;;  %791 = vmatprep.subr.bf16.mxu1 %v4668_v2  ;;  %v783_v55 = vand.u32 %v4499_v52, %v4917_v53 }
  0x12   : > { %602 = vmatprep.subr.bf16.mxu0 %v4441_v7  ;;  %v4446_v10 = vld [vmem:[%s4780_s28 + $0x10] ss:$8 sps:$4 sm:$0xff]   ;;  %v4447_v11 = vld [vmem:[%s4780_s28 + $0x24] ss:$8 sps:$4 sm:$0xff]   ;;  %v4449_v12 = vld [vmem:[%s4780_s28 + $0x20] ss:$8 sps:$4 sm:$0xff]  }
  0x13   : > { %603 = vmatpush1.bf16.msra.mxu0 %v4443_v8  ;;  %v4450_v13 = vld [vmem:[%s4780_s28 + $0x34] ss:$8 sps:$4 sm:$0xff]   ;;  %v4452_v14 = vld [vmem:[%s4780_s28 + $0x30] ss:$8 sps:$4 sm:$0xff]   ;;  %v4453_v15 = vld [vmem:[%s4780_s28 + $0x44] ss:$8 sps:$4 sm:$0xff]  }
  0x14   : > { %604 = vmatprep.subr.bf16.mxu0 %v4444_v9  ;;  %v4455_v18 = vld [vmem:[%s4780_s28 + $0x40] ss:$8 sps:$4 sm:$0xff]   ;;  %v4456_v19 = vld [vmem:[%s4780_s28 + $0x54] ss:$8 sps:$4 sm:$0xff]   ;;  %792 = vmatpush1.bf16.msra.mxu1 %v4477_v17  ;;  %v4458_v21 = vld [vmem:[%s4780_s28 + $0x50] ss:$8 sps:$4 sm:$0xff]  }
  0x15   : > { %793 = vmatprep.subr.bf16.mxu1 %v4668_v2  ;;  %v4459_v22 = vld [vmem:[%s4780_s28 + $0x64] ss:$8 sps:$4 sm:$0xff]   ;;  %v4461_v24 = vld [vmem:[%s4780_s28 + $0x60] ss:$8 sps:$4 sm:$0xff]   ;;  %v4462_v25 = vld [vmem:[%s4780_s28 + $0x74] ss:$8 sps:$4 sm:$0xff]  }
  0x16   : > { %v4464_v27 = vld [vmem:[%s4780_s28 + $0x70] ss:$8 sps:$4 sm:$0xff]   ;;  %v4465_v28 = vld [vmem:[%s4780_s28 + $0x84] ss:$8 sps:$4 sm:$0xff]   ;;  %v4467_v30 = vld [vmem:[%s4780_s28 + $0x80] ss:$8 sps:$4 sm:$0xff]  }
  0x17   : > { %605 = vmatpush1.bf16.msra.mxu0 %v4446_v10  ;;  %v4500_v54 = vld [vmem:[%s5747_s3 + $0xe4] ss:$0 sps:$4 sm:$0x11]   ;;  %v4503_v16 = vld [vmem:[%s5747_s3 + $0xf0] sm:$0xff]   ;;  %v4537_v52 = vld [vmem:[%s5747_s3 + $0x1e8] sm:$0xff]   ;;  %s3648_s28 = sshll.u32 %s5760_s30, 3 }
  0x18   : > { %606 = vmatprep.subr.bf16.mxu0 %v4447_v11  ;;  %794 = vmatpush1.bf16.msra.mxu1 %v4479_v20  ;;  %v947_v56 = vand.u32 %v4500_v54, %v4917_v53  ;;  %v4504_v17 = vld [vmem:[%s5747_s3 + $0x164] sm:$0xff]   ;;  %v4538_v54 = vld [vmem:[%s5747_s3 + $0x25c] sm:$0xff]   ;;  %s465_s26 = scalar_lea.vmem %s5758_s14, %s3648_s28 }
  0x19   : > { %795 = vmatprep.subr.bf16.mxu1 %v4668_v2  ;;  %v4507_v20 = vld [vmem:[%s5747_s3 + $0x100] sm:$0xff]  }
  0x1b   : > { %607 = vmatpush1.bf16.msra.mxu0 %v4449_v12 }
  0x1c   : > { %608 = vmatprep.subr.bf16.mxu0 %v4450_v13  ;;  %796 = vmatpush1.bf16.msra.mxu1 %v4481_v23  ;;  %v4510_v23 = vld [vmem:[%s5747_s3 + $0x17c] sm:$0xff]  }
  0x1d   : > { %797 = vmatprep.subr.bf16.mxu1 %v4668_v2 }
  0x1f   : > { %609 = vmatpush1.bf16.msra.mxu0 %v4452_v14  ;;  %v4501_v14 = vld [vmem:[%s5747_s3 + $0xe8] sm:$0xff]  }
  0x20   : > { %610 = vmatprep.subr.bf16.mxu0 %v4453_v15  ;;  %798 = vmatpush1.bf16.msra.mxu1 %v4483_v26  ;;  %v4502_v15 = vld [vmem:[%s5747_s3 + $0x15c] sm:$0xff]  }
  0x21   : > { %799 = vmatprep.subr.bf16.mxu1 %v4668_v2  ;;  %v4513_v26 = vld [vmem:[%s5747_s3 + $0x118] sm:$0xff]  }
  0x23   : > { %611 = vmatpush1.bf16.msra.mxu0 %v4455_v18  ;;  %v4505_v18 = vld [vmem:[%s5747_s3 + $0xf8] sm:$0xff]  }
  0x24   : > { %612 = vmatprep.subr.bf16.mxu0 %v4456_v19  ;;  %800 = vmatpush1.bf16.msra.mxu1 %v4485_v29  ;;  %v4506_v19 = vld [vmem:[%s5747_s3 + $0x16c] sm:$0xff]   ;;  %v4516_v29 = vld [vmem:[%s5747_s3 + $0x194] sm:$0xff]  }
  0x25   : > { %801 = vmatprep.subr.bf16.mxu1 %v4668_v2 }
  0x27   : > { %613 = vmatpush1.bf16.msra.mxu0 %v4458_v21  ;;  %v4508_v21 = vld [vmem:[%s5747_s3 + $0x174] sm:$0xff]  }
  0x28   : > { %614 = vmatprep.subr.bf16.mxu0 %v4459_v22  ;;  %802 = vmatpush1.bf16.msra.mxu1 %v4487_v32  ;;  %v4509_v22 = vld [vmem:[%s5747_s3 + $0x108] sm:$0xff]   ;;  %v4519_v32 = vld [vmem:[%s5747_s3 + $0x130] sm:$0xff]  }
  0x29   : > { %803 = vmatprep.subr.bf16.mxu1 %v4668_v2 }
  0x2b   : > { %615 = vmatpush1.bf16.msra.mxu0 %v4461_v24  ;;  %v4511_v24 = vld [vmem:[%s5747_s3 + $0x110] sm:$0xff]  }
  0x2c   : > { %616 = vmatprep.subr.bf16.mxu0 %v4462_v25  ;;  %804 = vmatpush1.bf16.msra.mxu1 %v4489_v34  ;;  %v4512_v25 = vld [vmem:[%s5747_s3 + $0x184] sm:$0xff]   ;;  %v4521_v34 = vld [vmem:[%s5747_s3 + $0x138] sm:$0xff]  }
  0x2d   : > { %805 = vmatprep.subr.bf16.mxu1 %v4668_v2 }
  0x2f   : > { %617 = vmatpush1.bf16.msra.mxu0 %v4464_v27  ;;  %v4514_v27 = vld [vmem:[%s5747_s3 + $0x18c] sm:$0xff]  }
  0x30   : > { %618 = vmatprep.subr.bf16.mxu0 %v4465_v28  ;;  %806 = vmatpush1.bf16.msra.mxu1 %v4491_v36  ;;  %v4515_v28 = vld [vmem:[%s5747_s3 + $0x120] sm:$0xff]  }
  0x31   : > { %807 = vmatprep.subr.bf16.mxu1 %v4668_v2  ;;  %v4523_v36 = vld [vmem:[%s5747_s3 + $0x140] sm:$0xff]  }
  0x33   : > { %619 = vmatpush1.bf16.msra.mxu0 %v4467_v30  ;;  %v4517_v30 = vld [vmem:[%s5747_s3 + $0x128] sm:$0xff]  }
  0x34   : > { %949 = vmatprep.subr.bf16.mxu0 %v4668_v2  ;;  %808 = vmatpush1.bf16.msra.mxu1 %v4493_v38  ;;  %v4525_v38 = vld [vmem:[%s5747_s3 + $0x148] sm:$0xff]  }
  0x35   : > { %809 = vmatprep.subr.bf16.mxu1 %v4668_v2 }
  0x36   : > { %635 = vmatmul.mubr.bf16.vlgmr.msra.gmra.mrb[0].mxu0 %v4468_v31  ;;  %v4518_v31 = vld [vmem:[%s5747_s3 + $0x19c] sm:$0xff]  }
  0x37   : > { %950 = vmatpush1.bf16.msra.mxu0 %v4472_v33  ;;  %v4520_v33 = vld [vmem:[%s5747_s3 + $0x1a4] sm:$0xff]  }
  0x38   : > { %951 = vmatprep.subr.bf16.mxu0 %v4668_v2  ;;  %810 = vmatpush1.bf16.msra.mxu1 %v4495_v48  ;;  %v4533_v48 = vld [vmem:[%s5747_s3 + $0x1d8] sm:$0xff]  }
  0x39   : > { %811 = vmatprep.subr.bf16.mxu1 %v4668_v2 }
  0x3b   : > { %952 = vmatpush1.bf16.msra.mxu0 %v4474_v35  ;;  %v4522_v35 = vld [vmem:[%s5747_s3 + $0x1ac] sm:$0xff]  }
  0x3c   : > { %953 = vmatprep.subr.bf16.mxu0 %v4668_v2  ;;  %812 = vmatpush1.bf16.msra.mxu1 %v4497_v50  ;;  %v4535_v50 = vld [vmem:[%s5747_s3 + $0x1e0] sm:$0xff]  }
  0x3d   : > { %813 = vmatprep.subr.bf16.mxu1 %v4668_v2 }
  0x3f   : > { %954 = vmatpush1.bf16.msra.mxu0 %v4476_v37  ;;  %v4524_v37 = vld [vmem:[%s5747_s3 + $0x1b4] sm:$0xff]  }
  0x40   : > { %955 = vmatprep.subr.bf16.mxu0 %v4668_v2  ;;  %814 = vmatpush1.bf16.msra.mxu1 %v783_v55  ;;  %v4539_v55 = vld [vmem:[%s5747_s3 + $0x1f0] sm:$0xff]  }
  0x41   : > { %1112 = vmatprep.subr.bf16.mxu1 %v4668_v2 }
  0x43   : > { %956 = vmatpush1.bf16.msra.mxu0 %v4478_v39  ;;  %v4526_v39 = vld [vmem:[%s5747_s3 + $0x1bc] sm:$0xff]  }
  0x44   : > { %957 = vmatprep.subr.bf16.mxu0 %v4668_v2 }
  0x47   : > { %958 = vmatpush1.bf16.msra.mxu0 %v4480_v40  ;;  %v4527_v40 = vld [vmem:[%s5747_s3 + $0x150] sm:$0xff]  }
  0x48   : > { %959 = vmatprep.subr.bf16.mxu0 %v4668_v2 }
  0x4b   : > { %960 = vmatpush1.bf16.msra.mxu0 %v4482_v41  ;;  %v4528_v41 = vld [vmem:[%s5747_s3 + $0x1c4] sm:$0xff]  }
  0x4c   : > { %961 = vmatprep.subr.bf16.mxu0 %v4668_v2 }
  0x4f   : > { %962 = vmatpush1.bf16.msra.mxu0 %v4484_v42  ;;  %v4529_v42 = vld [vmem:[%s5747_s3 + $0x158] ss:$0 sps:$4 sm:$0x11]  }
  0x50   : > { %963 = vmatprep.subr.bf16.mxu0 %v4668_v2 }
  0x53   : > { %964 = vmatpush1.bf16.msra.mxu0 %v4486_v43  ;;  %v4530_v43 = vld [vmem:[%s5747_s3 + $0x1cc] ss:$0 sps:$4 sm:$0x11]  }
  0x54   : > { %965 = vmatprep.subr.bf16.mxu0 %v4668_v2 }
  0x57   : > { %966 = vmatpush1.bf16.msra.mxu0 %v4488_v44  ;;  %v1110_v44 = vand.u32 %v4529_v42, %v4917_v53  ;;  %v4585_v42 = vld [vmem:[%s5747_s3 + $0x318] sm:$0xff]  }
  0x58   : > { %967 = vmatprep.subr.bf16.mxu0 %v4668_v2 }
  0x5b   : > { %968 = vmatpush1.bf16.msra.mxu0 %v4490_v45  ;;  %v1273_v45 = vand.u32 %v4530_v43, %v4917_v53  ;;  %v4586_v43 = vld [vmem:[%s5747_s3 + $0x38c] sm:$0xff]  }
  0x5c   : > { %969 = vmatprep.subr.bf16.mxu0 %v4668_v2 }
  0x5f   : > { %970 = vmatpush1.bf16.msra.mxu0 %v4492_v46  ;;  %v4531_v46 = vld [vmem:[%s5747_s3 + $0x1d0] sm:$0xff]  }
  0x60   : > { %971 = vmatprep.subr.bf16.mxu0 %v4668_v2 }
  0x63   : > { %972 = vmatpush1.bf16.msra.mxu0 %v4494_v47  ;;  %v4532_v47 = vld [vmem:[%s5747_s3 + $0x244] sm:$0xff]  }
  0x64   : > { %973 = vmatprep.subr.bf16.mxu0 %v4668_v2 }
  0x67   : > { %974 = vmatpush1.bf16.msra.mxu0 %v4496_v49  ;;  %v4534_v49 = vld [vmem:[%s5747_s3 + $0x24c] sm:$0xff]  }
  0x68   : > { %975 = vmatprep.subr.bf16.mxu0 %v4668_v2 }
  0x6b   : > { %976 = vmatpush1.bf16.msra.mxu0 %v4498_v51  ;;  %v4536_v51 = vld [vmem:[%s5747_s3 + $0x254] sm:$0xff]  }
  0x6c   : > { %977 = vmatprep.subr.bf16.mxu0 %v4668_v2 }
  0x6f   : > { %978 = vmatpush1.bf16.msra.mxu0 %v947_v56  ;;  %v4540_v56 = vld [vmem:[%s5747_s3 + $0x264] sm:$0xff]  }
  0x70   : > { %1275 = vmatprep.subr.bf16.mxu0 %v4668_v2 }
  0x86   : > { %v492_v57 = vpop.permute.xlu0 %491 }
  0x8a   : > { %v497_v61 = vpop.permute.xlu0 %496 }
 0x109   : > { %v636_v58 = vpop.f32.mrb[0].mxu0 }
 0x10a   : > { %v637_v59 = vadd.f32 %v636_v58, %v492_v57  ;;  %v638_v60 = vpop.f32.mrb[1].mxu0  ;;  %v4542_v58 = vld [vmem:[%s5747_s3 + $0x26c] sm:$0xff]  }
 0x10b   : > { %v639_v62 = vadd.f32 %v638_v60, %v492_v57  ;;  %v640_v63 = vpop.f32.mrb[2].mxu0  ;;  %v4541_v57 = vld [vmem:[%s5747_s3 + $0x1f8] sm:$0xff]  }
 0x10c   : > { %v649_v0 = vmul.f32 0.1, %v637_v59  ;;  %v641_v1 = vadd.f32 %v640_v63, %v497_v61  ;;  %v642_v3 = vpop.f32.mrb[3].mxu0  ;;  %vm645_vm2 = vcmp.ge.f32.partialorder %v637_v59, 0.0  ;;  %v4544_v60 = vld [vmem:[%s5747_s3 + $0x274] sm:$0xff]  }
 0x10d   : > { %v650_v4 = vmul.f32 0.1, %v639_v62  ;;  %v643_v5 = vadd.f32 %v642_v3, %v497_v61  ;;  %vm646_vm3 = vcmp.ge.f32.partialorder %v639_v62, 0.0  ;;  %v4545_v61 = vld [vmem:[%s5747_s3 + $0x208] sm:$0xff]   ;;  %v4547_v63 = vld [vmem:[%s5747_s3 + $0x210] sm:$0xff]  }
 0x10e   : > { %vm647_vm4 = vcmp.ge.f32.partialorder %v641_v1, 0.0  ;;  %v651_v6 = vmul.f32 0.1, %v641_v1  ;;  %v653_v8 = vsel %vm645_vm2, %v637_v59, %v649_v0  ;;  %v4543_v59 = vld [vmem:[%s5747_s3 + $0x200] sm:$0xff]   ;;  %v4550_v3 = vld [vmem:[%s5747_s3 + $0x28c] sm:$0xff]  }
 0x10f   : > { %vm648_vm5 = vcmp.ge.f32.partialorder %v643_v5, 0.0  ;;  %v652_v7 = vmul.f32 0.1, %v643_v5  ;;  %v654_v10 = vsel %vm646_vm3, %v639_v62, %v650_v4  ;;  %v4546_v62 = vld [vmem:[%s5747_s3 + $0x27c] sm:$0xff]   ;;  %v4548_v0 = vld [vmem:[%s5747_s3 + $0x284] sm:$0xff]  }
 0x110   : > { %v655_v9 = vsel %vm647_vm4, %v641_v1, %v651_v6  ;;  %v4549_v1 = vld [vmem:[%s5747_s3 + $0x218] sm:$0xff]   ;;  %v4551_v4 = vld [vmem:[%s5747_s3 + $0x220] sm:$0xff]   ;;  %v4553_v6 = vld [vmem:[%s5747_s3 + $0x228] sm:$0xff]  }
 0x111   : > { %v4926_v11 = vpack.c.bf16 %v655_v9, %v653_v8  ;;  %v656_v12 = vsel %vm648_vm5, %v643_v5, %v652_v7  ;;  %v4552_v5 = vld [vmem:[%s5747_s3 + $0x294] sm:$0xff]   ;;  %v4554_v7 = vld [vmem:[%s5747_s3 + $0x29c] sm:$0xff]   ;;  %v4556_v9 = vld [vmem:[%s5747_s3 + $0x2a4] sm:$0xff]  }
 0x112   : > { %v4928_v13 = vpack.c.bf16 %v656_v12, %v654_v10  ;;  %v4555_v8 = vld [vmem:[%s5747_s3 + $0x230] sm:$0xff]   ;;  %v4557_v10 = vld [vmem:[%s5747_s3 + $0x238] sm:$0xff]   ;;  %v4559_v12 = vld [vmem:[%s5747_s3 + $0x240] ss:$0 sps:$4 sm:$0x11]  }
 0x114   : > { %3685 = vmatprep.mubr.msk.bf16.mxu1 %vm775_vm6, %v4928_v13  ;;  %3730 = vmatprep.mubr.msk.bf16.mxu0 %vm775_vm6, %v4928_v13 }
 0x115   : > { %818 = vmatmul.mubr.bf16.vlgmr.msra.gmra.mrb[0].mxu1 %v4926_v11  ;;  %982 = vmatmul.mubr.bf16.vlgmr.msra.gmra.mrb[4].mxu0 %v4926_v11 }
 0x116   : > { %1113 = vmatpush1.bf16.msra.mxu1 %v4501_v14  ;;  %1276 = vmatpush1.bf16.msra.mxu0 %v4502_v15  ;;  %v4558_v14 = vld [vmem:[%s5747_s3 + $0x2ac] sm:$0xff]   ;;  %v4560_v15 = vld [vmem:[%s5747_s3 + $0x2b4] ss:$0 sps:$4 sm:$0x11]  }
 0x117   : > { %3775 = vmatprep.mubr.msk.bf16.mxu1 %vm775_vm6, %v4928_v13  ;;  %3820 = vmatprep.mubr.msk.bf16.mxu0 %vm775_vm6, %v4928_v13 }
 0x118   : > { %1114 = vmatprep.subr.bf16.mxu1 %v4668_v2  ;;  %1277 = vmatprep.subr.bf16.mxu0 %v4668_v2 }
 0x11a   : > { %1115 = vmatpush1.bf16.msra.mxu1 %v4503_v16  ;;  %1278 = vmatpush1.bf16.msra.mxu0 %v4504_v17  ;;  %v1436_v16 = vand.u32 %v4559_v12, %v4917_v53  ;;  %v1599_v17 = vand.u32 %v4560_v15, %v4917_v53  ;;  %v4605_v15 = vld [vmem:[%s5747_s3 + $0x410] ss:$0 sps:$4 sm:$0x11]  }
 0x11b   : > { %1116 = vmatprep.subr.bf16.mxu1 %v4668_v2  ;;  %1279 = vmatprep.subr.bf16.mxu0 %v4668_v2 }
 0x11e   : > { %1117 = vmatpush1.bf16.msra.mxu1 %v4505_v18  ;;  %1280 = vmatpush1.bf16.msra.mxu0 %v4506_v19  ;;  %v4561_v18 = vld [vmem:[%s5747_s3 + $0x2b8] sm:$0xff]   ;;  %v4562_v19 = vld [vmem:[%s5747_s3 + $0x32c] sm:$0xff]  }
 0x11f   : > { %1118 = vmatprep.subr.bf16.mxu1 %v4668_v2  ;;  %1281 = vmatprep.subr.bf16.mxu0 %v4668_v2 }
 0x122   : > { %1119 = vmatpush1.bf16.msra.mxu1 %v4507_v20  ;;  %1282 = vmatpush1.bf16.msra.mxu0 %v4508_v21  ;;  %v4563_v20 = vld [vmem:[%s5747_s3 + $0x2c0] sm:$0xff]   ;;  %v4564_v21 = vld [vmem:[%s5747_s3 + $0x334] sm:$0xff]  }
 0x123   : > { %1120 = vmatprep.subr.bf16.mxu1 %v4668_v2  ;;  %1283 = vmatprep.subr.bf16.mxu0 %v4668_v2 }
 0x126   : > { %1121 = vmatpush1.bf16.msra.mxu1 %v4509_v22  ;;  %1284 = vmatpush1.bf16.msra.mxu0 %v4510_v23  ;;  %v4565_v22 = vld [vmem:[%s5747_s3 + $0x2c8] sm:$0xff]   ;;  %v4566_v23 = vld [vmem:[%s5747_s3 + $0x33c] sm:$0xff]  }
 0x127   : > { %1122 = vmatprep.subr.bf16.mxu1 %v4668_v2  ;;  %1285 = vmatprep.subr.bf16.mxu0 %v4668_v2 }
 0x12a   : > { %1123 = vmatpush1.bf16.msra.mxu1 %v4511_v24  ;;  %1286 = vmatpush1.bf16.msra.mxu0 %v4512_v25  ;;  %v4567_v24 = vld [vmem:[%s5747_s3 + $0x2d0] sm:$0xff]   ;;  %v4568_v25 = vld [vmem:[%s5747_s3 + $0x344] sm:$0xff]  }
 0x12b   : > { %1124 = vmatprep.subr.bf16.mxu1 %v4668_v2  ;;  %1287 = vmatprep.subr.bf16.mxu0 %v4668_v2 }
 0x12e   : > { %1125 = vmatpush1.bf16.msra.mxu1 %v4513_v26  ;;  %1288 = vmatpush1.bf16.msra.mxu0 %v4514_v27  ;;  %v4569_v26 = vld [vmem:[%s5747_s3 + $0x2d8] sm:$0xff]   ;;  %v4570_v27 = vld [vmem:[%s5747_s3 + $0x34c] sm:$0xff]  }
 0x12f   : > { %1126 = vmatprep.subr.bf16.mxu1 %v4668_v2  ;;  %1289 = vmatprep.subr.bf16.mxu0 %v4668_v2 }
 0x132   : > { %1127 = vmatpush1.bf16.msra.mxu1 %v4515_v28  ;;  %1290 = vmatpush1.bf16.msra.mxu0 %v4516_v29  ;;  %v4571_v28 = vld [vmem:[%s5747_s3 + $0x2e0] sm:$0xff]   ;;  %v4572_v29 = vld [vmem:[%s5747_s3 + $0x354] sm:$0xff]  }
 0x133   : > { %1128 = vmatprep.subr.bf16.mxu1 %v4668_v2  ;;  %1291 = vmatprep.subr.bf16.mxu0 %v4668_v2 }
 0x136   : > { %1129 = vmatpush1.bf16.msra.mxu1 %v4517_v30  ;;  %1292 = vmatpush1.bf16.msra.mxu0 %v4518_v31  ;;  %v4573_v30 = vld [vmem:[%s5747_s3 + $0x2e8] sm:$0xff]   ;;  %v4574_v31 = vld [vmem:[%s5747_s3 + $0x35c] sm:$0xff]  }
 0x137   : > { %1130 = vmatprep.subr.bf16.mxu1 %v4668_v2  ;;  %1293 = vmatprep.subr.bf16.mxu0 %v4668_v2 }
 0x13a   : > { %1131 = vmatpush1.bf16.msra.mxu1 %v4519_v32  ;;  %1294 = vmatpush1.bf16.msra.mxu0 %v4520_v33  ;;  %v4575_v32 = vld [vmem:[%s5747_s3 + $0x2f0] sm:$0xff]   ;;  %v4576_v33 = vld [vmem:[%s5747_s3 + $0x364] sm:$0xff]  }
 0x13b   : > { %1132 = vmatprep.subr.bf16.mxu1 %v4668_v2  ;;  %1295 = vmatprep.subr.bf16.mxu0 %v4668_v2 }
 0x13e   : > { %1133 = vmatpush1.bf16.msra.mxu1 %v4521_v34  ;;  %1296 = vmatpush1.bf16.msra.mxu0 %v4522_v35  ;;  %v4577_v34 = vld [vmem:[%s5747_s3 + $0x2f8] sm:$0xff]   ;;  %v4578_v35 = vld [vmem:[%s5747_s3 + $0x36c] sm:$0xff]  }
 0x13f   : > { %1134 = vmatprep.subr.bf16.mxu1 %v4668_v2  ;;  %1297 = vmatprep.subr.bf16.mxu0 %v4668_v2 }
 0x142   : > { %1135 = vmatpush1.bf16.msra.mxu1 %v4523_v36  ;;  %1298 = vmatpush1.bf16.msra.mxu0 %v4524_v37  ;;  %v4579_v36 = vld [vmem:[%s5747_s3 + $0x300] sm:$0xff]   ;;  %v4580_v37 = vld [vmem:[%s5747_s3 + $0x374] sm:$0xff]  }
 0x143   : > { %1136 = vmatprep.subr.bf16.mxu1 %v4668_v2  ;;  %1299 = vmatprep.subr.bf16.mxu0 %v4668_v2 }
 0x146   : > { %1137 = vmatpush1.bf16.msra.mxu1 %v4525_v38  ;;  %1300 = vmatpush1.bf16.msra.mxu0 %v4526_v39  ;;  %v4581_v38 = vld [vmem:[%s5747_s3 + $0x308] sm:$0xff]   ;;  %v4582_v39 = vld [vmem:[%s5747_s3 + $0x37c] sm:$0xff]  }
 0x147   : > { %1138 = vmatprep.subr.bf16.mxu1 %v4668_v2  ;;  %1301 = vmatprep.subr.bf16.mxu0 %v4668_v2 }
 0x14a   : > { %1139 = vmatpush1.bf16.msra.mxu1 %v4527_v40  ;;  %1302 = vmatpush1.bf16.msra.mxu0 %v4528_v41  ;;  %v4583_v40 = vld [vmem:[%s5747_s3 + $0x310] sm:$0xff]   ;;  %v4584_v41 = vld [vmem:[%s5747_s3 + $0x384] sm:$0xff]  }
 0x14b   : > { %1140 = vmatprep.subr.bf16.mxu1 %v4668_v2  ;;  %1303 = vmatprep.subr.bf16.mxu0 %v4668_v2 }
 0x14e   : > { %1141 = vmatpush1.bf16.msra.mxu1 %v1110_v44  ;;  %1304 = vmatpush1.bf16.msra.mxu0 %v1273_v45  ;;  %v4587_v44 = vld [vmem:[%s5747_s3 + $0x320] sm:$0xff]   ;;  %v4589_v45 = vld [vmem:[%s5747_s3 + $0x328] ss:$0 sps:$4 sm:$0x11]  }
 0x14f   : > { %1438 = vmatprep.subr.bf16.mxu1 %v4668_v2  ;;  %1601 = vmatprep.subr.bf16.mxu0 %v4668_v2 }
 0x151   : > { %1145 = vmatmul.mubr.bf16.vlgmr.msra.gmra.mrb[4].mxu1 %v4926_v11  ;;  %1308 = vmatmul.mubr.bf16.vlgmr.msra.gmra.mrb[8].mxu0 %v4926_v11 }
 0x152   : > { %1439 = vmatpush1.bf16.msra.mxu1 %v4531_v46  ;;  %3865 = vmatprep.mubr.msk.bf16.mxu1 %vm775_vm6, %v4928_v13  ;;  %v4588_v46 = vld [vmem:[%s5747_s3 + $0x394] sm:$0xff]  }
 0x153   : > { %1602 = vmatpush1.bf16.msra.mxu0 %v4532_v47  ;;  %3910 = vmatprep.mubr.msk.bf16.mxu0 %vm775_vm6, %v4928_v13  ;;  %v4590_v47 = vld [vmem:[%s5747_s3 + $0x39c] ss:$0 sps:$4 sm:$0x11]  }
 0x154   : > { %1440 = vmatprep.subr.bf16.mxu1 %v4668_v2  ;;  %1603 = vmatprep.subr.bf16.mxu0 %v4668_v2 }
 0x156   : > { %1441 = vmatpush1.bf16.msra.mxu1 %v4533_v48  ;;  %v1762_v48 = vand.u32 %v4589_v45, %v4917_v53 }
 0x157   : > { %1604 = vmatpush1.bf16.msra.mxu0 %v4534_v49  ;;  %1442 = vmatprep.subr.bf16.mxu1 %v4668_v2  ;;  %v1925_v49 = vand.u32 %v4590_v47, %v4917_v53 }
 0x158   : > { %1605 = vmatprep.subr.bf16.mxu0 %v4668_v2 }
 0x15a   : > { %1443 = vmatpush1.bf16.msra.mxu1 %v4535_v50  ;;  %v4591_v50 = vld [vmem:[%s5747_s3 + $0x3a0] sm:$0xff]  }
 0x15b   : > { %1606 = vmatpush1.bf16.msra.mxu0 %v4536_v51  ;;  %1444 = vmatprep.subr.bf16.mxu1 %v4668_v2  ;;  %v4592_v51 = vld [vmem:[%s5747_s3 + $0x3a8] sm:$0xff]  }
 0x15c   : > { %1607 = vmatprep.subr.bf16.mxu0 %v4668_v2 }
 0x15e   : > { %1445 = vmatpush1.bf16.msra.mxu1 %v4537_v52  ;;  %v4593_v52 = vld [vmem:[%s5747_s3 + $0x3b0] sm:$0xff]  }
 0x15f   : > { %1608 = vmatpush1.bf16.msra.mxu0 %v4538_v54  ;;  %1446 = vmatprep.subr.bf16.mxu1 %v4668_v2  ;;  %v4594_v54 = vld [vmem:[%s5747_s3 + $0x3b8] sm:$0xff]  }
 0x160   : > { %1609 = vmatprep.subr.bf16.mxu0 %v4668_v2 }
 0x162   : > { %1447 = vmatpush1.bf16.msra.mxu1 %v4539_v55  ;;  %v4596_v55 = vld [vmem:[%s5747_s3 + $0x3c8] sm:$0xff]  }
 0x163   : > { %1610 = vmatpush1.bf16.msra.mxu0 %v4540_v56  ;;  %1448 = vmatprep.subr.bf16.mxu1 %v4668_v2  ;;  %v4597_v56 = vld [vmem:[%s5747_s3 + $0x3d0] sm:$0xff]  }
 0x164   : > { %1611 = vmatprep.subr.bf16.mxu0 %v4668_v2 }
 0x166   : > { %1449 = vmatpush1.bf16.msra.mxu1 %v4541_v57  ;;  %v4598_v57 = vld [vmem:[%s5747_s3 + $0x3d8] sm:$0xff]  }
 0x167   : > { %1612 = vmatpush1.bf16.msra.mxu0 %v4542_v58  ;;  %1450 = vmatprep.subr.bf16.mxu1 %v4668_v2  ;;  %v4599_v58 = vld [vmem:[%s5747_s3 + $0x3e0] sm:$0xff]  }
 0x168   : > { %1613 = vmatprep.subr.bf16.mxu0 %v4668_v2 }
 0x16a   : > { %1451 = vmatpush1.bf16.msra.mxu1 %v4543_v59 }
 0x16b   : > { %1614 = vmatpush1.bf16.msra.mxu0 %v4544_v60  ;;  %1452 = vmatprep.subr.bf16.mxu1 %v4668_v2 }
 0x16c   : > { %1615 = vmatprep.subr.bf16.mxu0 %v4668_v2 }
 0x16e   : > { %1453 = vmatpush1.bf16.msra.mxu1 %v4545_v61 }
 0x16f   : > { %1616 = vmatpush1.bf16.msra.mxu0 %v4546_v62  ;;  %1454 = vmatprep.subr.bf16.mxu1 %v4668_v2 }
 0x170   : > { %1617 = vmatprep.subr.bf16.mxu0 %v4668_v2 }
 0x172   : > { %1455 = vmatpush1.bf16.msra.mxu1 %v4547_v63 }
 0x173   : > { %1618 = vmatpush1.bf16.msra.mxu0 %v4548_v0  ;;  %1456 = vmatprep.subr.bf16.mxu1 %v4668_v2 }
 0x174   : > { %1619 = vmatprep.subr.bf16.mxu0 %v4668_v2 }
 0x176   : > { %1457 = vmatpush1.bf16.msra.mxu1 %v4549_v1  ;;  %v4600_v1 = vld [vmem:[%s5747_s3 + $0x3e8] sm:$0xff]  }
 0x177   : > { %1620 = vmatpush1.bf16.msra.mxu0 %v4550_v3  ;;  %1458 = vmatprep.subr.bf16.mxu1 %v4668_v2 }
 0x178   : > { %1621 = vmatprep.subr.bf16.mxu0 %v4668_v2 }
 0x17a   : > { %1459 = vmatpush1.bf16.msra.mxu1 %v4551_v4 }
 0x17b   : > { %1622 = vmatpush1.bf16.msra.mxu0 %v4552_v5  ;;  %1460 = vmatprep.subr.bf16.mxu1 %v4668_v2 }
 0x17c   : > { %1623 = vmatprep.subr.bf16.mxu0 %v4668_v2 }
 0x17e   : > { %1461 = vmatpush1.bf16.msra.mxu1 %v4553_v6 }
 0x17f   : > { %1624 = vmatpush1.bf16.msra.mxu0 %v4554_v7  ;;  %1462 = vmatprep.subr.bf16.mxu1 %v4668_v2  ;;  %v4601_v7 = vld [vmem:[%s5747_s3 + $0x3f0] sm:$0xff]  }
 0x180   : > { %1625 = vmatprep.subr.bf16.mxu0 %v4668_v2 }
 0x182   : > { %1463 = vmatpush1.bf16.msra.mxu1 %v4555_v8  ;;  %v4602_v8 = vld [vmem:[%s5747_s3 + $0x3f8] sm:$0xff]  }
 0x183   : > { %1626 = vmatpush1.bf16.msra.mxu0 %v4556_v9  ;;  %1464 = vmatprep.subr.bf16.mxu1 %v4668_v2 }
 0x184   : > { %1627 = vmatprep.subr.bf16.mxu0 %v4668_v2 }
 0x186   : > { %1465 = vmatpush1.bf16.msra.mxu1 %v4557_v10  ;;  %v4603_v10 = vld [vmem:[%s5747_s3 + $0x400] sm:$0xff]  }
 0x187   : > { %1628 = vmatpush1.bf16.msra.mxu0 %v4558_v14  ;;  %1466 = vmatprep.subr.bf16.mxu1 %v4668_v2  ;;  %v4604_v14 = vld [vmem:[%s5747_s3 + $0x408] sm:$0xff]  }
 0x188   : > { %1629 = vmatprep.subr.bf16.mxu0 %v4668_v2 }
 0x18a   : > { %1467 = vmatpush1.bf16.msra.mxu1 %v1436_v16  ;;  %v2088_v16 = vand.u32 %v4605_v15, %v4917_v53 }
 0x18b   : > { %1630 = vmatpush1.bf16.msra.mxu0 %v1599_v17  ;;  %1764 = vmatprep.subr.bf16.mxu1 %v4668_v2 }
 0x18c   : > { %1927 = vmatprep.subr.bf16.mxu0 %v4668_v2 }
 0x18d   : > { %1471 = vmatmul.mubr.bf16.vlgmr.msra.gmra.mrb[8].mxu1 %v4926_v11 }
 0x18e   : > { %1634 = vmatmul.mubr.bf16.vlgmr.msra.gmra.mrb[12].mxu0 %v4926_v11  ;;  %1765 = vmatpush1.bf16.msra.mxu1 %v4561_v18 }
 0x18f   : > { %3955 = vmatprep.mubr.msk.bf16.mxu1 %vm775_vm6, %v4928_v13  ;;  %1928 = vmatpush1.bf16.msra.mxu0 %v4562_v19 }
 0x190   : > { %4000 = vmatprep.mubr.msk.bf16.mxu0 %vm775_vm6, %v4928_v13  ;;  %1766 = vmatprep.subr.bf16.mxu1 %v4668_v2 }
 0x191   : > { %1929 = vmatprep.subr.bf16.mxu0 %v4668_v2 }
 0x192   : > { %1767 = vmatpush1.bf16.msra.mxu1 %v4563_v20 }
 0x193   : > { %1930 = vmatpush1.bf16.msra.mxu0 %v4564_v21  ;;  %1768 = vmatprep.subr.bf16.mxu1 %v4668_v2 }
 0x194   : > { %1931 = vmatprep.subr.bf16.mxu0 %v4668_v2 }
 0x196   : > { %1769 = vmatpush1.bf16.msra.mxu1 %v4565_v22 }
 0x197   : > { %1932 = vmatpush1.bf16.msra.mxu0 %v4566_v23  ;;  %1770 = vmatprep.subr.bf16.mxu1 %v4668_v2 }
 0x198   : > { %1933 = vmatprep.subr.bf16.mxu0 %v4668_v2 }
 0x19a   : > { %1771 = vmatpush1.bf16.msra.mxu1 %v4567_v24 }
 0x19b   : > { %1934 = vmatpush1.bf16.msra.mxu0 %v4568_v25  ;;  %1772 = vmatprep.subr.bf16.mxu1 %v4668_v2 }
 0x19c   : > { %1935 = vmatprep.subr.bf16.mxu0 %v4668_v2 }
 0x19e   : > { %1773 = vmatpush1.bf16.msra.mxu1 %v4569_v26 }
 0x19f   : > { %1936 = vmatpush1.bf16.msra.mxu0 %v4570_v27  ;;  %1774 = vmatprep.subr.bf16.mxu1 %v4668_v2 }
 0x1a0   : > { %1937 = vmatprep.subr.bf16.mxu0 %v4668_v2 }
 0x1a2   : > { %1775 = vmatpush1.bf16.msra.mxu1 %v4571_v28 }
 0x1a3   : > { %1938 = vmatpush1.bf16.msra.mxu0 %v4572_v29  ;;  %1776 = vmatprep.subr.bf16.mxu1 %v4668_v2 }
 0x1a4   : > { %1939 = vmatprep.subr.bf16.mxu0 %v4668_v2 }
 0x1a6   : > { %1777 = vmatpush1.bf16.msra.mxu1 %v4573_v30 }
 0x1a7   : > { %1940 = vmatpush1.bf16.msra.mxu0 %v4574_v31  ;;  %1778 = vmatprep.subr.bf16.mxu1 %v4668_v2 }
 0x1a8   : > { %1941 = vmatprep.subr.bf16.mxu0 %v4668_v2 }
 0x1aa   : > { %1779 = vmatpush1.bf16.msra.mxu1 %v4575_v32 }
 0x1ab   : > { %1942 = vmatpush1.bf16.msra.mxu0 %v4576_v33  ;;  %1780 = vmatprep.subr.bf16.mxu1 %v4668_v2 }
 0x1ac   : > { %1943 = vmatprep.subr.bf16.mxu0 %v4668_v2 }
 0x1ae   : > { %1781 = vmatpush1.bf16.msra.mxu1 %v4577_v34 }
 0x1af   : > { %1944 = vmatpush1.bf16.msra.mxu0 %v4578_v35  ;;  %1782 = vmatprep.subr.bf16.mxu1 %v4668_v2 }
 0x1b0   : > { %1945 = vmatprep.subr.bf16.mxu0 %v4668_v2 }
 0x1b2   : > { %1783 = vmatpush1.bf16.msra.mxu1 %v4579_v36 }
 0x1b3   : > { %1946 = vmatpush1.bf16.msra.mxu0 %v4580_v37  ;;  %1784 = vmatprep.subr.bf16.mxu1 %v4668_v2 }
 0x1b4   : > { %1947 = vmatprep.subr.bf16.mxu0 %v4668_v2 }
 0x1b6   : > { %1785 = vmatpush1.bf16.msra.mxu1 %v4581_v38  ;;  %v4606_v38 = vld [vmem:[%s5748_s4 + $0x4] ss:$8 sps:$4 sm:$0xff]  }
 0x1b7   : > { %1948 = vmatpush1.bf16.msra.mxu0 %v4582_v39  ;;  %1786 = vmatprep.subr.bf16.mxu1 %v4668_v2  ;;  %v2144_v39 = vld [vmem:[%s5749_s5] sm:$0xff] }
 0x1b8   : > { %1949 = vmatprep.subr.bf16.mxu0 %v4668_v2  ;;  %2148 = vperm.xlu1 %4440, %v2144_v39   ;;  %v4629_v39 = vld [vmem:[%s5750_s6 + $0x80] sm:$0xff]  }
 0x1ba   : > { %1787 = vmatpush1.bf16.msra.mxu1 %v4583_v40  ;;  %v4669_v40 = vmov 0.0  }
 0x1bb   : > { %1950 = vmatpush1.bf16.msra.mxu0 %v4584_v41  ;;  %1788 = vmatprep.subr.bf16.mxu1 %v4668_v2  ;;  %v2145_v41 = vld [vmem:[%s5749_s5 + $0x8] sm:$0xff] }
 0x1bc   : > { %1951 = vmatprep.subr.bf16.mxu0 %v4668_v2  ;;  %2153 = vperm.xlu1 %4440, %v2145_v41   ;;  %v4630_v41 = vld [vmem:[%s5750_s6 + $0x9c] sm:$0xff]  }
 0x1be   : > { %1789 = vmatpush1.bf16.msra.mxu1 %v4585_v42 }
 0x1bf   : > { %1952 = vmatpush1.bf16.msra.mxu0 %v4586_v43  ;;  %1790 = vmatprep.subr.bf16.mxu1 %v4668_v2  ;;  %v4609_v43 = vld [vmem:[%s5750_s6] sm:$0xff]  }
 0x1c0   : > { %1953 = vmatprep.subr.bf16.mxu0 %v4668_v2 }
 0x1c2   : > { %1791 = vmatpush1.bf16.msra.mxu1 %v4587_v44  ;;  %v2906_v44 = vld [vmem:[%s5752_s8 + $0x8] sm:$0xff] }
 0x1c3   : > { %1954 = vmatpush1.bf16.msra.mxu0 %v4588_v46  ;;  %1792 = vmatprep.subr.bf16.mxu1 %v4668_v2  ;;  %v4611_v46 = vld [vmem:[%s5750_s6 + $0x8] sm:$0xff]  }
 0x1c4   : > { %1955 = vmatprep.subr.bf16.mxu0 %v4668_v2  ;;  %2914 = vperm.xlu1 %4440, %v2906_v44  }
 0x1c6   : > { %1793 = vmatpush1.bf16.msra.mxu1 %v1762_v48 }
 0x1c7   : > { %1956 = vmatpush1.bf16.msra.mxu0 %v1925_v49  ;;  %2090 = vmatprep.subr.bf16.mxu1 %v4668_v2 }
 0x1c8   : > { %2168 = vmatprep.subr.bf16.mxu0 %v4668_v2 }
 0x1c9   : > { %1797 = vmatmul.mubr.bf16.vlgmr.msra.gmra.mrb[12].mxu1 %v4926_v11 }
 0x1ca   : > { %1960 = vmatmul.mubr.bf16.vlgmr.msra.gmra.mrb[16].mxu0 %v4926_v11  ;;  %2091 = vmatpush1.bf16.msra.mxu1 %v4591_v50 }
 0x1cb   : > { %4045 = vmatprep.mubr.msk.bf16.mxu1 %vm775_vm6, %v4928_v13  ;;  %2092 = vmatprep.subr.bf16.mxu1 %v4668_v2  ;;  %v4595_v13 = vld [vmem:[%s5747_s3 + $0x3c0] sm:$0xff]  }
 0x1cc   : > { %4048 = vmatprep.mubr.msk.bf16.mxu0 %vm598_vm0, %v4606_v38  ;;  %v4628_v38 = vld [vmem:[%s5750_s6 + $0x94] sm:$0xff]  }
 0x1ce   : > { %2093 = vmatpush1.bf16.msra.mxu1 %v4592_v51 }
 0x1cf   : > { %2094 = vmatprep.subr.bf16.mxu1 %v4668_v2 }
 0x1d2   : > { %2095 = vmatpush1.bf16.msra.mxu1 %v4593_v52 }
 0x1d3   : > { %2096 = vmatprep.subr.bf16.mxu1 %v4668_v2 }
 0x1d6   : > { %2097 = vmatpush1.bf16.msra.mxu1 %v4594_v54 }
 0x1d7   : > { %2098 = vmatprep.subr.bf16.mxu1 %v4668_v2 }
 0x1da   : > { %2099 = vmatpush1.bf16.msra.mxu1 %v4595_v13 }
 0x1db   : > { %2100 = vmatprep.subr.bf16.mxu1 %v4668_v2 }
 0x1de   : > { %2101 = vmatpush1.bf16.msra.mxu1 %v4596_v55 }
 0x1df   : > { %2102 = vmatprep.subr.bf16.mxu1 %v4668_v2 }
 0x1e2   : > { %2103 = vmatpush1.bf16.msra.mxu1 %v4597_v56 }
 0x1e3   : > { %2104 = vmatprep.subr.bf16.mxu1 %v4668_v2 }
 0x1e6   : > { %2105 = vmatpush1.bf16.msra.mxu1 %v4598_v57 }
 0x1e7   : > { %2106 = vmatprep.subr.bf16.mxu1 %v4668_v2 }
 0x1e8   : > { %v819_v59 = vpop.f32.mrb[0].mxu1  ;;  %v983_v60 = vpop.f32.mrb[4].mxu0 }
 0x1e9   : > { %v821_v61 = vpop.f32.mrb[1].mxu1  ;;  %v985_v62 = vpop.f32.mrb[5].mxu0 }
 0x1ea   : > { %2107 = vmatpush1.bf16.msra.mxu1 %v4599_v58  ;;  %v822_v63 = vpop.f32.mrb[2].mxu1  ;;  %v986_v0 = vpop.f32.mrb[6].mxu0 }
 0x1eb   : > { %v826_v3 = vpack.c.bf16 %v822_v63, %v819_v59  ;;  %v990_v4 = vpack.c.bf16 %v986_v0, %v983_v60  ;;  %v824_v5 = vpop.f32.mrb[3].mxu1  ;;  %v988_v6 = vpop.f32.mrb[7].mxu0  ;;  %2108 = vmatprep.subr.bf16.mxu1 %v4668_v2 }
 0x1ec   : > { %v4613_v5 = vld [vmem:[%s5750_s6 + $0x10] sm:$0xff]  }
 0x1ed   : > { %828 = vst.msk [vmem:[#allocation2] sm:$0xff] %vm827_vm7, %v826_v3  ;;  %991 = vst.msk [vmem:[#allocation2 + $0x8] sm:$0xff] %vm827_vm7, %v990_v4  ;;  %v4610_v3 = vld [vmem:[%s5750_s6 + $0x1c] sm:$0xff]   ;;  %v4612_v4 = vld [vmem:[%s5750_s6 + $0x24] sm:$0xff]  }
 0x1ee   : > { %2109 = vmatpush1.bf16.msra.mxu1 %v4600_v1  ;;  %v4608_v1 = vld [vmem:[%s5748_s4] ss:$8 sps:$4 sm:$0xff]   ;;  %v4614_v6 = vld [vmem:[%s5750_s6 + $0x2c] sm:$0xff]  }
 0x1ef   : > { %2110 = vmatprep.subr.bf16.mxu1 %v4668_v2 }
 0x1f2   : > { %2111 = vmatpush1.bf16.msra.mxu1 %v4601_v7  ;;  %v4615_v7 = vld [vmem:[%s5750_s6 + $0x18] ss:$0 sps:$4 sm:$0x11]  }
 0x1f3   : > { %2112 = vmatprep.subr.bf16.mxu1 %v4668_v2 }
 0x1f4   : > { %v2135_v9 = vld [vmem:[#allocation2] sm:$0xff]  ;;  %v2136_v12 = vld [vmem:[#allocation2 + $0x8] sm:$0xff] }
 0x1f5   : > { %2169 = vmatpush1.bf16.msra.mxu0 %v2135_v9  ;;  %v2248_v9 = vand.u32 %v4615_v7, %v4917_v53 }
 0x1f6   : > { %2113 = vmatpush1.bf16.msra.mxu1 %v4602_v8  ;;  %2170 = vmatprep.subr.bf16.mxu0 %v4668_v2  ;;  %v4616_v8 = vld [vmem:[%s5750_s6 + $0x34] ss:$0 sps:$4 sm:$0x11]  }
 0x1f7   : > { %2114 = vmatprep.subr.bf16.mxu1 %v4668_v2 }
 0x1f9   : > { %2171 = vmatpush1.bf16.msra.mxu0 %v2136_v12 }
 0x1fa   : > { %2115 = vmatpush1.bf16.msra.mxu1 %v4603_v10  ;;  %2172 = vmatprep.subr.bf16.mxu0 %v4668_v2  ;;  %v2324_v10 = vand.u32 %v4616_v8, %v4917_v53 }
 0x1fb   : > { %2116 = vmatprep.subr.bf16.mxu1 %v4668_v2 }
 0x1fe   : > { %2117 = vmatpush1.bf16.msra.mxu1 %v4604_v14 }
 0x1ff   : > { %2118 = vmatprep.subr.bf16.mxu1 %v4668_v2 }
 0x202   : > { %2119 = vmatpush1.bf16.msra.mxu1 %v2088_v16 }
 0x203   : > { %4258 = vmatprep.subr.bf16.mxu1 %v4669_v40 }
 0x205   : > { %2123 = vmatmul.mubr.bf16.vlgmr.msra.gmra.mrb[16].mxu1 %v4926_v11 }
 0x206   : > { %4259 = vmatpush3.bf16.msra.mxu1 %v4609_v43  ;;  %4266 = vmatprep.mubr.msk.bf16.mxu1 %vm4670_vm8, %v4669_v40  ;;  %v4632_v43 = vld [vmem:[%s5750_s6 + $0xa4] ss:$0 sps:$4 sm:$0x11]  }
 0x207   : > { %4260 = vmatprep.subr.bf16.mxu1 %v4669_v40 }
 0x20a   : > { %4261 = vmatpush3.bf16.msra.mxu1 %v4611_v46  ;;  %v4633_v46 = vld [vmem:[%s5750_s6 + $0xa8] sm:$0xff]  }
 0x20b   : > { %4262 = vmatprep.subr.bf16.mxu1 %v4669_v40 }
 0x20e   : > { %4263 = vmatpush3.bf16.msra.mxu1 %v4613_v5 }
 0x20f   : > { %4264 = vmatprep.subr.bf16.mxu1 %v4669_v40 }
 0x212   : > { %4265 = vmatpush3.bf16.msra.mxu1 %v2248_v9 }
 0x213   : > { %4282 = vmatprep.subr.bf16.mxu1 %v4669_v40 }
 0x224   : > { %v1146_v17 = vpop.f32.mrb[4].mxu1  ;;  %v1309_v18 = vpop.f32.mrb[8].mxu0 }
 0x225   : > { %v1148_v19 = vpop.f32.mrb[5].mxu1  ;;  %v1311_v20 = vpop.f32.mrb[9].mxu0 }
 0x226   : > { %v1149_v21 = vpop.f32.mrb[6].mxu1  ;;  %v1312_v22 = vpop.f32.mrb[10].mxu0 }
 0x227   : > { %v1153_v23 = vpack.c.bf16 %v1149_v21, %v1146_v17  ;;  %v1316_v24 = vpack.c.bf16 %v1312_v22, %v1309_v18  ;;  %v1151_v25 = vpop.f32.mrb[7].mxu1  ;;  %v1314_v26 = vpop.f32.mrb[11].mxu0 }
 0x228   : > { %v4617_v25 = vld [vmem:[%s5750_s6 + $0x38] sm:$0xff]  }
 0x229   : > { %1154 = vst.msk [vmem:[#allocation2 + $0x10] sm:$0xff] %vm827_vm7, %v1153_v23  ;;  %1317 = vst.msk [vmem:[#allocation2 + $0x18] sm:$0xff] %vm827_vm7, %v1316_v24  ;;  %v4618_v26 = vld [vmem:[%s5750_s6 + $0x54] sm:$0xff]  }
 0x230   : > { %v2137_v27 = vld [vmem:[#allocation2 + $0x10] sm:$0xff]  ;;  %v2138_v28 = vld [vmem:[#allocation2 + $0x18] sm:$0xff] }
 0x231   : > { %2173 = vmatpush1.bf16.msra.mxu0 %v2137_v27 }
 0x232   : > { %2174 = vmatprep.subr.bf16.mxu0 %v4668_v2 }
 0x235   : > { %2175 = vmatpush1.bf16.msra.mxu0 %v2138_v28  ;;  %v4619_v28 = vld [vmem:[%s5750_s6 + $0x40] sm:$0xff]  }
 0x236   : > { %2176 = vmatprep.subr.bf16.mxu0 %v4668_v2 }
 0x237   : > { %v2149_v12 = vpop.permute.xlu1 %2148 }
 0x23b   : > { %v2154_v17 = vpop.permute.xlu1 %2153 }
 0x260   : > { %v1472_v11 = vpop.f32.mrb[8].mxu1 }
 0x261   : > { %v1635_v29 = vpop.f32.mrb[12].mxu0  ;;  %v1474_v30 = vpop.f32.mrb[9].mxu1 }
 0x262   : > { %v1637_v31 = vpop.f32.mrb[13].mxu0  ;;  %v1475_v32 = vpop.f32.mrb[10].mxu1  ;;  %v4622_v30 = vld [vmem:[%s5750_s6 + $0x64] sm:$0xff]  }
 0x263   : > { %v1479_v33 = vpack.c.bf16 %v1475_v32, %v1472_v11  ;;  %v1638_v34 = vpop.f32.mrb[14].mxu0  ;;  %v1477_v35 = vpop.f32.mrb[11].mxu1  ;;  %v4620_v11 = vld [vmem:[%s5750_s6 + $0x5c] sm:$0xff]   ;;  %v4623_v31 = vld [vmem:[%s5750_s6 + $0x50] ss:$0 sps:$4 sm:$0x11]  }
 0x264   : > { %v1642_v36 = vpack.c.bf16 %v1638_v34, %v1635_v29  ;;  %v1640_v37 = vpop.f32.mrb[15].mxu0  ;;  %v4621_v29 = vld [vmem:[%s5750_s6 + $0x48] sm:$0xff]   ;;  %v4625_v35 = vld [vmem:[%s5750_s6 + $0x70] sm:$0xff]  }
 0x265   : > { %1480 = vst.msk [vmem:[#allocation2 + $0x20] sm:$0xff] %vm827_vm7, %v1479_v33  ;;  %v4624_v32 = vld [vmem:[%s5750_s6 + $0x6c] ss:$0 sps:$4 sm:$0x11]   ;;  %v2399_v33 = vand.u32 %v4623_v31, %v4917_v53  ;;  %v4627_v37 = vld [vmem:[%s5750_s6 + $0x78] sm:$0xff]  }
 0x266   : > { %1643 = vst.msk [vmem:[#allocation2 + $0x28] sm:$0xff] %vm827_vm7, %v1642_v36  ;;  %v2474_v34 = vand.u32 %v4624_v32, %v4917_v53  ;;  %v4626_v36 = vld [vmem:[%s5750_s6 + $0x8c] sm:$0xff]  }
 0x26c   : > { %v2139_v42 = vld [vmem:[#allocation2 + $0x20] sm:$0xff] }
 0x26d   : > { %2177 = vmatpush1.bf16.msra.mxu0 %v2139_v42  ;;  %v2140_v45 = vld [vmem:[#allocation2 + $0x28] sm:$0xff] }
 0x26e   : > { %2178 = vmatprep.subr.bf16.mxu0 %v4668_v2  ;;  %v4631_v42 = vld [vmem:[%s5750_s6 + $0x88] ss:$0 sps:$4 sm:$0x11]  }
 0x26f   : > { %v2549_v44 = vand.u32 %v4631_v42, %v4917_v53 }
 0x271   : > { %2179 = vmatpush1.bf16.msra.mxu0 %v2140_v45  ;;  %v2624_v45 = vand.u32 %v4632_v43, %v4917_v53 }
 0x272   : > { %2180 = vmatprep.subr.bf16.mxu0 %v4668_v2 }
 0x29c   : > { %v1798_v47 = vpop.f32.mrb[12].mxu1 }
 0x29d   : > { %v1961_v48 = vpop.f32.mrb[16].mxu0  ;;  %v1800_v49 = vpop.f32.mrb[13].mxu1 }
 0x29e   : > { %v1963_v50 = vpop.f32.mrb[17].mxu0  ;;  %v1801_v51 = vpop.f32.mrb[14].mxu1  ;;  %v4636_v49 = vld [vmem:[%s5750_s6 + $0xcc] sm:$0xff]  }
 0x29f   : > { %v1805_v52 = vpack.c.bf16 %v1801_v51, %v1798_v47  ;;  %v1964_v54 = vpop.f32.mrb[18].mxu0  ;;  %v1803_v13 = vpop.f32.mrb[15].mxu1  ;;  %v4634_v47 = vld [vmem:[%s5750_s6 + $0xc4] sm:$0xff]   ;;  %v4637_v50 = vld [vmem:[%s5750_s6 + $0xb8] sm:$0xff]  }
 0x2a0   : > { %v1968_v55 = vpack.c.bf16 %v1964_v54, %v1961_v48  ;;  %v1966_v56 = vpop.f32.mrb[19].mxu0  ;;  %v4635_v48 = vld [vmem:[%s5750_s6 + $0xb0] sm:$0xff]   ;;  %v4640_v54 = vld [vmem:[%s5750_s6 + $0xdc] ss:$0 sps:$4 sm:$0x11]  }
 0x2a1   : > { %1806 = vst.msk [vmem:[#allocation2 + $0x30] sm:$0xff] %vm827_vm7, %v1805_v52  ;;  %v4638_v51 = vld [vmem:[%s5750_s6 + $0xd4] sm:$0xff]   ;;  %v4639_v52 = vld [vmem:[%s5750_s6 + $0xc0] ss:$0 sps:$4 sm:$0x11]  }
 0x2a2   : > { %1969 = vst.msk [vmem:[#allocation2 + $0x38] sm:$0xff] %vm827_vm7, %v1968_v55  ;;  %v2699_v13 = vand.u32 %v4639_v52, %v4917_v53  ;;  %v2774_v55 = vand.u32 %v4640_v54, %v4917_v53  ;;  %v4641_v56 = vld [vmem:[%s5750_s6 + $0xe0] sm:$0xff]  }
 0x2a8   : > { %v2141_v57 = vld [vmem:[#allocation2 + $0x30] sm:$0xff] }
 0x2a9   : > { %2181 = vmatpush1.bf16.msra.mxu0 %v2141_v57  ;;  %v2142_v58 = vld [vmem:[#allocation2 + $0x38] sm:$0xff]  ;;  %v4642_v57 = vld [vmem:[%s5750_s6 + $0xe8] sm:$0xff]  }
 0x2aa   : > { %2182 = vmatprep.subr.bf16.mxu0 %v4668_v2 }
 0x2ad   : > { %2183 = vmatpush1.bf16.msra.mxu0 %v2142_v58  ;;  %v4643_v58 = vld [vmem:[%s5750_s6 + $0xf0] sm:$0xff]  }
 0x2ae   : > { %2184 = vmatprep.subr.bf16.mxu0 %v4668_v2 }
 0x2d8   : > { %v2124_v59 = vpop.f32.mrb[16].mxu1 }
 0x2d9   : > { %v2126_v60 = vpop.f32.mrb[17].mxu1 }
 0x2da   : > { %v2127_v61 = vpop.f32.mrb[18].mxu1 }
 0x2db   : > { %v2131_v62 = vpack.c.bf16 %v2127_v61, %v2124_v59  ;;  %v2129_v63 = vpop.f32.mrb[19].mxu1  ;;  %v4644_v59 = vld [vmem:[%s5750_s6 + $0xf8] ss:$0 sps:$4 sm:$0x11]   ;;  %v4645_v61 = vld [vmem:[%s5751_s7 + $0x4] ss:$8 sps:$4 sm:$0xff]  }
 0x2dc   : > { %v2849_v60 = vand.u32 %v4644_v59, %v4917_v53 }
 0x2dd   : > { %2132 = vst.msk [vmem:[#allocation2 + $0x40] sm:$0xff] %vm827_vm7, %v2131_v62 }
 0x2e4   : > { %v2143_v0 = vld [vmem:[#allocation2 + $0x40] sm:$0xff] }
 0x2e5   : > { %2185 = vmatpush1.bf16.msra.mxu0 %v2143_v0 }
 0x2e6   : > { %4270 = vmatprep.subr.bf16.mxu0 %v4669_v40 }
 0x2e8   : > { %2201 = vmatmul.mubr.bf16.vlgmr.msra.gmra.mrb[20].mxu0 %v4608_v1 }
 0x2e9   : > { %4271 = vmatpush3.bf16.msra.mxu0 %v4610_v3  ;;  %4278 = vmatprep.mubr.msk.bf16.mxu0 %vm4670_vm8, %v4669_v40 }
 0x2ea   : > { %4272 = vmatprep.subr.bf16.mxu0 %v4669_v40 }
 0x2ed   : > { %4273 = vmatpush3.bf16.msra.mxu0 %v4612_v4 }
 0x2ee   : > { %4274 = vmatprep.subr.bf16.mxu0 %v4669_v40 }
 0x2f1   : > { %4275 = vmatpush3.bf16.msra.mxu0 %v4614_v6 }
 0x2f2   : > { %4276 = vmatprep.subr.bf16.mxu0 %v4669_v40 }
 0x2f5   : > { %4277 = vmatpush3.bf16.msra.mxu0 %v2324_v10 }
 0x2f6   : > { %4294 = vmatprep.subr.bf16.mxu0 %v4669_v40 }
 0x3bb   : > { %v2202_v14 = vpop.f32.mrb[20].mxu0 }
 0x3bc   : > { %v2203_v15 = vadd.f32 %v2202_v14, %v2149_v12  ;;  %v2204_v16 = vpop.f32.mrb[21].mxu0 }
 0x3bd   : > { %v2205_v18 = vpop.f32.mrb[22].mxu0 }
 0x3be   : > { %v2211_v19 = vmul.f32 0.1, %v2203_v15  ;;  %v2206_v20 = vadd.f32 %v2205_v18, %v2154_v17  ;;  %v2207_v21 = vpop.f32.mrb[23].mxu0  ;;  %vm2209_vm9 = vcmp.ge.f32.partialorder %v2203_v15, 0.0 }
 0x3c0   : > { %vm2210_vm10 = vcmp.ge.f32.partialorder %v2206_v20, 0.0  ;;  %v2212_v22 = vmul.f32 0.1, %v2206_v20  ;;  %v2213_v23 = vsel %vm2209_vm9, %v2203_v15, %v2211_v19 }
 0x3c2   : > { %v2214_v24 = vsel %vm2210_vm10, %v2206_v20, %v2212_v22 }
 0x3c3   : > { %v5462_v27 = vpack.c.bf16 %v2214_v24, %v2213_v23 }
 0x3c5   : > { %4267 = vmatmul.mubr.msk.bf16.vlgmr.msra.gmra.mrb[20].mxu1 %vm827_vm7, %v5462_v27  ;;  %4279 = vmatmul.mubr.msk.bf16.vlgmr.msra.gmra.mrb[24].mxu0 %vm827_vm7, %v5462_v27 }
 0x3c6   : > { %4283 = vmatpush3.bf16.msra.mxu1 %v4617_v25  ;;  %4295 = vmatpush3.bf16.msra.mxu0 %v4618_v26 }
 0x3c7   : > { %4284 = vmatprep.subr.bf16.mxu1 %v4669_v40  ;;  %4296 = vmatprep.subr.bf16.mxu0 %v4669_v40 }
 0x3c8   : > { %4290 = vmatprep.mubr.msk.bf16.mxu1 %vm4670_vm8, %v4669_v40  ;;  %4302 = vmatprep.mubr.msk.bf16.mxu0 %vm4670_vm8, %v4669_v40 }
 0x3ca   : > { %4285 = vmatpush3.bf16.msra.mxu1 %v4619_v28  ;;  %4297 = vmatpush3.bf16.msra.mxu0 %v4620_v11 }
 0x3cb   : > { %4286 = vmatprep.subr.bf16.mxu1 %v4669_v40  ;;  %4298 = vmatprep.subr.bf16.mxu0 %v4669_v40 }
 0x3ce   : > { %4287 = vmatpush3.bf16.msra.mxu1 %v4621_v29  ;;  %4299 = vmatpush3.bf16.msra.mxu0 %v4622_v30 }
 0x3cf   : > { %4288 = vmatprep.subr.bf16.mxu1 %v4669_v40  ;;  %4300 = vmatprep.subr.bf16.mxu0 %v4669_v40 }
 0x3d2   : > { %4289 = vmatpush3.bf16.msra.mxu1 %v2399_v33  ;;  %4301 = vmatpush3.bf16.msra.mxu0 %v2474_v34 }
 0x3d3   : > { %4306 = vmatprep.subr.bf16.mxu1 %v4669_v40  ;;  %4318 = vmatprep.subr.bf16.mxu0 %v4669_v40 }
 0x3d5   : > { %4291 = vmatmul.mubr.msk.bf16.vlgmr.msra.gmra.mrb[24].mxu1 %vm827_vm7, %v5462_v27  ;;  %4303 = vmatmul.mubr.msk.bf16.vlgmr.msra.gmra.mrb[28].mxu0 %vm827_vm7, %v5462_v27 }
 0x3d6   : > { %4307 = vmatpush3.bf16.msra.mxu1 %v4625_v35  ;;  %4319 = vmatpush3.bf16.msra.mxu0 %v4626_v36 }
 0x3d7   : > { %4308 = vmatprep.subr.bf16.mxu1 %v4669_v40  ;;  %4320 = vmatprep.subr.bf16.mxu0 %v4669_v40 }
 0x3d8   : > { %4314 = vmatprep.mubr.msk.bf16.mxu1 %vm4670_vm8, %v4669_v40  ;;  %4326 = vmatprep.mubr.msk.bf16.mxu0 %vm4670_vm8, %v4669_v40 }
 0x3da   : > { %4309 = vmatpush3.bf16.msra.mxu1 %v4627_v37  ;;  %4321 = vmatpush3.bf16.msra.mxu0 %v4628_v38 }
 0x3db   : > { %4310 = vmatprep.subr.bf16.mxu1 %v4669_v40  ;;  %4322 = vmatprep.subr.bf16.mxu0 %v4669_v40 }
 0x3de   : > { %4311 = vmatpush3.bf16.msra.mxu1 %v4629_v39  ;;  %4323 = vmatpush3.bf16.msra.mxu0 %v4630_v41 }
 0x3df   : > { %4312 = vmatprep.subr.bf16.mxu1 %v4669_v40  ;;  %4324 = vmatprep.subr.bf16.mxu0 %v4669_v40 }
 0x3e2   : > { %4313 = vmatpush3.bf16.msra.mxu1 %v2549_v44  ;;  %4325 = vmatpush3.bf16.msra.mxu0 %v2624_v45 }
 0x3e3   : > { %4330 = vmatprep.subr.bf16.mxu1 %v4669_v40  ;;  %4342 = vmatprep.subr.bf16.mxu0 %v4669_v40 }
 0x3e5   : > { %4315 = vmatmul.mubr.msk.bf16.vlgmr.msra.gmra.mrb[28].mxu1 %vm827_vm7, %v5462_v27  ;;  %4327 = vmatmul.mubr.msk.bf16.vlgmr.msra.gmra.mrb[32].mxu0 %vm827_vm7, %v5462_v27 }
 0x3e6   : > { %4331 = vmatpush3.bf16.msra.mxu1 %v4633_v46  ;;  %4343 = vmatpush3.bf16.msra.mxu0 %v4634_v47 }
 0x3e7   : > { %4332 = vmatprep.subr.bf16.mxu1 %v4669_v40  ;;  %4344 = vmatprep.subr.bf16.mxu0 %v4669_v40 }
 0x3e8   : > { %4338 = vmatprep.mubr.msk.bf16.mxu1 %vm4670_vm8, %v4669_v40  ;;  %4350 = vmatprep.mubr.msk.bf16.mxu0 %vm4670_vm8, %v4669_v40 }
 0x3ea   : > { %4333 = vmatpush3.bf16.msra.mxu1 %v4635_v48  ;;  %4345 = vmatpush3.bf16.msra.mxu0 %v4636_v49 }
 0x3eb   : > { %4334 = vmatprep.subr.bf16.mxu1 %v4669_v40  ;;  %4346 = vmatprep.subr.bf16.mxu0 %v4669_v40 }
 0x3ee   : > { %4335 = vmatpush3.bf16.msra.mxu1 %v4637_v50  ;;  %4347 = vmatpush3.bf16.msra.mxu0 %v4638_v51 }
 0x3ef   : > { %4336 = vmatprep.subr.bf16.mxu1 %v4669_v40  ;;  %4348 = vmatprep.subr.bf16.mxu0 %v4669_v40 }
 0x3f2   : > { %4337 = vmatpush3.bf16.msra.mxu1 %v2699_v13  ;;  %4349 = vmatpush3.bf16.msra.mxu0 %v2774_v55  ;;  %v4647_v13 = vld [vmem:[%s5751_s7] ss:$8 sps:$4 sm:$0xff]  }
 0x3f3   : > { %4354 = vmatprep.subr.bf16.mxu1 %v4669_v40  ;;  %2929 = vmatprep.subr.bf16.mxu0 %v4668_v2  ;;  %v4648_v55 = vld [vmem:[%s5753_s9] sm:$0x1f]  }
 0x3f5   : > { %4339 = vmatmul.mubr.msk.bf16.vlgmr.msra.gmra.mrb[32].mxu1 %vm827_vm7, %v5462_v27  ;;  %4351 = vmatmul.mubr.msk.bf16.vlgmr.msra.gmra.mrb[36].mxu0 %vm827_vm7, %v5462_v27 }
 0x3f6   : > { %4355 = vmatpush3.bf16.msra.mxu1 %v4641_v56  ;;  %4362 = vmatprep.mubr.msk.bf16.mxu1 %vm4670_vm8, %v4669_v40  ;;  %v4671_v56 = vmov 65535  }
 0x3f7   : > { %4356 = vmatprep.subr.bf16.mxu1 %v4669_v40  ;;  %4152 = vmatprep.mubr.msk.bf16.mxu0 %vm598_vm0, %v4645_v61 }
 0x3fa   : > { %4357 = vmatpush3.bf16.msra.mxu1 %v4642_v57  ;;  %v2989_v57 = vsel %vm2987_vm12, 4294967295, %v4671_v56 }
 0x3fb   : > { %4358 = vmatprep.subr.bf16.mxu1 %v4669_v40  ;;  %v2990_v59 = vsel %vm2988_vm13, %v2989_v57, 0 }
 0x3fe   : > { %4359 = vmatpush3.bf16.msra.mxu1 %v4643_v58  ;;  %v4649_v58 = vld [vmem:[%s5753_s9 + $0x8] sm:$0x1f]  }
 0x3ff   : > { %4360 = vmatprep.subr.bf16.mxu1 %v4669_v40  ;;  %v3047_v61 = vand.u32 %v4649_v58, %v2990_v59 }
 0x402   : > { %4361 = vmatpush3.bf16.msra.mxu1 %v2849_v60  ;;  %v2992_v60 = vand.u32 %v4648_v55, %v2990_v59 }
 0x403   : > { %4372 = vmatprep.subr.bf16.mxu1 %v4669_v40 }
 0x405   : > { %4363 = vmatmul.mubr.msk.bf16.vlgmr.msra.gmra.mrb[36].mxu1 %vm827_vm7, %v5462_v27 }
 0x406   : > { %4374 = vmatprep.mubr.msk.bf16.mxu1 %vm4670_vm8, %v4669_v40  ;;  %4373 = vmatpush3.bf16.msra.mxu1 %v3047_v61 }
 0x407   : > { %4378 = vmatprep.subr.bf16.mxu1 %v4669_v40 }
 0x498   : > { %v2284_v62 = vpop.f32.mrb[20].mxu1  ;;  %v2360_v63 = vpop.f32.mrb[24].mxu0 }
 0x499   : > { %v4268_v53 = vpop.f32.mrb[21].mxu1  ;;  %v4280_v0 = vpop.f32.mrb[25].mxu0 }
 0x49a   : > { %v2287_v1 = vpop.f32.mrb[22].mxu1  ;;  %v2363_v3 = vpop.f32.mrb[26].mxu0 }
 0x49b   : > { %v2291_v4 = vpack.c.bf16 %v2287_v1, %v2284_v62  ;;  %v2367_v5 = vpack.c.bf16 %v2363_v3, %v2360_v63  ;;  %v4269_v6 = vpop.f32.mrb[23].mxu1  ;;  %v4281_v7 = vpop.f32.mrb[27].mxu0 }
 0x49c   : > { %v2910_v62 = vpop.permute.xlu0 %2909  ;;  %v2915_v1 = vpop.permute.xlu1 %2914 }
 0x49d   : > { %2293 = vst.msk [vmem:[#allocation3] sm:$0xff] %vm2292_vm11, %v2291_v4  ;;  %2368 = vst.msk [vmem:[#allocation3 + $0x8] sm:$0xff] %vm2292_vm11, %v2367_v5  ;;  %v4650_v4 = vld [vmem:[%s5753_s9 + $0x10] sm:$0x1f]  }
 0x4a4   : > { %v2896_v8 = vld [vmem:[#allocation3] sm:$0xff]  ;;  %v2897_v12 = vld [vmem:[#allocation3 + $0x8] sm:$0xff] }
 0x4a5   : > { %2930 = vmatpush1.bf16.msra.mxu0 %v2896_v8  ;;  %v4651_v8 = vld [vmem:[%s5753_s9 + $0x20] sm:$0x1f]  }
 0x4a6   : > { %2931 = vmatprep.subr.bf16.mxu0 %v4668_v2 }
 0x4a8   : > { %v2435_v9 = vpop.f32.mrb[24].mxu1  ;;  %v2510_v10 = vpop.f32.mrb[28].mxu0 }
 0x4a9   : > { %v4292_v14 = vpop.f32.mrb[25].mxu1  ;;  %v4304_v15 = vpop.f32.mrb[29].mxu0  ;;  %2932 = vmatpush1.bf16.msra.mxu0 %v2897_v12 }
 0x4aa   : > { %v2438_v16 = vpop.f32.mrb[26].mxu1  ;;  %v2513_v17 = vpop.f32.mrb[30].mxu0  ;;  %2933 = vmatprep.subr.bf16.mxu0 %v4668_v2  ;;  %v3101_v14 = vand.u32 %v4650_v4, %v2990_v59  ;;  %v3209_v15 = vand.u32 %v4651_v8, %v2990_v59 }
 0x4ab   : > { %v2442_v18 = vpack.c.bf16 %v2438_v16, %v2435_v9  ;;  %v2517_v19 = vpack.c.bf16 %v2513_v17, %v2510_v10  ;;  %v4293_v20 = vpop.f32.mrb[27].mxu1  ;;  %v4305_v21 = vpop.f32.mrb[31].mxu0  ;;  %v4652_v17 = vld [vmem:[%s5753_s9 + $0x18] sm:$0x1f]  }
 0x4ac   : > { %v4654_v21 = vld [vmem:[%s5753_s9 + $0x28] sm:$0x1f]  }
 0x4ad   : > { %2443 = vst.msk [vmem:[#allocation3 + $0x10] sm:$0xff] %vm2292_vm11, %v2442_v18  ;;  %2518 = vst.msk [vmem:[#allocation3 + $0x18] sm:$0xff] %vm2292_vm11, %v2517_v19  ;;  %v4653_v18 = vld [vmem:[%s5753_s9 + $0x30] sm:$0x1f]   ;;  %v3155_v19 = vand.u32 %v4652_v17, %v2990_v59 }
 0x4ae   : > { %v3317_v20 = vand.u32 %v4653_v18, %v2990_v59 }
 0x4b4   : > { %v2898_v22 = vld [vmem:[#allocation3 + $0x10] sm:$0xff]  ;;  %v2899_v25 = vld [vmem:[#allocation3 + $0x18] sm:$0xff] }
 0x4b5   : > { %2934 = vmatpush1.bf16.msra.mxu0 %v2898_v22  ;;  %v4655_v22 = vld [vmem:[%s5753_s9 + $0x40] sm:$0x1f]  }
 0x4b6   : > { %2935 = vmatprep.subr.bf16.mxu0 %v4668_v2 }
 0x4b8   : > { %v2585_v23 = vpop.f32.mrb[28].mxu1  ;;  %v2660_v24 = vpop.f32.mrb[32].mxu0 }
 0x4b9   : > { %v4316_v26 = vpop.f32.mrb[29].mxu1  ;;  %v4328_v27 = vpop.f32.mrb[33].mxu0  ;;  %2936 = vmatpush1.bf16.msra.mxu0 %v2899_v25  ;;  %v4656_v25 = vld [vmem:[%s5753_s9 + $0x38] sm:$0x1f]  }
 0x4ba   : > { %v2588_v28 = vpop.f32.mrb[30].mxu1  ;;  %v2663_v11 = vpop.f32.mrb[34].mxu0  ;;  %2937 = vmatprep.subr.bf16.mxu0 %v4668_v2  ;;  %v3371_v26 = vand.u32 %v4656_v25, %v2990_v59  ;;  %v4657_v27 = vld [vmem:[%s5754_s10 + $0x4] ss:$8 sps:$4 sm:$0xff]  }
 0x4bb   : > { %v2592_v29 = vpack.c.bf16 %v2588_v28, %v2585_v23  ;;  %v2667_v30 = vpack.c.bf16 %v2663_v11, %v2660_v24  ;;  %v4317_v31 = vpop.f32.mrb[31].mxu1  ;;  %v4329_v32 = vpop.f32.mrb[35].mxu0  ;;  %v3263_v23 = vand.u32 %v4654_v21, %v2990_v59  ;;  %v3425_v24 = vand.u32 %v4655_v22, %v2990_v59  ;;  %v3482_v22 = vld [vmem:[%s5755_s11 + $0x8] sm:$0xff] }
 0x4bd   : > { %2593 = vst.msk [vmem:[#allocation3 + $0x20] sm:$0xff] %vm2292_vm11, %v2592_v29  ;;  %2668 = vst.msk [vmem:[#allocation3 + $0x28] sm:$0xff] %vm2292_vm11, %v2667_v30 }
 0x4c4   : > { %v2900_v33 = vld [vmem:[#allocation3 + $0x20] sm:$0xff]  ;;  %v2901_v36 = vld [vmem:[#allocation3 + $0x28] sm:$0xff] }
 0x4c5   : > { %2938 = vmatpush1.bf16.msra.mxu0 %v2900_v33 }
 0x4c6   : > { %2939 = vmatprep.subr.bf16.mxu0 %v4668_v2 }
 0x4c8   : > { %v2735_v34 = vpop.f32.mrb[32].mxu1  ;;  %v2810_v35 = vpop.f32.mrb[36].mxu0 }
 0x4c9   : > { %v4340_v37 = vpop.f32.mrb[33].mxu1  ;;  %v4352_v38 = vpop.f32.mrb[37].mxu0  ;;  %2940 = vmatpush1.bf16.msra.mxu0 %v2901_v36 }
 0x4ca   : > { %v2738_v39 = vpop.f32.mrb[34].mxu1  ;;  %v2813_v41 = vpop.f32.mrb[38].mxu0  ;;  %2941 = vmatprep.subr.bf16.mxu0 %v4668_v2 }
 0x4cb   : > { %v2742_v42 = vpack.c.bf16 %v2738_v39, %v2735_v34  ;;  %v2817_v43 = vpack.c.bf16 %v2813_v41, %v2810_v35  ;;  %v4341_v44 = vpop.f32.mrb[35].mxu1  ;;  %v4353_v45 = vpop.f32.mrb[39].mxu0 }
 0x4cd   : > { %2743 = vst.msk [vmem:[#allocation3 + $0x30] sm:$0xff] %vm2292_vm11, %v2742_v42  ;;  %2818 = vst.msk [vmem:[#allocation3 + $0x38] sm:$0xff] %vm2292_vm11, %v2817_v43 }
 0x4d4   : > { %v2902_v46 = vld [vmem:[#allocation3 + $0x30] sm:$0xff]  ;;  %v2903_v48 = vld [vmem:[#allocation3 + $0x38] sm:$0xff] }
 0x4d5   : > { %2942 = vmatpush1.bf16.msra.mxu0 %v2902_v46 }
 0x4d6   : > { %2943 = vmatprep.subr.bf16.mxu0 %v4668_v2 }
 0x4d8   : > { %v2885_v47 = vpop.f32.mrb[36].mxu1 }
 0x4d9   : > { %v4364_v49 = vpop.f32.mrb[37].mxu1  ;;  %2944 = vmatpush1.bf16.msra.mxu0 %v2903_v48 }
 0x4da   : > { %v2888_v50 = vpop.f32.mrb[38].mxu1  ;;  %2945 = vmatprep.subr.bf16.mxu0 %v4668_v2 }
 0x4db   : > { %v2892_v51 = vpack.c.bf16 %v2888_v50, %v2885_v47  ;;  %v4365_v52 = vpop.f32.mrb[39].mxu1 }
 0x4dd   : > { %2893 = vst.msk [vmem:[#allocation3 + $0x40] sm:$0xff] %vm2292_vm11, %v2892_v51 }
 0x4e4   : > { %v2904_v54 = vld [vmem:[#allocation3 + $0x40] sm:$0xff] }
 0x4e5   : > { %2946 = vmatpush1.bf16.msra.mxu0 %v2904_v54 }
 0x4e6   : > { %4366 = vmatprep.subr.bf16.mxu0 %v4669_v40 }
 0x4e8   : > { %2962 = vmatmul.mubr.bf16.vlgmr.msra.gmra.mrb[40].mxu0 %v4647_v13 }
 0x4e9   : > { %4368 = vmatprep.mubr.msk.bf16.mxu0 %vm4670_vm8, %v4669_v40  ;;  %4367 = vmatpush3.bf16.msra.mxu0 %v2992_v60 }
 0x4ea   : > { %4390 = vmatprep.subr.bf16.mxu0 %v4669_v40 }
 0x5bb   : > { %v2963_v63 = vpop.f32.mrb[40].mxu0 }
 0x5bc   : > { %v2964_v53 = vadd.f32 %v2963_v63, %v2910_v62  ;;  %v2965_v0 = vpop.f32.mrb[41].mxu0 }
 0x5bd   : > { %v2966_v3 = vpop.f32.mrb[42].mxu0 }
 0x5be   : > { %v2972_v5 = vmul.f32 0.1, %v2964_v53  ;;  %v2967_v6 = vadd.f32 %v2966_v3, %v2915_v1  ;;  %v2968_v7 = vpop.f32.mrb[43].mxu0  ;;  %vm2970_vm14 = vcmp.ge.f32.partialorder %v2964_v53, 0.0 }
 0x5c0   : > { %vm2971_vm15 = vcmp.ge.f32.partialorder %v2967_v6, 0.0  ;;  %v2973_v9 = vmul.f32 0.1, %v2967_v6  ;;  %v2974_v10 = vsel %vm2970_vm14, %v2964_v53, %v2972_v5 }
 0x5c2   : > { %v2975_v12 = vsel %vm2971_vm15, %v2967_v6, %v2973_v9 }
 0x5c3   : > { %v2976_v16 = vpack.c.bf16 %v2975_v12, %v2974_v10 }
 0x5c5   : > { %4369 = vmatmul.mubr.msk.bf16.vlgmr.msra.gmra.mrb[44].mxu0 %vm2292_vm11, %v2976_v16  ;;  %4375 = vmatmul.mubr.msk.bf16.vlgmr.msra.gmra.mrb[40].mxu1 %vm2292_vm11, %v2976_v16 }
 0x5c6   : > { %4379 = vmatpush3.bf16.msra.mxu1 %v3101_v14  ;;  %4391 = vmatpush3.bf16.msra.mxu0 %v3209_v15 }
 0x5c7   : > { %4380 = vmatprep.mubr.msk.bf16.mxu1 %vm4670_vm8, %v4669_v40  ;;  %4392 = vmatprep.mubr.msk.bf16.mxu0 %vm4670_vm8, %v4669_v40 }
 0x5c8   : > { %4384 = vmatprep.subr.bf16.mxu1 %v4669_v40  ;;  %4402 = vmatprep.subr.bf16.mxu0 %v4669_v40 }
 0x5cd   : > { %4381 = vmatmul.mubr.msk.bf16.vlgmr.msra.gmra.mrb[44].mxu1 %vm2292_vm11, %v2976_v16  ;;  %4393 = vmatmul.mubr.msk.bf16.vlgmr.msra.gmra.mrb[48].mxu0 %vm2292_vm11, %v2976_v16 }
 0x5ce   : > { %4385 = vmatpush3.bf16.msra.mxu1 %v3155_v19  ;;  %4403 = vmatpush3.bf16.msra.mxu0 %v3317_v20  ;;  %v4659_v19 = vld [vmem:[%s5754_s10] ss:$8 sps:$4 sm:$0xff]  }
 0x5cf   : > { %4386 = vmatprep.mubr.msk.bf16.mxu1 %vm4670_vm8, %v4669_v40  ;;  %4404 = vmatprep.mubr.msk.bf16.mxu0 %vm4670_vm8, %v4669_v40  ;;  %v3481_v20 = vld [vmem:[%s5755_s11] sm:$0xff] }
 0x5d0   : > { %4396 = vmatprep.subr.bf16.mxu1 %v4669_v40  ;;  %4414 = vmatprep.subr.bf16.mxu0 %v4669_v40 }
 0x5d5   : > { %4387 = vmatmul.mubr.msk.bf16.vlgmr.msra.gmra.mrb[48].mxu1 %vm2292_vm11, %v2976_v16  ;;  %4405 = vmatmul.mubr.msk.bf16.vlgmr.msra.gmra.mrb[52].mxu0 %vm2292_vm11, %v2976_v16 }
 0x5d6   : > { %4397 = vmatpush3.bf16.msra.mxu1 %v3263_v23  ;;  %4415 = vmatpush3.bf16.msra.mxu0 %v3425_v24 }
 0x5d7   : > { %4398 = vmatprep.mubr.msk.bf16.mxu1 %vm4670_vm8, %v4669_v40  ;;  %4416 = vmatprep.mubr.msk.bf16.mxu0 %vm4670_vm8, %v4669_v40 }
 0x5d8   : > { %4408 = vmatprep.subr.bf16.mxu1 %v4669_v40  ;;  %4420 = vmatprep.subr.bf16.mxu0 %v4669_v40 }
 0x5dd   : > { %4399 = vmatmul.mubr.msk.bf16.vlgmr.msra.gmra.mrb[52].mxu1 %vm2292_vm11, %v2976_v16  ;;  %4417 = vmatmul.mubr.msk.bf16.vlgmr.msra.gmra.mrb[56].mxu0 %vm2292_vm11, %v2976_v16 }
 0x5de   : > { %4409 = vmatpush3.bf16.msra.mxu1 %v3371_v26  ;;  %4410 = vmatprep.mubr.msk.bf16.mxu1 %vm4670_vm8, %v4669_v40 }
 0x5df   : > { %3495 = vmatprep.subr.bf16.mxu1 %v4668_v2  ;;  %4422 = vmatprep.mubr.msk.bf16.mxu0 %vm4670_vm8, %v4669_v40 }
 0x5e5   : > { %4411 = vmatmul.mubr.msk.bf16.vlgmr.msra.gmra.mrb[56].mxu1 %vm2292_vm11, %v2976_v16 }
 0x5e6   : > { %4189 = vmatprep.mubr.msk.bf16.mxu1 %vm598_vm0, %v4657_v27 }
 0x698   : > { %v3028_v28 = vpop.f32.mrb[44].mxu0  ;;  %v3083_v11 = vpop.f32.mrb[40].mxu1 }
 0x699   : > { %v4370_v29 = vpop.f32.mrb[45].mxu0  ;;  %v4376_v30 = vpop.f32.mrb[41].mxu1 }
 0x69a   : > { %v3031_v31 = vpop.f32.mrb[46].mxu0  ;;  %v3086_v32 = vpop.f32.mrb[42].mxu1 }
 0x69b   : > { %v3035_v33 = vpack.c.bf16 %v3031_v31, %v3028_v28  ;;  %v3090_v34 = vpack.c.bf16 %v3086_v32, %v3083_v11  ;;  %v4371_v35 = vpop.f32.mrb[47].mxu0  ;;  %v4377_v36 = vpop.f32.mrb[43].mxu1  ;;  %v3542_v31 = vld [vmem:[%s5756_s12] sm:$0xf] }
 0x69c   : > { %v3544_v32 = vld [vmem:[%s5757_s13] sm:$0xff] }
 0x69d   : > { %3037 = vst.msk [vmem:[#allocation4] sm:$0xff] %vm3036_vm1, %v3035_v33  ;;  %3091 = vst.msk [vmem:[#allocation4 + $0x8] sm:$0xff] %vm3036_vm1, %v3090_v34 }
 0x6a0   : > { %v3137_v40 = vpop.f32.mrb[44].mxu1  ;;  %v3245_v37 = vpop.f32.mrb[48].mxu0 }
 0x6a1   : > { %v4382_v38 = vpop.f32.mrb[45].mxu1  ;;  %v4394_v39 = vpop.f32.mrb[49].mxu0 }
 0x6a2   : > { %v3140_v41 = vpop.f32.mrb[46].mxu1  ;;  %v3248_v42 = vpop.f32.mrb[50].mxu0 }
 0x6a3   : > { %v3144_v43 = vpack.c.bf16 %v3140_v41, %v3137_v40  ;;  %v3252_v44 = vpack.c.bf16 %v3248_v42, %v3245_v37  ;;  %v4383_v45 = vpop.f32.mrb[47].mxu1  ;;  %v4395_v46 = vpop.f32.mrb[51].mxu0 }
 0x6a4   : > { %v3472_v47 = vld [vmem:[#allocation4] sm:$0xff]  ;;  %v3473_v50 = vld [vmem:[#allocation4 + $0x8] sm:$0xff] }
 0x6a5   : > { %3145 = vst.msk [vmem:[#allocation4 + $0x10] sm:$0xff] %vm3036_vm1, %v3144_v43  ;;  %3253 = vst.msk [vmem:[#allocation4 + $0x20] sm:$0xff] %vm3036_vm1, %v3252_v44  ;;  %3496 = vmatpush1.bf16.msra.mxu1 %v3472_v47 }
 0x6a6   : > { %3497 = vmatprep.subr.bf16.mxu1 %v4668_v2 }
 0x6a8   : > { %v3191_v48 = vpop.f32.mrb[48].mxu1  ;;  %v3353_v49 = vpop.f32.mrb[52].mxu0 }
 0x6a9   : > { %v4388_v51 = vpop.f32.mrb[49].mxu1  ;;  %v4406_v52 = vpop.f32.mrb[53].mxu0  ;;  %3498 = vmatpush1.bf16.msra.mxu1 %v3473_v50 }
 0x6aa   : > { %v3194_v54 = vpop.f32.mrb[50].mxu1  ;;  %v3356_v13 = vpop.f32.mrb[54].mxu0  ;;  %3499 = vmatprep.subr.bf16.mxu1 %v4668_v2 }
 0x6ab   : > { %v3198_v55 = vpack.c.bf16 %v3194_v54, %v3191_v48  ;;  %v3360_v56 = vpack.c.bf16 %v3356_v13, %v3353_v49  ;;  %v4389_v57 = vpop.f32.mrb[51].mxu1  ;;  %v4407_v58 = vpop.f32.mrb[55].mxu0 }
 0x6ac   : > { %v3474_v59 = vld [vmem:[#allocation4 + $0x10] sm:$0xff]  ;;  %v3476_v8 = vld [vmem:[#allocation4 + $0x20] sm:$0xff] }
 0x6ad   : > { %3199 = vst.msk [vmem:[#allocation4 + $0x18] sm:$0xff] %vm3036_vm1, %v3198_v55  ;;  %3361 = vst.msk [vmem:[#allocation4 + $0x30] sm:$0xff] %vm3036_vm1, %v3360_v56  ;;  %3500 = vmatpush1.bf16.msra.mxu1 %v3474_v59 }
 0x6ae   : > { %3501 = vmatprep.subr.bf16.mxu1 %v4668_v2 }
 0x6b0   : > { %v3299_v60 = vpop.f32.mrb[52].mxu1  ;;  %v3461_v61 = vpop.f32.mrb[56].mxu0 }
 0x6b1   : > { %v4400_v62 = vpop.f32.mrb[53].mxu1  ;;  %v4418_v63 = vpop.f32.mrb[57].mxu0 }
 0x6b2   : > { %v3302_v53 = vpop.f32.mrb[54].mxu1  ;;  %v3464_v0 = vpop.f32.mrb[58].mxu0 }
 0x6b3   : > { %v3306_v1 = vpack.c.bf16 %v3302_v53, %v3299_v60  ;;  %v3468_v3 = vpack.c.bf16 %v3464_v0, %v3461_v61  ;;  %v4401_v4 = vpop.f32.mrb[55].mxu1  ;;  %v4419_v5 = vpop.f32.mrb[59].mxu0 }
 0x6b4   : > { %v3475_v6 = vld [vmem:[#allocation4 + $0x18] sm:$0xff]  ;;  %v3478_v16 = vld [vmem:[#allocation4 + $0x30] sm:$0xff] }
 0x6b5   : > { %3307 = vst.msk [vmem:[#allocation4 + $0x28] sm:$0xff] %vm3036_vm1, %v3306_v1  ;;  %3469 = vst.msk [vmem:[#allocation4 + $0x40] sm:$0xff] %vm3036_vm1, %v3468_v3  ;;  %3502 = vmatpush1.bf16.msra.mxu1 %v3475_v6 }
 0x6b6   : > { %3503 = vmatprep.subr.bf16.mxu1 %v4668_v2 }
 0x6b8   : > { %v3407_v7 = vpop.f32.mrb[56].mxu1 }
 0x6b9   : > { %v4412_v9 = vpop.f32.mrb[57].mxu1  ;;  %3504 = vmatpush1.bf16.msra.mxu1 %v3476_v8 }
 0x6ba   : > { %v3410_v10 = vpop.f32.mrb[58].mxu1  ;;  %3505 = vmatprep.subr.bf16.mxu1 %v4668_v2 }
 0x6bb   : > { %v3414_v12 = vpack.c.bf16 %v3410_v10, %v3407_v7  ;;  %v4413_v14 = vpop.f32.mrb[59].mxu1 }
 0x6bc   : > { %v3477_v15 = vld [vmem:[#allocation4 + $0x28] sm:$0xff]  ;;  %v3480_v18 = vld [vmem:[#allocation4 + $0x40] sm:$0xff] }
 0x6bd   : > { %3415 = vst.msk [vmem:[#allocation4 + $0x38] sm:$0xff] %vm3036_vm1, %v3414_v12  ;;  %3506 = vmatpush1.bf16.msra.mxu1 %v3477_v15 }
 0x6be   : > { %3507 = vmatprep.subr.bf16.mxu1 %v4668_v2 }
 0x6c1   : > { %3508 = vmatpush1.bf16.msra.mxu1 %v3478_v16 }
 0x6c2   : > { %3509 = vmatprep.subr.bf16.mxu1 %v4668_v2 }
 0x6c4   : > { %v3479_v17 = vld [vmem:[#allocation4 + $0x38] sm:$0xff] }
 0x6c5   : > { %3510 = vmatpush1.bf16.msra.mxu1 %v3479_v17 }
 0x6c6   : > { %3511 = vmatprep.subr.bf16.mxu1 %v4668_v2 }
 0x6c9   : > { %3512 = vmatpush1.bf16.msra.mxu1 %v3480_v18 }
 0x6cc   : > { %3528 = vmatmul.mubr.bf16.vlgmr.msra.gmra.mrb[60].mxu1 %v4659_v19 }
 0x79f   : > { %v3529_v21 = vpop.f32.mrb[60].mxu1 }
 0x7a0   : > { %v3530_v23 = vadd.f32 %v3529_v21, %v3481_v20  ;;  %v3531_v24 = vpop.f32.mrb[61].mxu1 }
 0x7a1   : > { %v3532_v2 = vpop.f32.mrb[62].mxu1 }
 0x7a2   : > { %v3538_v25 = vmul.f32 0.1, %v3530_v23  ;;  %v3533_v26 = vadd.f32 %v3532_v2, %v3482_v22  ;;  %v3534_v27 = vpop.f32.mrb[63].mxu1  ;;  %vm3536_vm2 = vcmp.ge.f32.partialorder %v3530_v23, 0.0 }
 0x7a4   : > { %vm3537_vm3 = vcmp.ge.f32.partialorder %v3533_v26, 0.0  ;;  %v3539_v28 = vmul.f32 0.1, %v3533_v26  ;;  %v3540_v11 = vsel %vm3536_vm2, %v3530_v23, %v3538_v25 }
 0x7a6   : > { %v3541_v29 = vsel %vm3537_vm3, %v3533_v26, %v3539_v28 }
 0x7a7   : > { %v3543_v30 = vpack.c.bf16 %v3541_v29, %v3540_v11 }
 0x7a9   : > { %4421 = vmatpush3.bf16.msra.mxu0 %v3543_v30 }
 0x7ac   : > { %4423 = vmatmul.mubr.msk.bf16.vlgmr.msra.gmra.mrb[60].mxu0 %vm598_vm0, %v3542_v31 }
 0x87f   : > { %v3582_v33 = vpop.f32.mrb[60].mxu0 }
 0x880   : > { %v3583_v34 = vadd.f32 %v3582_v33, %v3544_v32  ;;  %v4424_v35 = vpop.f32.mrb[61].mxu0 }
 0x881   : > { %v3585_v36 = vpop.f32.mrb[62].mxu0 }
 0x882   : > { %3588 = vst.msk [vmem:[%s465_s26] sm:$0xff] %vm3036_vm1, %v3583_v34  ;;  %v4425_v40 = vpop.f32.mrb[63].mxu0 }
 0x883 PF: > { %s24_s29 = sadd.s32 1, %s4666_s29  }
 0x884   : > { %p21_p4 = scmp.ge.s32.totalorder %s24_s29, 4  }
 0x886   :  { %23 = sbr.rel (!%p21_p4) target bundleno = 1 (0x1), region = 130 }

</bundles_post_ra>
